<compile_context>
chip_gen: v5e
topology: v5e:2x2
jax: 0.10.0
libtpu: 0.0.40
codegen_flags: <defaults>
</compile_context>

<pallas_src>
import math

import jax
import jax.numpy as jnp
from jax.experimental import pallas as pl
from jax.experimental.pallas import tpu as pltpu


def _make_kernel(S, Se, d_model, d_k, d_v, h, d_ff, tq, compute_dtype, eps=1e-5):
    approx_recip = compute_dtype == jnp.bfloat16  # exact divide on the f32 check path

    def split_heads(packed, d):
        # (rows, h*d) -> (h, rows, d): static lane slices + leading-axis stack.
        return jnp.stack([packed[:, i * d:(i + 1) * d] for i in range(h)], axis=0)

    def merge_heads(o):
        # (h, rows, d) -> (rows, h*d): lane concat feeding the packed output projection.
        return jnp.concatenate([o[i] for i in range(h)], axis=-1)

    def kernel(x_ref, enc_ref, enc_pad_ref,
               wq1, wk1, wv1, wo1, bq1, bk1, bv1, bo1,
               wq2, wk2, wv2, wo2, bq2, bk2, bv2, bo2,
               w1, b1, w2, b2,
               g1, be1, g2, be2, g3, be3,
               out_ref,
               k1_sc, v1_sc, k2_sc, v2_sc):
        f32 = jnp.float32
        cdt = compute_dtype
        qi = pl.program_id(1)

        # ---- once per batch element: packed (lane-dense) K/V projections into scratch ----
        @pl.when(qi == 0)
        def _():
            xs = x_ref[0].astype(cdt)        # (S, D)
            es = enc_ref[0].astype(cdt)      # (Se, D)
            k1 = jnp.dot(xs, wk1[...], preferred_element_type=f32) + bk1[...]
            v1 = jnp.dot(xs, wv1[...], preferred_element_type=f32) + bv1[...]
            k2 = jnp.dot(es, wk2[...], preferred_element_type=f32) + bk2[...]
            v2 = jnp.dot(es, wv2[...], preferred_element_type=f32) + bv2[...]
            k1_sc[...] = split_heads(k1.astype(cdt), d_k)
            v1_sc[...] = split_heads(v1.astype(cdt), d_v)
            k2_sc[...] = split_heads(k2.astype(cdt), d_k)
            v2_sc[...] = split_heads(v2.astype(cdt), d_v)

        def layernorm(v, g_ref, b_ref):
            mu = jnp.mean(v, axis=-1, keepdims=True)
            var = jnp.mean((v - mu) ** 2, axis=-1, keepdims=True)
            return (v - mu) * jax.lax.rsqrt(var + eps) * g_ref[...] + b_ref[...]

        def attention(q_in_f32, wq, bq, wo, bo, k_sc, v_sc, keep):
            # Packed, lane-dense Q projection (1/sqrt(d_k) folded into wq/bq on the host).
            qp = jnp.dot(q_in_f32.astype(cdt), wq[...],
                         preferred_element_type=f32) + bq[...]           # (tq, h*d_k)
            qh = split_heads(qp.astype(cdt), d_k)                        # (h, tq, d_k)
            s = jnp.einsum("hqe,hke->hqk", qh, k_sc[...],
                           preferred_element_type=f32)                   # (h, tq, Sk) f32
            s = jnp.where(keep, s, -1e9)
            s = s - jnp.max(s, axis=-1, keepdims=True)
            p = jnp.exp(s)
            denom = jnp.sum(p, axis=-1, keepdims=True)
            p = p * pl.reciprocal(denom, approx=approx_recip)            # EUP slot
            o = jnp.einsum("hqk,hke->hqe", p.astype(cdt), v_sc[...],
                           preferred_element_type=f32)                   # (h, tq, d_v)
            # Single packed output projection: (tq, h*d_v) @ (h*d_v, D).
            return jnp.dot(merge_heads(o).astype(cdt), wo[...],
                           preferred_element_type=f32) + bo[...]         # (tq, D) f32

        # ---- query tile for this grid step ----
        q_start = pl.multiple_of(qi * tq, tq)
        xq = x_ref[0, pl.ds(q_start, tq), :].astype(f32)                 # (tq, D)

        # Causal mask from (tq,1) x (1,S) iotas -> no full (S,S) int32 materialization.
        row = q_start + jax.lax.broadcasted_iota(jnp.int32, (tq, 1), 0)
        col = jax.lax.broadcasted_iota(jnp.int32, (1, S), 1)
        causal_keep = row >= col                                         # (tq, S) bool
        cross_keep = enc_pad_ref[0] > 0.0                                # (1, Se) bool

        # sublayer 1: masked self-attention + residual + LN (dropout = identity)
        a1 = attention(xq, wq1, bq1, wo1, bo1, k1_sc, v1_sc, causal_keep)
        x1 = layernorm(a1 + xq, g1, be1)
        # sublayer 2: cross-attention over encoder output + residual + LN
        a2 = attention(x1, wq2, bq2, wo2, bo2, k2_sc, v2_sc, cross_keep)
        x2 = layernorm(a2 + x1, g2, be2)
        # sublayer 3: position-wise FFN + residual + LN
        hid = jnp.maximum(jnp.dot(x2.astype(cdt), w1[...],
                                  preferred_element_type=f32) + b1[...], 0.0)
        f = jnp.dot(hid.astype(cdt), w2[...], preferred_element_type=f32) + b2[...]
        out_ref[0] = layernorm(f + x2, g3, be3).astype(out_ref.dtype)

    return kernel


def _prepare_params(params, d_model, d_k, d_v, h, compute_dtype):
    """Host-side prep: fold 1/sqrt(d_k) into the Q projections, cast weights to the compute
    dtype (bf16 on the perf path -> half the weight DMA); biases/LN stay f32; layouts stay
    packed (lane-dense) for the in-kernel matmuls."""
    scale = 1.0 / math.sqrt(d_k)

    def w(a):
        return a.astype(compute_dtype)

    out = {}
    for t in ("1", "2"):
        out["wq" + t] = w(params["wq" + t] * scale)   # scale folded into weights
        out["bq" + t] = params["bq" + t] * scale      # ... and bias
        out["wk" + t] = w(params["wk" + t])
        out["bk" + t] = params["bk" + t]
        out["wv" + t] = w(params["wv" + t])
        out["bv" + t] = params["bv" + t]
        out["wo" + t] = w(params["wo" + t])           # packed (h*d_v, D)
        out["bo" + t] = params["bo" + t]
    out["w1"] = w(params["w1"]); out["b1"] = params["b1"]
    out["w2"] = w(params["w2"]); out["b2"] = params["b2"]
    for n in ("g1", "be1", "g2", "be2", "g3", "be3"):
        out[n] = params[n]
    return out


def _cost_estimate(B, S, Se, d_model, d_k, d_v, h, d_ff, all_args):
    mm = lambda m, k, n: 2 * m * k * n
    per_b = (
        # self-attention: Q/K/V projections, scores, PV, output projection
        2 * mm(S, d_model, h * d_k) + mm(S, d_model, h * d_v)
        + h * (mm(S, d_k, S) + mm(S, S, d_v)) + mm(S, h * d_v, d_model)
        # cross-attention
        + mm(S, d_model, h * d_k) + mm(Se, d_model, h * d_k) + mm(Se, d_model, h * d_v)
        + h * (mm(S, d_k, Se) + mm(S, Se, d_v)) + mm(S, h * d_v, d_model)
        # FFN
        + mm(S, d_model, d_ff) + mm(S, d_ff, d_model)
    )
    flops = B * per_b
    transcendentals = B * (h * S * (S + Se) + 3 * S)  # softmax exps + LN rsqrts
    bytes_accessed = sum(int(a.size) * a.dtype.itemsize for a in all_args) \
        + B * S * d_model * 4  # output
    return pl.CostEstimate(flops=int(flops), transcendentals=int(transcendentals),
                           bytes_accessed=int(bytes_accessed))


def _vmem_limit_bytes(S, Se, D, d_k, d_v, h, d_ff, tq, param_list, compute_dtype,
                      single_buffer_params):
    cdt_size = jnp.dtype(compute_dtype).itemsize
    pbuf = 1 if single_buffer_params else 2
    param_bytes = pbuf * sum(int(a.size) * a.dtype.itemsize for a in param_list)
    scratch_bytes = h * (S + Se) * (d_k + d_v) * cdt_size                 # K/V scratch
    io_bytes = 2 * (S * D + Se * D + Se + tq * D) * 4                     # double-buffered blocks
    skmax = max(S, Se)
    live = (3 * h * tq * skmax * 4                                        # scores / exp / probs
            + tq * (2 * h * d_k + 2 * h * d_v + d_ff + 8 * D) * 4)        # q/o/ffn/ln temps
    total = param_bytes + scratch_bytes + io_bytes + live + (8 << 20)     # headroom
    limit = min(max(total, 32 << 20), 100 << 20)                          # <=100 MiB (v5e/v6e)
    try:
        cap = pltpu.get_tpu_info().vmem_capacity_bytes                    # 64 MiB on v7x
        limit = min(limit, int(cap * 0.9))
    except Exception:
        pass
    return int(limit)


def decoder_block(x, enc, enc_pad, params, *, d_model, d_k, d_v, h, d_ff,
                  compute_dtype=jnp.bfloat16, tq=None, single_buffer_params=True):
    """x: (B,S,D) f32; enc: (B,Se,D) f32; enc_pad: (B,1,Se) f32 key-padding mask (1=keep).
    The self-attention mask is the causal (auto-regressive) mask, generated in-kernel."""
    B, S, D = x.shape
    Se = enc.shape[1]
    if tq is None:
        tq = S
        for cand in (512, 256, 128, 64, 32, 16, 8):
            if cand <= S and S % cand == 0:
                tq = cand
                break
    assert S % tq == 0
    num_q = S // tq

    kp = _prepare_params(params, d_model, d_k, d_v, h, compute_dtype)
    kernel = _make_kernel(S, Se, d_model, d_k, d_v, h, d_ff, tq, compute_dtype)

    param_list = [
        kp["wq1"], kp["wk1"], kp["wv1"], kp["wo1"],
        kp["bq1"], kp["bk1"], kp["bv1"], kp["bo1"],
        kp["wq2"], kp["wk2"], kp["wv2"], kp["wo2"],
        kp["bq2"], kp["bk2"], kp["bv2"], kp["bo2"],
        kp["w1"], kp["b1"], kp["w2"], kp["b2"],
        kp["g1"], kp["be1"], kp["g2"], kp["be2"], kp["g3"], kp["be3"],
    ]

    def param_spec(arr):
        nd = arr.ndim
        idx = lambda b, qi, _nd=nd: (0,) * _nd
        if single_buffer_params:
            # Grid-invariant blocks: single buffer halves parameter VMEM footprint.
            return pl.BlockSpec(arr.shape, idx, pipeline_mode=pl.Buffered(1))
        return pl.BlockSpec(arr.shape, idx)

    in_specs = [
        pl.BlockSpec((1, S, D), lambda b, qi: (b, 0, 0)),     # full x (self-attn K/V source)
        pl.BlockSpec((1, Se, D), lambda b, qi: (b, 0, 0)),    # encoder output
        pl.BlockSpec((1, 1, Se), lambda b, qi: (b, 0, 0)),    # encoder key-padding row
    ] + [param_spec(p) for p in param_list]

    vmem_limit = _vmem_limit_bytes(S, Se, D, d_k, d_v, h, d_ff, tq, param_list,
                                   compute_dtype, single_buffer_params)

    return pl.pallas_call(
        kernel,
        out_shape=jax.ShapeDtypeStruct((B, S, D), x.dtype),
        grid_spec=pltpu.PrefetchScalarGridSpec(
            num_scalar_prefetch=0,
            grid=(B, num_q),
            in_specs=in_specs,
            out_specs=pl.BlockSpec((1, tq, D), lambda b, qi: (b, qi, 0)),
            scratch_shapes=[
                pltpu.VMEM((h, S, d_k), compute_dtype),    # self-attn K (per batch elem)
                pltpu.VMEM((h, S, d_v), compute_dtype),    # self-attn V
                pltpu.VMEM((h, Se, d_k), compute_dtype),   # cross-attn K
                pltpu.VMEM((h, Se, d_v), compute_dtype),   # cross-attn V
            ],
        ),
        compiler_params=pltpu.CompilerParams(
            # q axis must be sequential: K/V scratch is filled at qi==0 and reused.
            dimension_semantics=("parallel", "arbitrary"),
            vmem_limit_bytes=vmem_limit,
        ),
        cost_estimate=_cost_estimate(B, S, Se, d_model, d_k, d_v, h, d_ff,
                                     [x, enc, enc_pad] + param_list),
    )(x, enc, enc_pad, *param_list)


# ---------------------------------------------------------------- reference --
def _reference(x, enc, enc_pad, p, *, d_k, d_v, h):
    B, S, _ = x.shape

    def ln(v, g, b, eps=1e-5):
        mu = jnp.mean(v, -1, keepdims=True)
        var = jnp.mean((v - mu) ** 2, -1, keepdims=True)
        return (v - mu) / jnp.sqrt(var + eps) * g + b

    def mha(q_in, kv_in, keep, wq, wk, wv, wo, bq, bk, bv, bo):
        Bq, Sq, _ = q_in.shape
        Sk = kv_in.shape[1]
        q = (q_in @ wq + bq).reshape(Bq, Sq, h, d_k).transpose(0, 2, 1, 3)
        k = (kv_in @ wk + bk).reshape(Bq, Sk, h, d_k).transpose(0, 2, 1, 3)
        v = (kv_in @ wv + bv).reshape(Bq, Sk, h, d_v).transpose(0, 2, 1, 3)
        s = jnp.einsum("bhqd,bhkd->bhqk", q, k) / math.sqrt(d_k)
        s = jnp.where(keep, s, -1e9)
        a = jax.nn.softmax(s, axis=-1)
        o = jnp.einsum("bhqk,bhkd->bhqd", a, v).transpose(0, 2, 1, 3).reshape(Bq, Sq, h * d_v)
        return o @ wo + bo

    causal = jnp.tril(jnp.ones((S, S), bool))[None, None]           # (1,1,S,S)
    cross_keep = (enc_pad > 0.0)[:, :, None, :]                     # (B,1,1,Se)

    a1 = mha(x, x, causal, p["wq1"], p["wk1"], p["wv1"], p["wo1"],
             p["bq1"], p["bk1"], p["bv1"], p["bo1"])
    x1 = ln(a1 + x, p["g1"], p["be1"])
    a2 = mha(x1, enc, cross_keep, p["wq2"], p["wk2"], p["wv2"], p["wo2"],
             p["bq2"], p["bk2"], p["bv2"], p["bo2"])
    x2 = ln(a2 + x1, p["g2"], p["be2"])
    f = jnp.maximum(x2 @ p["w1"] + p["b1"], 0.0) @ p["w2"] + p["b2"]
    return ln(f + x2, p["g3"], p["be3"])


if __name__ == "__main__":
    # Small shapes consistent with the module's forward signature.
    B, S, Se = 2, 8, 8
    d_model, d_k, d_v, h, d_ff = 32, 8, 8, 4, 64

    key = jax.random.PRNGKey(0)
    keys = jax.random.split(key, 32)
    ki = iter(keys)

    def w(shape, scale=0.1):
        return jax.random.normal(next(ki), shape, jnp.float32) * scale

    params = {
        # masked self-attention (packed torch-style layout)
        "wq1": w((d_model, h * d_k)), "wk1": w((d_model, h * d_k)),
        "wv1": w((d_model, h * d_v)), "wo1": w((h * d_v, d_model)),
        "bq1": w((1, h * d_k)), "bk1": w((1, h * d_k)),
        "bv1": w((1, h * d_v)), "bo1": w((1, d_model)),
        # cross-attention
        "wq2": w((d_model, h * d_k)), "wk2": w((d_model, h * d_k)),
        "wv2": w((d_model, h * d_v)), "wo2": w((h * d_v, d_model)),
        "bq2": w((1, h * d_k)), "bk2": w((1, h * d_k)),
        "bv2": w((1, h * d_v)), "bo2": w((1, d_model)),
        # FFN
        "w1": w((d_model, d_ff)), "b1": w((1, d_ff)),
        "w2": w((d_ff, d_model)), "b2": w((1, d_model)),
        # LayerNorms (gamma=1, beta=0, like torch defaults)
        "g1": jnp.ones((1, d_model), jnp.float32), "be1": jnp.zeros((1, d_model), jnp.float32),
        "g2": jnp.ones((1, d_model), jnp.float32), "be2": jnp.zeros((1, d_model), jnp.float32),
        "g3": jnp.ones((1, d_model), jnp.float32), "be3": jnp.zeros((1, d_model), jnp.float32),
    }

    x = jax.random.normal(next(ki), (B, S, d_model), jnp.float32)
    enc = jax.random.normal(next(ki), (B, Se, d_model), jnp.float32)
    # Encoder key-padding mask (1=keep, 0=mask); mask the last encoder position.
    enc_pad = jnp.ones((B, 1, Se), jnp.float32).at[:, :, -1].set(0.0)

    ref = _reference(x, enc, enc_pad, params, d_k=d_k, d_v=d_v, h=h)

    def run(compute_dtype, single_buffer):
        out = decoder_block(x, enc, enc_pad, params, d_model=d_model, d_k=d_k,
                            d_v=d_v, h=h, d_ff=d_ff, compute_dtype=compute_dtype,
                            single_buffer_params=single_buffer)
        return jax.block_until_ready(out)

    try:
        out_bf16 = run(jnp.bfloat16, True)   # perf path
        out_f32 = run(jnp.float32, True)     # numerics path
    except Exception:
        # Fallback if this jax build rejects pl.Buffered(1) single-buffering for params.
        out_bf16 = run(jnp.bfloat16, False)
        out_f32 = run(jnp.float32, False)

    assert out_bf16.shape == (B, S, d_model)
    assert jnp.allclose(out_bf16, ref, atol=5e-2, rtol=5e-2), "bf16 path mismatch vs reference"
    assert out_f32.shape == (B, S, d_model)
    assert jnp.allclose(out_f32, ref, atol=1e-4, rtol=1e-4), "f32 path mismatch vs reference"

    print("KERNEL_OK")
</pallas_src>

<mosaic_0001>
module attributes {stable_mosaic.version = 11 : i64} {
  func.func @kernel(%arg0: i32, %arg1: i32, %arg2: memref<1x8x32xf32, #tpu.memory_space<vmem>>, %arg3: memref<1x8x32xf32, #tpu.memory_space<vmem>>, %arg4: memref<1x1x8xf32, #tpu.memory_space<vmem>>, %arg5: memref<32x32xbf16, #tpu.memory_space<vmem>>, %arg6: memref<32x32xbf16, #tpu.memory_space<vmem>>, %arg7: memref<32x32xbf16, #tpu.memory_space<vmem>>, %arg8: memref<32x32xbf16, #tpu.memory_space<vmem>>, %arg9: memref<1x32xf32, #tpu.memory_space<vmem>>, %arg10: memref<1x32xf32, #tpu.memory_space<vmem>>, %arg11: memref<1x32xf32, #tpu.memory_space<vmem>>, %arg12: memref<1x32xf32, #tpu.memory_space<vmem>>, %arg13: memref<32x32xbf16, #tpu.memory_space<vmem>>, %arg14: memref<32x32xbf16, #tpu.memory_space<vmem>>, %arg15: memref<32x32xbf16, #tpu.memory_space<vmem>>, %arg16: memref<32x32xbf16, #tpu.memory_space<vmem>>, %arg17: memref<1x32xf32, #tpu.memory_space<vmem>>, %arg18: memref<1x32xf32, #tpu.memory_space<vmem>>, %arg19: memref<1x32xf32, #tpu.memory_space<vmem>>, %arg20: memref<1x32xf32, #tpu.memory_space<vmem>>, %arg21: memref<32x64xbf16, #tpu.memory_space<vmem>>, %arg22: memref<1x64xf32, #tpu.memory_space<vmem>>, %arg23: memref<64x32xbf16, #tpu.memory_space<vmem>>, %arg24: memref<1x32xf32, #tpu.memory_space<vmem>>, %arg25: memref<1x32xf32, #tpu.memory_space<vmem>>, %arg26: memref<1x32xf32, #tpu.memory_space<vmem>>, %arg27: memref<1x32xf32, #tpu.memory_space<vmem>>, %arg28: memref<1x32xf32, #tpu.memory_space<vmem>>, %arg29: memref<1x32xf32, #tpu.memory_space<vmem>>, %arg30: memref<1x32xf32, #tpu.memory_space<vmem>>, %arg31: memref<1x8x32xf32, #tpu.memory_space<vmem>>, %arg32: memref<4x8x8xbf16, #tpu.memory_space<vmem>>, %arg33: memref<4x8x8xbf16, #tpu.memory_space<vmem>>, %arg34: memref<4x8x8xbf16, #tpu.memory_space<vmem>>, %arg35: memref<4x8x8xbf16, #tpu.memory_space<vmem>>) attributes {dimension_semantics = [#tpu.dimension_semantics<parallel>, #tpu.dimension_semantics<arbitrary>], iteration_bounds = array<i64: 2, 1>, scalar_prefetch = 0 : i64, scratch_operands = 4 : i64, tpu.core_type = #tpu.core_type<tc>, window_params = [{transform_indices = @transform_0, window_bounds = array<i64: 1, 8, 32>}, {transform_indices = @transform_1, window_bounds = array<i64: 1, 8, 32>}, {transform_indices = @transform_2, window_bounds = array<i64: 1, 1, 8>}, {pipeline_mode = #tpu.pipeline_mode<synchronous>, transform_indices = @transform_3, window_bounds = array<i64: 32, 32>}, {pipeline_mode = #tpu.pipeline_mode<synchronous>, transform_indices = @transform_4, window_bounds = array<i64: 32, 32>}, {pipeline_mode = #tpu.pipeline_mode<synchronous>, transform_indices = @transform_5, window_bounds = array<i64: 32, 32>}, {pipeline_mode = #tpu.pipeline_mode<synchronous>, transform_indices = @transform_6, window_bounds = array<i64: 32, 32>}, {pipeline_mode = #tpu.pipeline_mode<synchronous>, transform_indices = @transform_7, window_bounds = array<i64: 1, 32>}, {pipeline_mode = #tpu.pipeline_mode<synchronous>, transform_indices = @transform_8, window_bounds = array<i64: 1, 32>}, {pipeline_mode = #tpu.pipeline_mode<synchronous>, transform_indices = @transform_9, window_bounds = array<i64: 1, 32>}, {pipeline_mode = #tpu.pipeline_mode<synchronous>, transform_indices = @transform_10, window_bounds = array<i64: 1, 32>}, {pipeline_mode = #tpu.pipeline_mode<synchronous>, transform_indices = @transform_11, window_bounds = array<i64: 32, 32>}, {pipeline_mode = #tpu.pipeline_mode<synchronous>, transform_indices = @transform_12, window_bounds = array<i64: 32, 32>}, {pipeline_mode = #tpu.pipeline_mode<synchronous>, transform_indices = @transform_13, window_bounds = array<i64: 32, 32>}, {pipeline_mode = #tpu.pipeline_mode<synchronous>, transform_indices = @transform_14, window_bounds = array<i64: 32, 32>}, {pipeline_mode = #tpu.pipeline_mode<synchronous>, transform_indices = @transform_15, window_bounds = array<i64: 1, 32>}, {pipeline_mode = #tpu.pipeline_mode<synchronous>, transform_indices = @transform_16, window_bounds = array<i64: 1, 32>}, {pipeline_mode = #tpu.pipeline_mode<synchronous>, transform_indices = @transform_17, window_bounds = array<i64: 1, 32>}, {pipeline_mode = #tpu.pipeline_mode<synchronous>, transform_indices = @transform_18, window_bounds = array<i64: 1, 32>}, {pipeline_mode = #tpu.pipeline_mode<synchronous>, transform_indices = @transform_19, window_bounds = array<i64: 32, 64>}, {pipeline_mode = #tpu.pipeline_mode<synchronous>, transform_indices = @transform_20, window_bounds = array<i64: 1, 64>}, {pipeline_mode = #tpu.pipeline_mode<synchronous>, transform_indices = @transform_21, window_bounds = array<i64: 64, 32>}, {pipeline_mode = #tpu.pipeline_mode<synchronous>, transform_indices = @transform_22, window_bounds = array<i64: 1, 32>}, {pipeline_mode = #tpu.pipeline_mode<synchronous>, transform_indices = @transform_23, window_bounds = array<i64: 1, 32>}, {pipeline_mode = #tpu.pipeline_mode<synchronous>, transform_indices = @transform_24, window_bounds = array<i64: 1, 32>}, {pipeline_mode = #tpu.pipeline_mode<synchronous>, transform_indices = @transform_25, window_bounds = array<i64: 1, 32>}, {pipeline_mode = #tpu.pipeline_mode<synchronous>, transform_indices = @transform_26, window_bounds = array<i64: 1, 32>}, {pipeline_mode = #tpu.pipeline_mode<synchronous>, transform_indices = @transform_27, window_bounds = array<i64: 1, 32>}, {pipeline_mode = #tpu.pipeline_mode<synchronous>, transform_indices = @transform_28, window_bounds = array<i64: 1, 32>}, {transform_indices = @transform_29, window_bounds = array<i64: 1, 8, 32>}]} {
    %c0_i32 = arith.constant 0 : i32
    %0 = arith.cmpi eq, %arg1, %c0_i32 : i32
    %1 = arith.extui %0 : i1 to i32
    %c0_i32_0 = arith.constant 0 : i32
    %2 = arith.cmpi ne, %1, %c0_i32_0 : i32
    scf.if %2 {
      %c0_88 = arith.constant 0 : index
      %c0_89 = arith.constant 0 : index
      %c0_90 = arith.constant 0 : index
      %211 = vector.load %arg2[%c0_88, %c0_89, %c0_90] : memref<1x8x32xf32, #tpu.memory_space<vmem>>, vector<1x8x32xf32>
      %212 = vector.shape_cast %211 : vector<1x8x32xf32> to vector<8x32xf32>
      %213 = arith.truncf %212 : vector<8x32xf32> to vector<8x32xbf16>
      %c0_91 = arith.constant 0 : index
      %c0_92 = arith.constant 0 : index
      %c0_93 = arith.constant 0 : index
      %214 = vector.load %arg3[%c0_91, %c0_92, %c0_93] : memref<1x8x32xf32, #tpu.memory_space<vmem>>, vector<1x8x32xf32>
      %215 = vector.shape_cast %214 : vector<1x8x32xf32> to vector<8x32xf32>
      %216 = arith.truncf %215 : vector<8x32xf32> to vector<8x32xbf16>
      %c0_94 = arith.constant 0 : index
      %c0_95 = arith.constant 0 : index
      %217 = vector.load %arg6[%c0_94, %c0_95] : memref<32x32xbf16, #tpu.memory_space<vmem>>, vector<32x32xbf16>
      %cst_96 = arith.constant dense<0.000000e+00> : vector<8x32xf32>
      %218 = tpu.matmul %213, %217, %cst_96 {dimension_numbers = #tpu.dot_dimension_numbers<[1], [0], [0], [1], [0, 0, 1, 1], [], []>} : vector<8x32xbf16>, vector<32x32xbf16>, vector<8x32xf32> -> vector<8x32xf32>
      %c0_97 = arith.constant 0 : index
      %c0_98 = arith.constant 0 : index
      %219 = vector.load %arg10[%c0_97, %c0_98] : memref<1x32xf32, #tpu.memory_space<vmem>>, vector<1x32xf32>
      %220 = vector.broadcast %219 : vector<1x32xf32> to vector<8x32xf32>
      %221 = arith.addf %218, %220 : vector<8x32xf32>
      %c0_99 = arith.constant 0 : index
      %c0_100 = arith.constant 0 : index
      %222 = vector.load %arg7[%c0_99, %c0_100] : memref<32x32xbf16, #tpu.memory_space<vmem>>, vector<32x32xbf16>
      %cst_101 = arith.constant dense<0.000000e+00> : vector<8x32xf32>
      %223 = tpu.matmul %213, %222, %cst_101 {dimension_numbers = #tpu.dot_dimension_numbers<[1], [0], [0], [1], [0, 0, 1, 1], [], []>} : vector<8x32xbf16>, vector<32x32xbf16>, vector<8x32xf32> -> vector<8x32xf32>
      %c0_102 = arith.constant 0 : index
      %c0_103 = arith.constant 0 : index
      %224 = vector.load %arg11[%c0_102, %c0_103] : memref<1x32xf32, #tpu.memory_space<vmem>>, vector<1x32xf32>
      %225 = vector.broadcast %224 : vector<1x32xf32> to vector<8x32xf32>
      %226 = arith.addf %223, %225 : vector<8x32xf32>
      %c0_104 = arith.constant 0 : index
      %c0_105 = arith.constant 0 : index
      %227 = vector.load %arg14[%c0_104, %c0_105] : memref<32x32xbf16, #tpu.memory_space<vmem>>, vector<32x32xbf16>
      %cst_106 = arith.constant dense<0.000000e+00> : vector<8x32xf32>
      %228 = tpu.matmul %216, %227, %cst_106 {dimension_numbers = #tpu.dot_dimension_numbers<[1], [0], [0], [1], [0, 0, 1, 1], [], []>} : vector<8x32xbf16>, vector<32x32xbf16>, vector<8x32xf32> -> vector<8x32xf32>
      %c0_107 = arith.constant 0 : index
      %c0_108 = arith.constant 0 : index
      %229 = vector.load %arg18[%c0_107, %c0_108] : memref<1x32xf32, #tpu.memory_space<vmem>>, vector<1x32xf32>
      %230 = vector.broadcast %229 : vector<1x32xf32> to vector<8x32xf32>
      %231 = arith.addf %228, %230 : vector<8x32xf32>
      %c0_109 = arith.constant 0 : index
      %c0_110 = arith.constant 0 : index
      %232 = vector.load %arg15[%c0_109, %c0_110] : memref<32x32xbf16, #tpu.memory_space<vmem>>, vector<32x32xbf16>
      %cst_111 = arith.constant dense<0.000000e+00> : vector<8x32xf32>
      %233 = tpu.matmul %216, %232, %cst_111 {dimension_numbers = #tpu.dot_dimension_numbers<[1], [0], [0], [1], [0, 0, 1, 1], [], []>} : vector<8x32xbf16>, vector<32x32xbf16>, vector<8x32xf32> -> vector<8x32xf32>
      %c0_112 = arith.constant 0 : index
      %c0_113 = arith.constant 0 : index
      %234 = vector.load %arg19[%c0_112, %c0_113] : memref<1x32xf32, #tpu.memory_space<vmem>>, vector<1x32xf32>
      %235 = vector.broadcast %234 : vector<1x32xf32> to vector<8x32xf32>
      %236 = arith.addf %233, %235 : vector<8x32xf32>
      %237 = arith.truncf %221 : vector<8x32xf32> to vector<8x32xbf16>
      %238 = vector.extract_strided_slice %237 {offsets = [0, 0], sizes = [8, 8], strides = [1, 1]} : vector<8x32xbf16> to vector<8x8xbf16>
      %239 = vector.extract_strided_slice %237 {offsets = [0, 8], sizes = [8, 8], strides = [1, 1]} : vector<8x32xbf16> to vector<8x8xbf16>
      %240 = vector.extract_strided_slice %237 {offsets = [0, 16], sizes = [8, 8], strides = [1, 1]} : vector<8x32xbf16> to vector<8x8xbf16>
      %241 = vector.extract_strided_slice %237 {offsets = [0, 24], sizes = [8, 8], strides = [1, 1]} : vector<8x32xbf16> to vector<8x8xbf16>
      %242 = vector.shape_cast %238 : vector<8x8xbf16> to vector<1x8x8xbf16>
      %243 = vector.shape_cast %239 : vector<8x8xbf16> to vector<1x8x8xbf16>
      %244 = vector.shape_cast %240 : vector<8x8xbf16> to vector<1x8x8xbf16>
      %245 = vector.shape_cast %241 : vector<8x8xbf16> to vector<1x8x8xbf16>
      %246 = tpu.concatenate %242, %243, %244, %245 in 0 : vector<1x8x8xbf16>, vector<1x8x8xbf16>, vector<1x8x8xbf16>, vector<1x8x8xbf16> -> vector<4x8x8xbf16>
      %c0_114 = arith.constant 0 : index
      %c0_115 = arith.constant 0 : index
      %c0_116 = arith.constant 0 : index
      %247 = vector.load %arg32[%c0_114, %c0_115, %c0_116] : memref<4x8x8xbf16, #tpu.memory_space<vmem>>, vector<4x8x8xbf16>
      tpu.vector_store %arg32[%c0_114, %c0_115, %c0_116], %246 {strides = array<i32>} : memref<4x8x8xbf16, #tpu.memory_space<vmem>>, vector<4x8x8xbf16>,
      %248 = arith.truncf %226 : vector<8x32xf32> to vector<8x32xbf16>
      %249 = vector.extract_strided_slice %248 {offsets = [0, 0], sizes = [8, 8], strides = [1, 1]} : vector<8x32xbf16> to vector<8x8xbf16>
      %250 = vector.extract_strided_slice %248 {offsets = [0, 8], sizes = [8, 8], strides = [1, 1]} : vector<8x32xbf16> to vector<8x8xbf16>
      %251 = vector.extract_strided_slice %248 {offsets = [0, 16], sizes = [8, 8], strides = [1, 1]} : vector<8x32xbf16> to vector<8x8xbf16>
      %252 = vector.extract_strided_slice %248 {offsets = [0, 24], sizes = [8, 8], strides = [1, 1]} : vector<8x32xbf16> to vector<8x8xbf16>
      %253 = vector.shape_cast %249 : vector<8x8xbf16> to vector<1x8x8xbf16>
      %254 = vector.shape_cast %250 : vector<8x8xbf16> to vector<1x8x8xbf16>
      %255 = vector.shape_cast %251 : vector<8x8xbf16> to vector<1x8x8xbf16>
      %256 = vector.shape_cast %252 : vector<8x8xbf16> to vector<1x8x8xbf16>
      %257 = tpu.concatenate %253, %254, %255, %256 in 0 : vector<1x8x8xbf16>, vector<1x8x8xbf16>, vector<1x8x8xbf16>, vector<1x8x8xbf16> -> vector<4x8x8xbf16>
      %c0_117 = arith.constant 0 : index
      %c0_118 = arith.constant 0 : index
      %c0_119 = arith.constant 0 : index
      %258 = vector.load %arg33[%c0_117, %c0_118, %c0_119] : memref<4x8x8xbf16, #tpu.memory_space<vmem>>, vector<4x8x8xbf16>
      tpu.vector_store %arg33[%c0_117, %c0_118, %c0_119], %257 {strides = array<i32>} : memref<4x8x8xbf16, #tpu.memory_space<vmem>>, vector<4x8x8xbf16>,
      %259 = arith.truncf %231 : vector<8x32xf32> to vector<8x32xbf16>
      %260 = vector.extract_strided_slice %259 {offsets = [0, 0], sizes = [8, 8], strides = [1, 1]} : vector<8x32xbf16> to vector<8x8xbf16>
      %261 = vector.extract_strided_slice %259 {offsets = [0, 8], sizes = [8, 8], strides = [1, 1]} : vector<8x32xbf16> to vector<8x8xbf16>
      %262 = vector.extract_strided_slice %259 {offsets = [0, 16], sizes = [8, 8], strides = [1, 1]} : vector<8x32xbf16> to vector<8x8xbf16>
      %263 = vector.extract_strided_slice %259 {offsets = [0, 24], sizes = [8, 8], strides = [1, 1]} : vector<8x32xbf16> to vector<8x8xbf16>
      %264 = vector.shape_cast %260 : vector<8x8xbf16> to vector<1x8x8xbf16>
      %265 = vector.shape_cast %261 : vector<8x8xbf16> to vector<1x8x8xbf16>
      %266 = vector.shape_cast %262 : vector<8x8xbf16> to vector<1x8x8xbf16>
      %267 = vector.shape_cast %263 : vector<8x8xbf16> to vector<1x8x8xbf16>
      %268 = tpu.concatenate %264, %265, %266, %267 in 0 : vector<1x8x8xbf16>, vector<1x8x8xbf16>, vector<1x8x8xbf16>, vector<1x8x8xbf16> -> vector<4x8x8xbf16>
      %c0_120 = arith.constant 0 : index
      %c0_121 = arith.constant 0 : index
      %c0_122 = arith.constant 0 : index
      %269 = vector.load %arg34[%c0_120, %c0_121, %c0_122] : memref<4x8x8xbf16, #tpu.memory_space<vmem>>, vector<4x8x8xbf16>
      tpu.vector_store %arg34[%c0_120, %c0_121, %c0_122], %268 {strides = array<i32>} : memref<4x8x8xbf16, #tpu.memory_space<vmem>>, vector<4x8x8xbf16>,
      %270 = arith.truncf %236 : vector<8x32xf32> to vector<8x32xbf16>
      %271 = vector.extract_strided_slice %270 {offsets = [0, 0], sizes = [8, 8], strides = [1, 1]} : vector<8x32xbf16> to vector<8x8xbf16>
      %272 = vector.extract_strided_slice %270 {offsets = [0, 8], sizes = [8, 8], strides = [1, 1]} : vector<8x32xbf16> to vector<8x8xbf16>
      %273 = vector.extract_strided_slice %270 {offsets = [0, 16], sizes = [8, 8], strides = [1, 1]} : vector<8x32xbf16> to vector<8x8xbf16>
      %274 = vector.extract_strided_slice %270 {offsets = [0, 24], sizes = [8, 8], strides = [1, 1]} : vector<8x32xbf16> to vector<8x8xbf16>
      %275 = vector.shape_cast %271 : vector<8x8xbf16> to vector<1x8x8xbf16>
      %276 = vector.shape_cast %272 : vector<8x8xbf16> to vector<1x8x8xbf16>
      %277 = vector.shape_cast %273 : vector<8x8xbf16> to vector<1x8x8xbf16>
      %278 = vector.shape_cast %274 : vector<8x8xbf16> to vector<1x8x8xbf16>
      %279 = tpu.concatenate %275, %276, %277, %278 in 0 : vector<1x8x8xbf16>, vector<1x8x8xbf16>, vector<1x8x8xbf16>, vector<1x8x8xbf16> -> vector<4x8x8xbf16>
      %c0_123 = arith.constant 0 : index
      %c0_124 = arith.constant 0 : index
      %c0_125 = arith.constant 0 : index
      %280 = vector.load %arg35[%c0_123, %c0_124, %c0_125] : memref<4x8x8xbf16, #tpu.memory_space<vmem>>, vector<4x8x8xbf16>
      tpu.vector_store %arg35[%c0_123, %c0_124, %c0_125], %279 {strides = array<i32>} : memref<4x8x8xbf16, #tpu.memory_space<vmem>>, vector<4x8x8xbf16>,
    } else {
    }
    %c8_i32 = arith.constant 8 : i32
    %3 = arith.muli %arg1, %c8_i32 : i32
    %4 = tpu.assume_multiple %3, 8 : i32
    %c0 = arith.constant 0 : index
    %5 = arith.index_cast %4 : i32 to index
    %c0_1 = arith.constant 0 : index
    %6 = vector.load %arg2[%c0, %5, %c0_1] : memref<1x8x32xf32, #tpu.memory_space<vmem>>, vector<1x8x32xf32>
    %7 = vector.shape_cast %6 : vector<1x8x32xf32> to vector<8x32xf32>
    %8 = tpu.iota {dimensions = array<i32: 0>} : vector<8x1xi32>
    %9 = vector.broadcast %4 : i32 to vector<8x1xi32>
    %10 = arith.addi %9, %8 : vector<8x1xi32>
    %11 = tpu.iota {dimensions = array<i32: 1>} : vector<1x8xi32>
    %12 = vector.broadcast %10 : vector<8x1xi32> to vector<8x8xi32>
    %13 = vector.broadcast %11 : vector<1x8xi32> to vector<8x8xi32>
    %14 = arith.cmpi sge, %12, %13 : vector<8x8xi32>
    %c0_2 = arith.constant 0 : index
    %c0_3 = arith.constant 0 : index
    %c0_4 = arith.constant 0 : index
    %15 = vector.load %arg4[%c0_2, %c0_3, %c0_4] : memref<1x1x8xf32, #tpu.memory_space<vmem>>, vector<1x1x8xf32>
    %16 = vector.shape_cast %15 : vector<1x1x8xf32> to vector<1x8xf32>
    %cst = arith.constant 0.000000e+00 : f32
    %17 = vector.broadcast %cst : f32 to vector<1x8xf32>
    %18 = arith.cmpf ogt, %16, %17 : vector<1x8xf32>
    %19 = arith.truncf %7 : vector<8x32xf32> to vector<8x32xbf16>
    %c0_5 = arith.constant 0 : index
    %c0_6 = arith.constant 0 : index
    %20 = vector.load %arg5[%c0_5, %c0_6] : memref<32x32xbf16, #tpu.memory_space<vmem>>, vector<32x32xbf16>
    %cst_7 = arith.constant dense<0.000000e+00> : vector<8x32xf32>
    %21 = tpu.matmul %19, %20, %cst_7 {dimension_numbers = #tpu.dot_dimension_numbers<[1], [0], [0], [1], [0, 0, 1, 1], [], []>} : vector<8x32xbf16>, vector<32x32xbf16>, vector<8x32xf32> -> vector<8x32xf32>
    %c0_8 = arith.constant 0 : index
    %c0_9 = arith.constant 0 : index
    %22 = vector.load %arg9[%c0_8, %c0_9] : memref<1x32xf32, #tpu.memory_space<vmem>>, vector<1x32xf32>
    %23 = vector.broadcast %22 : vector<1x32xf32> to vector<8x32xf32>
    %24 = arith.addf %21, %23 : vector<8x32xf32>
    %25 = arith.truncf %24 : vector<8x32xf32> to vector<8x32xbf16>
    %26 = vector.extract_strided_slice %25 {offsets = [0, 0], sizes = [8, 8], strides = [1, 1]} : vector<8x32xbf16> to vector<8x8xbf16>
    %27 = vector.extract_strided_slice %25 {offsets = [0, 8], sizes = [8, 8], strides = [1, 1]} : vector<8x32xbf16> to vector<8x8xbf16>
    %28 = vector.extract_strided_slice %25 {offsets = [0, 16], sizes = [8, 8], strides = [1, 1]} : vector<8x32xbf16> to vector<8x8xbf16>
    %29 = vector.extract_strided_slice %25 {offsets = [0, 24], sizes = [8, 8], strides = [1, 1]} : vector<8x32xbf16> to vector<8x8xbf16>
    %30 = vector.shape_cast %26 : vector<8x8xbf16> to vector<1x8x8xbf16>
    %31 = vector.shape_cast %27 : vector<8x8xbf16> to vector<1x8x8xbf16>
    %32 = vector.shape_cast %28 : vector<8x8xbf16> to vector<1x8x8xbf16>
    %33 = vector.shape_cast %29 : vector<8x8xbf16> to vector<1x8x8xbf16>
    %34 = tpu.concatenate %30, %31, %32, %33 in 0 : vector<1x8x8xbf16>, vector<1x8x8xbf16>, vector<1x8x8xbf16>, vector<1x8x8xbf16> -> vector<4x8x8xbf16>
    %c0_10 = arith.constant 0 : index
    %c0_11 = arith.constant 0 : index
    %c0_12 = arith.constant 0 : index
    %35 = vector.load %arg32[%c0_10, %c0_11, %c0_12] : memref<4x8x8xbf16, #tpu.memory_space<vmem>>, vector<4x8x8xbf16>
    "tpu.trace_start"() <{level = 10 : i32, message = "hqe,hke->hqk"}> : () -> ()
    %cst_13 = arith.constant dense<0.000000e+00> : vector<4x8x8xf32>
    %36 = tpu.matmul %34, %35, %cst_13 {dimension_numbers = #tpu.dot_dimension_numbers<[2], [2], [1], [1], [0, 0, 0, 1, 1, 1], [0], [0]>} : vector<4x8x8xbf16>, vector<4x8x8xbf16>, vector<4x8x8xf32> -> vector<4x8x8xf32>
    %cst_14 = arith.constant -1.000000e+09 : f32
    "tpu.trace_stop"() : () -> ()
    %37 = vector.shape_cast %14 : vector<8x8xi1> to vector<1x8x8xi1>
    %38 = vector.broadcast %37 : vector<1x8x8xi1> to vector<4x8x8xi1>
    %39 = vector.broadcast %cst_14 : f32 to vector<4x8x8xf32>
    %40 = arith.select %38, %36, %39 : vector<4x8x8xi1>, vector<4x8x8xf32>
    %cst_15 = arith.constant dense<0xFF800000> : vector<4x8xf32>
    %41 = vector.multi_reduction <maximumf>, %40, %cst_15 [2] : vector<4x8x8xf32> to vector<4x8xf32>
    %42 = vector.shape_cast %41 : vector<4x8xf32> to vector<4x8x1xf32>
    %43 = vector.broadcast %42 : vector<4x8x1xf32> to vector<4x8x8xf32>
    %44 = arith.subf %40, %43 : vector<4x8x8xf32>
    %45 = math.exp %44 : vector<4x8x8xf32>
    %cst_16 = arith.constant dense<0.000000e+00> : vector<4x8xf32>
    %46 = vector.multi_reduction <add>, %45, %cst_16 [2] : vector<4x8x8xf32> to vector<4x8xf32>
    %47 = vector.shape_cast %46 : vector<4x8xf32> to vector<4x8x1xf32>
    %48 = tpu.reciprocal %47 {approx = true} : vector<4x8x1xf32> -> vector<4x8x1xf32>
    %49 = vector.broadcast %48 : vector<4x8x1xf32> to vector<4x8x8xf32>
    %50 = arith.mulf %45, %49 : vector<4x8x8xf32>
    %51 = arith.truncf %50 : vector<4x8x8xf32> to vector<4x8x8xbf16>
    %c0_17 = arith.constant 0 : index
    %c0_18 = arith.constant 0 : index
    %c0_19 = arith.constant 0 : index
    %52 = vector.load %arg33[%c0_17, %c0_18, %c0_19] : memref<4x8x8xbf16, #tpu.memory_space<vmem>>, vector<4x8x8xbf16>
    "tpu.trace_start"() <{level = 10 : i32, message = "hqk,hke->hqe"}> : () -> ()
    %cst_20 = arith.constant dense<0.000000e+00> : vector<4x8x8xf32>
    %53 = tpu.matmul %51, %52, %cst_20 {dimension_numbers = #tpu.dot_dimension_numbers<[2], [1], [1], [2], [0, 0, 0, 1, 1, 2], [0], [0]>} : vector<4x8x8xbf16>, vector<4x8x8xbf16>, vector<4x8x8xf32> -> vector<4x8x8xf32>
    "tpu.trace_stop"() : () -> ()
    %54 = vector.extract_strided_slice %53 {offsets = [0, 0, 0], sizes = [1, 8, 8], strides = [1, 1, 1]} : vector<4x8x8xf32> to vector<1x8x8xf32>
    %55 = vector.shape_cast %54 : vector<1x8x8xf32> to vector<8x8xf32>
    %56 = vector.extract_strided_slice %53 {offsets = [1, 0, 0], sizes = [1, 8, 8], strides = [1, 1, 1]} : vector<4x8x8xf32> to vector<1x8x8xf32>
    %57 = vector.shape_cast %56 : vector<1x8x8xf32> to vector<8x8xf32>
    %58 = vector.extract_strided_slice %53 {offsets = [2, 0, 0], sizes = [1, 8, 8], strides = [1, 1, 1]} : vector<4x8x8xf32> to vector<1x8x8xf32>
    %59 = vector.shape_cast %58 : vector<1x8x8xf32> to vector<8x8xf32>
    %60 = vector.extract_strided_slice %53 {offsets = [3, 0, 0], sizes = [1, 8, 8], strides = [1, 1, 1]} : vector<4x8x8xf32> to vector<1x8x8xf32>
    %61 = vector.shape_cast %60 : vector<1x8x8xf32> to vector<8x8xf32>
    %62 = tpu.concatenate %55, %57, %59, %61 in 1 : vector<8x8xf32>, vector<8x8xf32>, vector<8x8xf32>, vector<8x8xf32> -> vector<8x32xf32>
    %63 = arith.truncf %62 : vector<8x32xf32> to vector<8x32xbf16>
    %c0_21 = arith.constant 0 : index
    %c0_22 = arith.constant 0 : index
    %64 = vector.load %arg8[%c0_21, %c0_22] : memref<32x32xbf16, #tpu.memory_space<vmem>>, vector<32x32xbf16>
    %cst_23 = arith.constant dense<0.000000e+00> : vector<8x32xf32>
    %65 = tpu.matmul %63, %64, %cst_23 {dimension_numbers = #tpu.dot_dimension_numbers<[1], [0], [0], [1], [0, 0, 1, 1], [], []>} : vector<8x32xbf16>, vector<32x32xbf16>, vector<8x32xf32> -> vector<8x32xf32>
    %c0_24 = arith.constant 0 : index
    %c0_25 = arith.constant 0 : index
    %66 = vector.load %arg12[%c0_24, %c0_25] : memref<1x32xf32, #tpu.memory_space<vmem>>, vector<1x32xf32>
    %67 = vector.broadcast %66 : vector<1x32xf32> to vector<8x32xf32>
    %68 = arith.addf %65, %67 : vector<8x32xf32>
    %69 = arith.addf %68, %7 : vector<8x32xf32>
    %cst_26 = arith.constant dense<0.000000e+00> : vector<8xf32>
    %70 = vector.multi_reduction <add>, %69, %cst_26 [1] : vector<8x32xf32> to vector<8xf32>
    %71 = vector.shape_cast %70 : vector<8xf32> to vector<8x1xf32>
    %cst_27 = arith.constant 3.200000e+01 : f32
    %72 = vector.broadcast %cst_27 : f32 to vector<8x1xf32>
    %73 = arith.divf %71, %72 : vector<8x1xf32>
    %74 = vector.broadcast %73 : vector<8x1xf32> to vector<8x32xf32>
    %75 = arith.subf %69, %74 : vector<8x32xf32>
    %76 = arith.mulf %75, %75 : vector<8x32xf32>
    %cst_28 = arith.constant dense<0.000000e+00> : vector<8xf32>
    %77 = vector.multi_reduction <add>, %76, %cst_28 [1] : vector<8x32xf32> to vector<8xf32>
    %78 = vector.shape_cast %77 : vector<8xf32> to vector<8x1xf32>
    %cst_29 = arith.constant 3.200000e+01 : f32
    %79 = vector.broadcast %cst_29 : f32 to vector<8x1xf32>
    %80 = arith.divf %78, %79 : vector<8x1xf32>
    %81 = vector.broadcast %73 : vector<8x1xf32> to vector<8x32xf32>
    %82 = arith.subf %69, %81 : vector<8x32xf32>
    %cst_30 = arith.constant 9.99999974E-6 : f32
    %83 = vector.broadcast %cst_30 : f32 to vector<8x1xf32>
    %84 = arith.addf %80, %83 : vector<8x1xf32>
    %85 = math.rsqrt %84 : vector<8x1xf32>
    %86 = vector.broadcast %85 : vector<8x1xf32> to vector<8x32xf32>
    %87 = arith.mulf %82, %86 : vector<8x32xf32>
    %c0_31 = arith.constant 0 : index
    %c0_32 = arith.constant 0 : index
    %88 = vector.load %arg25[%c0_31, %c0_32] : memref<1x32xf32, #tpu.memory_space<vmem>>, vector<1x32xf32>
    %89 = vector.broadcast %88 : vector<1x32xf32> to vector<8x32xf32>
    %90 = arith.mulf %87, %89 : vector<8x32xf32>
    %c0_33 = arith.constant 0 : index
    %c0_34 = arith.constant 0 : index
    %91 = vector.load %arg26[%c0_33, %c0_34] : memref<1x32xf32, #tpu.memory_space<vmem>>, vector<1x32xf32>
    %92 = vector.broadcast %91 : vector<1x32xf32> to vector<8x32xf32>
    %93 = arith.addf %90, %92 : vector<8x32xf32>
    %94 = arith.truncf %93 : vector<8x32xf32> to vector<8x32xbf16>
    %c0_35 = arith.constant 0 : index
    %c0_36 = arith.constant 0 : index
    %95 = vector.load %arg13[%c0_35, %c0_36] : memref<32x32xbf16, #tpu.memory_space<vmem>>, vector<32x32xbf16>
    %cst_37 = arith.constant dense<0.000000e+00> : vector<8x32xf32>
    %96 = tpu.matmul %94, %95, %cst_37 {dimension_numbers = #tpu.dot_dimension_numbers<[1], [0], [0], [1], [0, 0, 1, 1], [], []>} : vector<8x32xbf16>, vector<32x32xbf16>, vector<8x32xf32> -> vector<8x32xf32>
    %c0_38 = arith.constant 0 : index
    %c0_39 = arith.constant 0 : index
    %97 = vector.load %arg17[%c0_38, %c0_39] : memref<1x32xf32, #tpu.memory_space<vmem>>, vector<1x32xf32>
    %98 = vector.broadcast %97 : vector<1x32xf32> to vector<8x32xf32>
    %99 = arith.addf %96, %98 : vector<8x32xf32>
    %100 = arith.truncf %99 : vector<8x32xf32> to vector<8x32xbf16>
    %101 = vector.extract_strided_slice %100 {offsets = [0, 0], sizes = [8, 8], strides = [1, 1]} : vector<8x32xbf16> to vector<8x8xbf16>
    %102 = vector.extract_strided_slice %100 {offsets = [0, 8], sizes = [8, 8], strides = [1, 1]} : vector<8x32xbf16> to vector<8x8xbf16>
    %103 = vector.extract_strided_slice %100 {offsets = [0, 16], sizes = [8, 8], strides = [1, 1]} : vector<8x32xbf16> to vector<8x8xbf16>
    %104 = vector.extract_strided_slice %100 {offsets = [0, 24], sizes = [8, 8], strides = [1, 1]} : vector<8x32xbf16> to vector<8x8xbf16>
    %105 = vector.shape_cast %101 : vector<8x8xbf16> to vector<1x8x8xbf16>
    %106 = vector.shape_cast %102 : vector<8x8xbf16> to vector<1x8x8xbf16>
    %107 = vector.shape_cast %103 : vector<8x8xbf16> to vector<1x8x8xbf16>
    %108 = vector.shape_cast %104 : vector<8x8xbf16> to vector<1x8x8xbf16>
    %109 = tpu.concatenate %105, %106, %107, %108 in 0 : vector<1x8x8xbf16>, vector<1x8x8xbf16>, vector<1x8x8xbf16>, vector<1x8x8xbf16> -> vector<4x8x8xbf16>
    %c0_40 = arith.constant 0 : index
    %c0_41 = arith.constant 0 : index
    %c0_42 = arith.constant 0 : index
    %110 = vector.load %arg34[%c0_40, %c0_41, %c0_42] : memref<4x8x8xbf16, #tpu.memory_space<vmem>>, vector<4x8x8xbf16>
    "tpu.trace_start"() <{level = 10 : i32, message = "hqe,hke->hqk"}> : () -> ()
    %cst_43 = arith.constant dense<0.000000e+00> : vector<4x8x8xf32>
    %111 = tpu.matmul %109, %110, %cst_43 {dimension_numbers = #tpu.dot_dimension_numbers<[2], [2], [1], [1], [0, 0, 0, 1, 1, 1], [0], [0]>} : vector<4x8x8xbf16>, vector<4x8x8xbf16>, vector<4x8x8xf32> -> vector<4x8x8xf32>
    %cst_44 = arith.constant -1.000000e+09 : f32
    "tpu.trace_stop"() : () -> ()
    %112 = vector.shape_cast %18 : vector<1x8xi1> to vector<1x1x8xi1>
    %113 = vector.broadcast %112 : vector<1x1x8xi1> to vector<4x8x8xi1>
    %114 = vector.broadcast %cst_44 : f32 to vector<4x8x8xf32>
    %115 = arith.select %113, %111, %114 : vector<4x8x8xi1>, vector<4x8x8xf32>
    %cst_45 = arith.constant dense<0xFF800000> : vector<4x8xf32>
    %116 = vector.multi_reduction <maximumf>, %115, %cst_45 [2] : vector<4x8x8xf32> to vector<4x8xf32>
    %117 = vector.shape_cast %116 : vector<4x8xf32> to vector<4x8x1xf32>
    %118 = vector.broadcast %117 : vector<4x8x1xf32> to vector<4x8x8xf32>
    %119 = arith.subf %115, %118 : vector<4x8x8xf32>
    %120 = math.exp %119 : vector<4x8x8xf32>
    %cst_46 = arith.constant dense<0.000000e+00> : vector<4x8xf32>
    %121 = vector.multi_reduction <add>, %120, %cst_46 [2] : vector<4x8x8xf32> to vector<4x8xf32>
    %122 = vector.shape_cast %121 : vector<4x8xf32> to vector<4x8x1xf32>
    %123 = tpu.reciprocal %122 {approx = true} : vector<4x8x1xf32> -> vector<4x8x1xf32>
    %124 = vector.broadcast %123 : vector<4x8x1xf32> to vector<4x8x8xf32>
    %125 = arith.mulf %120, %124 : vector<4x8x8xf32>
    %126 = arith.truncf %125 : vector<4x8x8xf32> to vector<4x8x8xbf16>
    %c0_47 = arith.constant 0 : index
    %c0_48 = arith.constant 0 : index
    %c0_49 = arith.constant 0 : index
    %127 = vector.load %arg35[%c0_47, %c0_48, %c0_49] : memref<4x8x8xbf16, #tpu.memory_space<vmem>>, vector<4x8x8xbf16>
    "tpu.trace_start"() <{level = 10 : i32, message = "hqk,hke->hqe"}> : () -> ()
    %cst_50 = arith.constant dense<0.000000e+00> : vector<4x8x8xf32>
    %128 = tpu.matmul %126, %127, %cst_50 {dimension_numbers = #tpu.dot_dimension_numbers<[2], [1], [1], [2], [0, 0, 0, 1, 1, 2], [0], [0]>} : vector<4x8x8xbf16>, vector<4x8x8xbf16>, vector<4x8x8xf32> -> vector<4x8x8xf32>
    "tpu.trace_stop"() : () -> ()
    %129 = vector.extract_strided_slice %128 {offsets = [0, 0, 0], sizes = [1, 8, 8], strides = [1, 1, 1]} : vector<4x8x8xf32> to vector<1x8x8xf32>
    %130 = vector.shape_cast %129 : vector<1x8x8xf32> to vector<8x8xf32>
    %131 = vector.extract_strided_slice %128 {offsets = [1, 0, 0], sizes = [1, 8, 8], strides = [1, 1, 1]} : vector<4x8x8xf32> to vector<1x8x8xf32>
    %132 = vector.shape_cast %131 : vector<1x8x8xf32> to vector<8x8xf32>
    %133 = vector.extract_strided_slice %128 {offsets = [2, 0, 0], sizes = [1, 8, 8], strides = [1, 1, 1]} : vector<4x8x8xf32> to vector<1x8x8xf32>
    %134 = vector.shape_cast %133 : vector<1x8x8xf32> to vector<8x8xf32>
    %135 = vector.extract_strided_slice %128 {offsets = [3, 0, 0], sizes = [1, 8, 8], strides = [1, 1, 1]} : vector<4x8x8xf32> to vector<1x8x8xf32>
    %136 = vector.shape_cast %135 : vector<1x8x8xf32> to vector<8x8xf32>
    %137 = tpu.concatenate %130, %132, %134, %136 in 1 : vector<8x8xf32>, vector<8x8xf32>, vector<8x8xf32>, vector<8x8xf32> -> vector<8x32xf32>
    %138 = arith.truncf %137 : vector<8x32xf32> to vector<8x32xbf16>
    %c0_51 = arith.constant 0 : index
    %c0_52 = arith.constant 0 : index
    %139 = vector.load %arg16[%c0_51, %c0_52] : memref<32x32xbf16, #tpu.memory_space<vmem>>, vector<32x32xbf16>
    %cst_53 = arith.constant dense<0.000000e+00> : vector<8x32xf32>
    %140 = tpu.matmul %138, %139, %cst_53 {dimension_numbers = #tpu.dot_dimension_numbers<[1], [0], [0], [1], [0, 0, 1, 1], [], []>} : vector<8x32xbf16>, vector<32x32xbf16>, vector<8x32xf32> -> vector<8x32xf32>
    %c0_54 = arith.constant 0 : index
    %c0_55 = arith.constant 0 : index
    %141 = vector.load %arg20[%c0_54, %c0_55] : memref<1x32xf32, #tpu.memory_space<vmem>>, vector<1x32xf32>
    %142 = vector.broadcast %141 : vector<1x32xf32> to vector<8x32xf32>
    %143 = arith.addf %140, %142 : vector<8x32xf32>
    %144 = arith.addf %143, %93 : vector<8x32xf32>
    %cst_56 = arith.constant dense<0.000000e+00> : vector<8xf32>
    %145 = vector.multi_reduction <add>, %144, %cst_56 [1] : vector<8x32xf32> to vector<8xf32>
    %146 = vector.shape_cast %145 : vector<8xf32> to vector<8x1xf32>
    %cst_57 = arith.constant 3.200000e+01 : f32
    %147 = vector.broadcast %cst_57 : f32 to vector<8x1xf32>
    %148 = arith.divf %146, %147 : vector<8x1xf32>
    %149 = vector.broadcast %148 : vector<8x1xf32> to vector<8x32xf32>
    %150 = arith.subf %144, %149 : vector<8x32xf32>
    %151 = arith.mulf %150, %150 : vector<8x32xf32>
    %cst_58 = arith.constant dense<0.000000e+00> : vector<8xf32>
    %152 = vector.multi_reduction <add>, %151, %cst_58 [1] : vector<8x32xf32> to vector<8xf32>
    %153 = vector.shape_cast %152 : vector<8xf32> to vector<8x1xf32>
    %cst_59 = arith.constant 3.200000e+01 : f32
    %154 = vector.broadcast %cst_59 : f32 to vector<8x1xf32>
    %155 = arith.divf %153, %154 : vector<8x1xf32>
    %156 = vector.broadcast %148 : vector<8x1xf32> to vector<8x32xf32>
    %157 = arith.subf %144, %156 : vector<8x32xf32>
    %cst_60 = arith.constant 9.99999974E-6 : f32
    %158 = vector.broadcast %cst_60 : f32 to vector<8x1xf32>
    %159 = arith.addf %155, %158 : vector<8x1xf32>
    %160 = math.rsqrt %159 : vector<8x1xf32>
    %161 = vector.broadcast %160 : vector<8x1xf32> to vector<8x32xf32>
    %162 = arith.mulf %157, %161 : vector<8x32xf32>
    %c0_61 = arith.constant 0 : index
    %c0_62 = arith.constant 0 : index
    %163 = vector.load %arg27[%c0_61, %c0_62] : memref<1x32xf32, #tpu.memory_space<vmem>>, vector<1x32xf32>
    %164 = vector.broadcast %163 : vector<1x32xf32> to vector<8x32xf32>
    %165 = arith.mulf %162, %164 : vector<8x32xf32>
    %c0_63 = arith.constant 0 : index
    %c0_64 = arith.constant 0 : index
    %166 = vector.load %arg28[%c0_63, %c0_64] : memref<1x32xf32, #tpu.memory_space<vmem>>, vector<1x32xf32>
    %167 = vector.broadcast %166 : vector<1x32xf32> to vector<8x32xf32>
    %168 = arith.addf %165, %167 : vector<8x32xf32>
    %169 = arith.truncf %168 : vector<8x32xf32> to vector<8x32xbf16>
    %c0_65 = arith.constant 0 : index
    %c0_66 = arith.constant 0 : index
    %170 = vector.load %arg21[%c0_65, %c0_66] : memref<32x64xbf16, #tpu.memory_space<vmem>>, vector<32x64xbf16>
    %cst_67 = arith.constant dense<0.000000e+00> : vector<8x64xf32>
    %171 = tpu.matmul %169, %170, %cst_67 {dimension_numbers = #tpu.dot_dimension_numbers<[1], [0], [0], [1], [0, 0, 1, 1], [], []>} : vector<8x32xbf16>, vector<32x64xbf16>, vector<8x64xf32> -> vector<8x64xf32>
    %c0_68 = arith.constant 0 : index
    %c0_69 = arith.constant 0 : index
    %172 = vector.load %arg22[%c0_68, %c0_69] : memref<1x64xf32, #tpu.memory_space<vmem>>, vector<1x64xf32>
    %173 = vector.broadcast %172 : vector<1x64xf32> to vector<8x64xf32>
    %174 = arith.addf %171, %173 : vector<8x64xf32>
    %cst_70 = arith.constant 0.000000e+00 : f32
    %175 = vector.broadcast %cst_70 : f32 to vector<8x64xf32>
    %176 = arith.maximumf %174, %175 : vector<8x64xf32>
    %177 = arith.truncf %176 : vector<8x64xf32> to vector<8x64xbf16>
    %c0_71 = arith.constant 0 : index
    %c0_72 = arith.constant 0 : index
    %178 = vector.load %arg23[%c0_71, %c0_72] : memref<64x32xbf16, #tpu.memory_space<vmem>>, vector<64x32xbf16>
    %cst_73 = arith.constant dense<0.000000e+00> : vector<8x32xf32>
    %179 = tpu.matmul %177, %178, %cst_73 {dimension_numbers = #tpu.dot_dimension_numbers<[1], [0], [0], [1], [0, 0, 1, 1], [], []>} : vector<8x64xbf16>, vector<64x32xbf16>, vector<8x32xf32> -> vector<8x32xf32>
    %c0_74 = arith.constant 0 : index
    %c0_75 = arith.constant 0 : index
    %180 = vector.load %arg24[%c0_74, %c0_75] : memref<1x32xf32, #tpu.memory_space<vmem>>, vector<1x32xf32>
    %181 = vector.broadcast %180 : vector<1x32xf32> to vector<8x32xf32>
    %182 = arith.addf %179, %181 : vector<8x32xf32>
    %183 = arith.addf %182, %168 : vector<8x32xf32>
    %cst_76 = arith.constant dense<0.000000e+00> : vector<8xf32>
    %184 = vector.multi_reduction <add>, %183, %cst_76 [1] : vector<8x32xf32> to vector<8xf32>
    %185 = vector.shape_cast %184 : vector<8xf32> to vector<8x1xf32>
    %cst_77 = arith.constant 3.200000e+01 : f32
    %186 = vector.broadcast %cst_77 : f32 to vector<8x1xf32>
    %187 = arith.divf %185, %186 : vector<8x1xf32>
    %188 = vector.broadcast %187 : vector<8x1xf32> to vector<8x32xf32>
    %189 = arith.subf %183, %188 : vector<8x32xf32>
    %190 = arith.mulf %189, %189 : vector<8x32xf32>
    %cst_78 = arith.constant dense<0.000000e+00> : vector<8xf32>
    %191 = vector.multi_reduction <add>, %190, %cst_78 [1] : vector<8x32xf32> to vector<8xf32>
    %192 = vector.shape_cast %191 : vector<8xf32> to vector<8x1xf32>
    %cst_79 = arith.constant 3.200000e+01 : f32
    %193 = vector.broadcast %cst_79 : f32 to vector<8x1xf32>
    %194 = arith.divf %192, %193 : vector<8x1xf32>
    %195 = vector.broadcast %187 : vector<8x1xf32> to vector<8x32xf32>
    %196 = arith.subf %183, %195 : vector<8x32xf32>
    %cst_80 = arith.constant 9.99999974E-6 : f32
    %197 = vector.broadcast %cst_80 : f32 to vector<8x1xf32>
    %198 = arith.addf %194, %197 : vector<8x1xf32>
    %199 = math.rsqrt %198 : vector<8x1xf32>
    %200 = vector.broadcast %199 : vector<8x1xf32> to vector<8x32xf32>
    %201 = arith.mulf %196, %200 : vector<8x32xf32>
    %c0_81 = arith.constant 0 : index
    %c0_82 = arith.constant 0 : index
    %202 = vector.load %arg29[%c0_81, %c0_82] : memref<1x32xf32, #tpu.memory_space<vmem>>, vector<1x32xf32>
    %203 = vector.broadcast %202 : vector<1x32xf32> to vector<8x32xf32>
    %204 = arith.mulf %201, %203 : vector<8x32xf32>
    %c0_83 = arith.constant 0 : index
    %c0_84 = arith.constant 0 : index
    %205 = vector.load %arg30[%c0_83, %c0_84] : memref<1x32xf32, #tpu.memory_space<vmem>>, vector<1x32xf32>
    %206 = vector.broadcast %205 : vector<1x32xf32> to vector<8x32xf32>
    %207 = arith.addf %204, %206 : vector<8x32xf32>
    %c0_85 = arith.constant 0 : index
    %c0_86 = arith.constant 0 : index
    %c0_87 = arith.constant 0 : index
    %208 = vector.load %arg31[%c0_85, %c0_86, %c0_87] : memref<1x8x32xf32, #tpu.memory_space<vmem>>, vector<1x8x32xf32>
    %209 = vector.shape_cast %208 : vector<1x8x32xf32> to vector<8x32xf32>
    %210 = vector.shape_cast %207 : vector<8x32xf32> to vector<1x8x32xf32>
    tpu.vector_store %arg31[%c0_85, %c0_86, %c0_87], %210 {strides = array<i32>} : memref<1x8x32xf32, #tpu.memory_space<vmem>>, vector<1x8x32xf32>,
    return
  }
  func.func @transform_0(%arg0: i32, %arg1: i32) -> (i32, i32, i32) {
    %c0_i32 = arith.constant 0 : i32
    %c0_i32_0 = arith.constant 0 : i32
    %c0_i32_1 = arith.constant 0 : i32
    return %arg0, %c0_i32, %c0_i32_0 : i32, i32, i32
  }
  func.func @transform_1(%arg0: i32, %arg1: i32) -> (i32, i32, i32) {
    %c0_i32 = arith.constant 0 : i32
    %c0_i32_0 = arith.constant 0 : i32
    %c0_i32_1 = arith.constant 0 : i32
    return %arg0, %c0_i32, %c0_i32_0 : i32, i32, i32
  }
  func.func @transform_2(%arg0: i32, %arg1: i32) -> (i32, i32, i32) {
    %c0_i32 = arith.constant 0 : i32
    %c0_i32_0 = arith.constant 0 : i32
    %c0_i32_1 = arith.constant 0 : i32
    return %arg0, %c0_i32, %c0_i32_0 : i32, i32, i32
  }
  func.func @transform_3(%arg0: i32, %arg1: i32) -> (i32, i32) {
    %c0_i32 = arith.constant 0 : i32
    %c0_i32_0 = arith.constant 0 : i32
    %c0_i32_1 = arith.constant 0 : i32
    return %c0_i32, %c0_i32_0 : i32, i32
  }
  func.func @transform_4(%arg0: i32, %arg1: i32) -> (i32, i32) {
    %c0_i32 = arith.constant 0 : i32
    %c0_i32_0 = arith.constant 0 : i32
    %c0_i32_1 = arith.constant 0 : i32
    return %c0_i32, %c0_i32_0 : i32, i32
  }
  func.func @transform_5(%arg0: i32, %arg1: i32) -> (i32, i32) {
    %c0_i32 = arith.constant 0 : i32
    %c0_i32_0 = arith.constant 0 : i32
    %c0_i32_1 = arith.constant 0 : i32
    return %c0_i32, %c0_i32_0 : i32, i32
  }
  func.func @transform_6(%arg0: i32, %arg1: i32) -> (i32, i32) {
    %c0_i32 = arith.constant 0 : i32
    %c0_i32_0 = arith.constant 0 : i32
    %c0_i32_1 = arith.constant 0 : i32
    return %c0_i32, %c0_i32_0 : i32, i32
  }
  func.func @transform_7(%arg0: i32, %arg1: i32) -> (i32, i32) {
    %c0_i32 = arith.constant 0 : i32
    %c0_i32_0 = arith.constant 0 : i32
    %c0_i32_1 = arith.constant 0 : i32
    return %c0_i32, %c0_i32_0 : i32, i32
  }
  func.func @transform_8(%arg0: i32, %arg1: i32) -> (i32, i32) {
    %c0_i32 = arith.constant 0 : i32
    %c0_i32_0 = arith.constant 0 : i32
    %c0_i32_1 = arith.constant 0 : i32
    return %c0_i32, %c0_i32_0 : i32, i32
  }
  func.func @transform_9(%arg0: i32, %arg1: i32) -> (i32, i32) {
    %c0_i32 = arith.constant 0 : i32
    %c0_i32_0 = arith.constant 0 : i32
    %c0_i32_1 = arith.constant 0 : i32
    return %c0_i32, %c0_i32_0 : i32, i32
  }
  func.func @transform_10(%arg0: i32, %arg1: i32) -> (i32, i32) {
    %c0_i32 = arith.constant 0 : i32
    %c0_i32_0 = arith.constant 0 : i32
    %c0_i32_1 = arith.constant 0 : i32
    return %c0_i32, %c0_i32_0 : i32, i32
  }
  func.func @transform_11(%arg0: i32, %arg1: i32) -> (i32, i32) {
    %c0_i32 = arith.constant 0 : i32
    %c0_i32_0 = arith.constant 0 : i32
    %c0_i32_1 = arith.constant 0 : i32
    return %c0_i32, %c0_i32_0 : i32, i32
  }
  func.func @transform_12(%arg0: i32, %arg1: i32) -> (i32, i32) {
    %c0_i32 = arith.constant 0 : i32
    %c0_i32_0 = arith.constant 0 : i32
    %c0_i32_1 = arith.constant 0 : i32
    return %c0_i32, %c0_i32_0 : i32, i32
  }
  func.func @transform_13(%arg0: i32, %arg1: i32) -> (i32, i32) {
    %c0_i32 = arith.constant 0 : i32
    %c0_i32_0 = arith.constant 0 : i32
    %c0_i32_1 = arith.constant 0 : i32
    return %c0_i32, %c0_i32_0 : i32, i32
  }
  func.func @transform_14(%arg0: i32, %arg1: i32) -> (i32, i32) {
    %c0_i32 = arith.constant 0 : i32
    %c0_i32_0 = arith.constant 0 : i32
    %c0_i32_1 = arith.constant 0 : i32
    return %c0_i32, %c0_i32_0 : i32, i32
  }
  func.func @transform_15(%arg0: i32, %arg1: i32) -> (i32, i32) {
    %c0_i32 = arith.constant 0 : i32
    %c0_i32_0 = arith.constant 0 : i32
    %c0_i32_1 = arith.constant 0 : i32
    return %c0_i32, %c0_i32_0 : i32, i32
  }
  func.func @transform_16(%arg0: i32, %arg1: i32) -> (i32, i32) {
    %c0_i32 = arith.constant 0 : i32
    %c0_i32_0 = arith.constant 0 : i32
    %c0_i32_1 = arith.constant 0 : i32
    return %c0_i32, %c0_i32_0 : i32, i32
  }
  func.func @transform_17(%arg0: i32, %arg1: i32) -> (i32, i32) {
    %c0_i32 = arith.constant 0 : i32
    %c0_i32_0 = arith.constant 0 : i32
    %c0_i32_1 = arith.constant 0 : i32
    return %c0_i32, %c0_i32_0 : i32, i32
  }
  func.func @transform_18(%arg0: i32, %arg1: i32) -> (i32, i32) {
    %c0_i32 = arith.constant 0 : i32
    %c0_i32_0 = arith.constant 0 : i32
    %c0_i32_1 = arith.constant 0 : i32
    return %c0_i32, %c0_i32_0 : i32, i32
  }
  func.func @transform_19(%arg0: i32, %arg1: i32) -> (i32, i32) {
    %c0_i32 = arith.constant 0 : i32
    %c0_i32_0 = arith.constant 0 : i32
    %c0_i32_1 = arith.constant 0 : i32
    return %c0_i32, %c0_i32_0 : i32, i32
  }
  func.func @transform_20(%arg0: i32, %arg1: i32) -> (i32, i32) {
    %c0_i32 = arith.constant 0 : i32
    %c0_i32_0 = arith.constant 0 : i32
    %c0_i32_1 = arith.constant 0 : i32
    return %c0_i32, %c0_i32_0 : i32, i32
  }
  func.func @transform_21(%arg0: i32, %arg1: i32) -> (i32, i32) {
    %c0_i32 = arith.constant 0 : i32
    %c0_i32_0 = arith.constant 0 : i32
    %c0_i32_1 = arith.constant 0 : i32
    return %c0_i32, %c0_i32_0 : i32, i32
  }
  func.func @transform_22(%arg0: i32, %arg1: i32) -> (i32, i32) {
    %c0_i32 = arith.constant 0 : i32
    %c0_i32_0 = arith.constant 0 : i32
    %c0_i32_1 = arith.constant 0 : i32
    return %c0_i32, %c0_i32_0 : i32, i32
  }
  func.func @transform_23(%arg0: i32, %arg1: i32) -> (i32, i32) {
    %c0_i32 = arith.constant 0 : i32
    %c0_i32_0 = arith.constant 0 : i32
    %c0_i32_1 = arith.constant 0 : i32
    return %c0_i32, %c0_i32_0 : i32, i32
  }
  func.func @transform_24(%arg0: i32, %arg1: i32) -> (i32, i32) {
    %c0_i32 = arith.constant 0 : i32
    %c0_i32_0 = arith.constant 0 : i32
    %c0_i32_1 = arith.constant 0 : i32
    return %c0_i32, %c0_i32_0 : i32, i32
  }
  func.func @transform_25(%arg0: i32, %arg1: i32) -> (i32, i32) {
    %c0_i32 = arith.constant 0 : i32
    %c0_i32_0 = arith.constant 0 : i32
    %c0_i32_1 = arith.constant 0 : i32
    return %c0_i32, %c0_i32_0 : i32, i32
  }
  func.func @transform_26(%arg0: i32, %arg1: i32) -> (i32, i32) {
    %c0_i32 = arith.constant 0 : i32
    %c0_i32_0 = arith.constant 0 : i32
    %c0_i32_1 = arith.constant 0 : i32
    return %c0_i32, %c0_i32_0 : i32, i32
  }
  func.func @transform_27(%arg0: i32, %arg1: i32) -> (i32, i32) {
    %c0_i32 = arith.constant 0 : i32
    %c0_i32_0 = arith.constant 0 : i32
    %c0_i32_1 = arith.constant 0 : i32
    return %c0_i32, %c0_i32_0 : i32, i32
  }
  func.func @transform_28(%arg0: i32, %arg1: i32) -> (i32, i32) {
    %c0_i32 = arith.constant 0 : i32
    %c0_i32_0 = arith.constant 0 : i32
    %c0_i32_1 = arith.constant 0 : i32
    return %c0_i32, %c0_i32_0 : i32, i32
  }
  func.func @transform_29(%arg0: i32, %arg1: i32) -> (i32, i32, i32) {
    %c0_i32 = arith.constant 0 : i32
    %c0_i32_0 = arith.constant 0 : i32
    return %arg0, %arg1, %c0_i32 : i32, i32, i32
  }
}

module attributes {stable_mosaic.version = 11 : i64} {
  func.func @kernel(%arg0: i32, %arg1: i32, %arg2: memref<1x8x32xf32, #tpu.memory_space<vmem>>, %arg3: memref<1x8x32xf32, #tpu.memory_space<vmem>>, %arg4: memref<1x1x8xf32, #tpu.memory_space<vmem>>, %arg5: memref<32x32xbf16, #tpu.memory_space<vmem>>, %arg6: memref<32x32xbf16, #tpu.memory_space<vmem>>, %arg7: memref<32x32xbf16, #tpu.memory_space<vmem>>, %arg8: memref<32x32xbf16, #tpu.memory_space<vmem>>, %arg9: memref<1x32xf32, #tpu.memory_space<vmem>>, %arg10: memref<1x32xf32, #tpu.memory_space<vmem>>, %arg11: memref<1x32xf32, #tpu.memory_space<vmem>>, %arg12: memref<1x32xf32, #tpu.memory_space<vmem>>, %arg13: memref<32x32xbf16, #tpu.memory_space<vmem>>, %arg14: memref<32x32xbf16, #tpu.memory_space<vmem>>, %arg15: memref<32x32xbf16, #tpu.memory_space<vmem>>, %arg16: memref<32x32xbf16, #tpu.memory_space<vmem>>, %arg17: memref<1x32xf32, #tpu.memory_space<vmem>>, %arg18: memref<1x32xf32, #tpu.memory_space<vmem>>, %arg19: memref<1x32xf32, #tpu.memory_space<vmem>>, %arg20: memref<1x32xf32, #tpu.memory_space<vmem>>, %arg21: memref<32x64xbf16, #tpu.memory_space<vmem>>, %arg22: memref<1x64xf32, #tpu.memory_space<vmem>>, %arg23: memref<64x32xbf16, #tpu.memory_space<vmem>>, %arg24: memref<1x32xf32, #tpu.memory_space<vmem>>, %arg25: memref<1x32xf32, #tpu.memory_space<vmem>>, %arg26: memref<1x32xf32, #tpu.memory_space<vmem>>, %arg27: memref<1x32xf32, #tpu.memory_space<vmem>>, %arg28: memref<1x32xf32, #tpu.memory_space<vmem>>, %arg29: memref<1x32xf32, #tpu.memory_space<vmem>>, %arg30: memref<1x32xf32, #tpu.memory_space<vmem>>, %arg31: memref<1x8x32xf32, #tpu.memory_space<vmem>>, %arg32: memref<4x8x8xbf16, #tpu.memory_space<vmem>>, %arg33: memref<4x8x8xbf16, #tpu.memory_space<vmem>>, %arg34: memref<4x8x8xbf16, #tpu.memory_space<vmem>>, %arg35: memref<4x8x8xbf16, #tpu.memory_space<vmem>>) attributes {dimension_semantics = [#tpu.dimension_semantics<parallel>, #tpu.dimension_semantics<arbitrary>], iteration_bounds = array<i64: 2, 1>, scalar_prefetch = 0 : i64, scratch_operands = 4 : i64, tpu.core_type = #tpu.core_type<tc>, window_params = [{transform_indices = @transform_0, window_bounds = array<i64: 1, 8, 32>}, {transform_indices = @transform_1, window_bounds = array<i64: 1, 8, 32>}, {transform_indices = @transform_2, window_bounds = array<i64: 1, 1, 8>}, {pipeline_mode = #tpu.pipeline_mode<synchronous>, transform_indices = @transform_3, window_bounds = array<i64: 32, 32>}, {pipeline_mode = #tpu.pipeline_mode<synchronous>, transform_indices = @transform_4, window_bounds = array<i64: 32, 32>}, {pipeline_mode = #tpu.pipeline_mode<synchronous>, transform_indices = @transform_5, window_bounds = array<i64: 32, 32>}, {pipeline_mode = #tpu.pipeline_mode<synchronous>, transform_indices = @transform_6, window_bounds = array<i64: 32, 32>}, {pipeline_mode = #tpu.pipeline_mode<synchronous>, transform_indices = @transform_7, window_bounds = array<i64: 1, 32>}, {pipeline_mode = #tpu.pipeline_mode<synchronous>, transform_indices = @transform_8, window_bounds = array<i64: 1, 32>}, {pipeline_mode = #tpu.pipeline_mode<synchronous>, transform_indices = @transform_9, window_bounds = array<i64: 1, 32>}, {pipeline_mode = #tpu.pipeline_mode<synchronous>, transform_indices = @transform_10, window_bounds = array<i64: 1, 32>}, {pipeline_mode = #tpu.pipeline_mode<synchronous>, transform_indices = @transform_11, window_bounds = array<i64: 32, 32>}, {pipeline_mode = #tpu.pipeline_mode<synchronous>, transform_indices = @transform_12, window_bounds = array<i64: 32, 32>}, {pipeline_mode = #tpu.pipeline_mode<synchronous>, transform_indices = @transform_13, window_bounds = array<i64: 32, 32>}, {pipeline_mode = #tpu.pipeline_mode<synchronous>, transform_indices = @transform_14, window_bounds = array<i64: 32, 32>}, {pipeline_mode = #tpu.pipeline_mode<synchronous>, transform_indices = @transform_15, window_bounds = array<i64: 1, 32>}, {pipeline_mode = #tpu.pipeline_mode<synchronous>, transform_indices = @transform_16, window_bounds = array<i64: 1, 32>}, {pipeline_mode = #tpu.pipeline_mode<synchronous>, transform_indices = @transform_17, window_bounds = array<i64: 1, 32>}, {pipeline_mode = #tpu.pipeline_mode<synchronous>, transform_indices = @transform_18, window_bounds = array<i64: 1, 32>}, {pipeline_mode = #tpu.pipeline_mode<synchronous>, transform_indices = @transform_19, window_bounds = array<i64: 32, 64>}, {pipeline_mode = #tpu.pipeline_mode<synchronous>, transform_indices = @transform_20, window_bounds = array<i64: 1, 64>}, {pipeline_mode = #tpu.pipeline_mode<synchronous>, transform_indices = @transform_21, window_bounds = array<i64: 64, 32>}, {pipeline_mode = #tpu.pipeline_mode<synchronous>, transform_indices = @transform_22, window_bounds = array<i64: 1, 32>}, {pipeline_mode = #tpu.pipeline_mode<synchronous>, transform_indices = @transform_23, window_bounds = array<i64: 1, 32>}, {pipeline_mode = #tpu.pipeline_mode<synchronous>, transform_indices = @transform_24, window_bounds = array<i64: 1, 32>}, {pipeline_mode = #tpu.pipeline_mode<synchronous>, transform_indices = @transform_25, window_bounds = array<i64: 1, 32>}, {pipeline_mode = #tpu.pipeline_mode<synchronous>, transform_indices = @transform_26, window_bounds = array<i64: 1, 32>}, {pipeline_mode = #tpu.pipeline_mode<synchronous>, transform_indices = @transform_27, window_bounds = array<i64: 1, 32>}, {pipeline_mode = #tpu.pipeline_mode<synchronous>, transform_indices = @transform_28, window_bounds = array<i64: 1, 32>}, {transform_indices = @transform_29, window_bounds = array<i64: 1, 8, 32>}]} {
    %c0_i32 = arith.constant 0 : i32
    %0 = arith.cmpi eq, %arg1, %c0_i32 : i32
    %1 = arith.extui %0 : i1 to i32
    %c0_i32_0 = arith.constant 0 : i32
    %2 = arith.cmpi ne, %1, %c0_i32_0 : i32
    scf.if %2 {
      %c0_88 = arith.constant 0 : index
      %c0_89 = arith.constant 0 : index
      %c0_90 = arith.constant 0 : index
      %211 = vector.load %arg2[%c0_88, %c0_89, %c0_90] : memref<1x8x32xf32, #tpu.memory_space<vmem>>, vector<1x8x32xf32>
      %212 = vector.shape_cast %211 : vector<1x8x32xf32> to vector<8x32xf32>
      %213 = arith.truncf %212 : vector<8x32xf32> to vector<8x32xbf16>
      %c0_91 = arith.constant 0 : index
      %c0_92 = arith.constant 0 : index
      %c0_93 = arith.constant 0 : index
      %214 = vector.load %arg3[%c0_91, %c0_92, %c0_93] : memref<1x8x32xf32, #tpu.memory_space<vmem>>, vector<1x8x32xf32>
      %215 = vector.shape_cast %214 : vector<1x8x32xf32> to vector<8x32xf32>
      %216 = arith.truncf %215 : vector<8x32xf32> to vector<8x32xbf16>
      %c0_94 = arith.constant 0 : index
      %c0_95 = arith.constant 0 : index
      %217 = vector.load %arg6[%c0_94, %c0_95] : memref<32x32xbf16, #tpu.memory_space<vmem>>, vector<32x32xbf16>
      %cst_96 = arith.constant dense<0.000000e+00> : vector<8x32xf32>
      %218 = tpu.matmul %213, %217, %cst_96 {dimension_numbers = #tpu.dot_dimension_numbers<[1], [0], [0], [1], [0, 0, 1, 1], [], []>} : vector<8x32xbf16>, vector<32x32xbf16>, vector<8x32xf32> -> vector<8x32xf32>
      %c0_97 = arith.constant 0 : index
      %c0_98 = arith.constant 0 : index
      %219 = vector.load %arg10[%c0_97, %c0_98] : memref<1x32xf32, #tpu.memory_space<vmem>>, vector<1x32xf32>
      %220 = vector.broadcast %219 : vector<1x32xf32> to vector<8x32xf32>
      %221 = arith.addf %218, %220 : vector<8x32xf32>
      %c0_99 = arith.constant 0 : index
      %c0_100 = arith.constant 0 : index
      %222 = vector.load %arg7[%c0_99, %c0_100] : memref<32x32xbf16, #tpu.memory_space<vmem>>, vector<32x32xbf16>
      %cst_101 = arith.constant dense<0.000000e+00> : vector<8x32xf32>
      %223 = tpu.matmul %213, %222, %cst_101 {dimension_numbers = #tpu.dot_dimension_numbers<[1], [0], [0], [1], [0, 0, 1, 1], [], []>} : vector<8x32xbf16>, vector<32x32xbf16>, vector<8x32xf32> -> vector<8x32xf32>
      %c0_102 = arith.constant 0 : index
      %c0_103 = arith.constant 0 : index
      %224 = vector.load %arg11[%c0_102, %c0_103] : memref<1x32xf32, #tpu.memory_space<vmem>>, vector<1x32xf32>
      %225 = vector.broadcast %224 : vector<1x32xf32> to vector<8x32xf32>
      %226 = arith.addf %223, %225 : vector<8x32xf32>
      %c0_104 = arith.constant 0 : index
      %c0_105 = arith.constant 0 : index
      %227 = vector.load %arg14[%c0_104, %c0_105] : memref<32x32xbf16, #tpu.memory_space<vmem>>, vector<32x32xbf16>
      %cst_106 = arith.constant dense<0.000000e+00> : vector<8x32xf32>
      %228 = tpu.matmul %216, %227, %cst_106 {dimension_numbers = #tpu.dot_dimension_numbers<[1], [0], [0], [1], [0, 0, 1, 1], [], []>} : vector<8x32xbf16>, vector<32x32xbf16>, vector<8x32xf32> -> vector<8x32xf32>
      %c0_107 = arith.constant 0 : index
      %c0_108 = arith.constant 0 : index
      %229 = vector.load %arg18[%c0_107, %c0_108] : memref<1x32xf32, #tpu.memory_space<vmem>>, vector<1x32xf32>
      %230 = vector.broadcast %229 : vector<1x32xf32> to vector<8x32xf32>
      %231 = arith.addf %228, %230 : vector<8x32xf32>
      %c0_109 = arith.constant 0 : index
      %c0_110 = arith.constant 0 : index
      %232 = vector.load %arg15[%c0_109, %c0_110] : memref<32x32xbf16, #tpu.memory_space<vmem>>, vector<32x32xbf16>
      %cst_111 = arith.constant dense<0.000000e+00> : vector<8x32xf32>
      %233 = tpu.matmul %216, %232, %cst_111 {dimension_numbers = #tpu.dot_dimension_numbers<[1], [0], [0], [1], [0, 0, 1, 1], [], []>} : vector<8x32xbf16>, vector<32x32xbf16>, vector<8x32xf32> -> vector<8x32xf32>
      %c0_112 = arith.constant 0 : index
      %c0_113 = arith.constant 0 : index
      %234 = vector.load %arg19[%c0_112, %c0_113] : memref<1x32xf32, #tpu.memory_space<vmem>>, vector<1x32xf32>
      %235 = vector.broadcast %234 : vector<1x32xf32> to vector<8x32xf32>
      %236 = arith.addf %233, %235 : vector<8x32xf32>
      %237 = arith.truncf %221 : vector<8x32xf32> to vector<8x32xbf16>
      %238 = vector.extract_strided_slice %237 {offsets = [0, 0], sizes = [8, 8], strides = [1, 1]} : vector<8x32xbf16> to vector<8x8xbf16>
      %239 = vector.extract_strided_slice %237 {offsets = [0, 8], sizes = [8, 8], strides = [1, 1]} : vector<8x32xbf16> to vector<8x8xbf16>
      %240 = vector.extract_strided_slice %237 {offsets = [0, 16], sizes = [8, 8], strides = [1, 1]} : vector<8x32xbf16> to vector<8x8xbf16>
      %241 = vector.extract_strided_slice %237 {offsets = [0, 24], sizes = [8, 8], strides = [1, 1]} : vector<8x32xbf16> to vector<8x8xbf16>
      %242 = vector.shape_cast %238 : vector<8x8xbf16> to vector<1x8x8xbf16>
      %243 = vector.shape_cast %239 : vector<8x8xbf16> to vector<1x8x8xbf16>
      %244 = vector.shape_cast %240 : vector<8x8xbf16> to vector<1x8x8xbf16>
      %245 = vector.shape_cast %241 : vector<8x8xbf16> to vector<1x8x8xbf16>
      %246 = tpu.concatenate %242, %243, %244, %245 in 0 : vector<1x8x8xbf16>, vector<1x8x8xbf16>, vector<1x8x8xbf16>, vector<1x8x8xbf16> -> vector<4x8x8xbf16>
      %c0_114 = arith.constant 0 : index
      %c0_115 = arith.constant 0 : index
      %c0_116 = arith.constant 0 : index
      %247 = vector.load %arg32[%c0_114, %c0_115, %c0_116] : memref<4x8x8xbf16, #tpu.memory_space<vmem>>, vector<4x8x8xbf16>
      tpu.vector_store %arg32[%c0_114, %c0_115, %c0_116], %246 {strides = array<i32>} : memref<4x8x8xbf16, #tpu.memory_space<vmem>>, vector<4x8x8xbf16>,
      %248 = arith.truncf %226 : vector<8x32xf32> to vector<8x32xbf16>
      %249 = vector.extract_strided_slice %248 {offsets = [0, 0], sizes = [8, 8], strides = [1, 1]} : vector<8x32xbf16> to vector<8x8xbf16>
      %250 = vector.extract_strided_slice %248 {offsets = [0, 8], sizes = [8, 8], strides = [1, 1]} : vector<8x32xbf16> to vector<8x8xbf16>
      %251 = vector.extract_strided_slice %248 {offsets = [0, 16], sizes = [8, 8], strides = [1, 1]} : vector<8x32xbf16> to vector<8x8xbf16>
      %252 = vector.extract_strided_slice %248 {offsets = [0, 24], sizes = [8, 8], strides = [1, 1]} : vector<8x32xbf16> to vector<8x8xbf16>
      %253 = vector.shape_cast %249 : vector<8x8xbf16> to vector<1x8x8xbf16>
      %254 = vector.shape_cast %250 : vector<8x8xbf16> to vector<1x8x8xbf16>
      %255 = vector.shape_cast %251 : vector<8x8xbf16> to vector<1x8x8xbf16>
      %256 = vector.shape_cast %252 : vector<8x8xbf16> to vector<1x8x8xbf16>
      %257 = tpu.concatenate %253, %254, %255, %256 in 0 : vector<1x8x8xbf16>, vector<1x8x8xbf16>, vector<1x8x8xbf16>, vector<1x8x8xbf16> -> vector<4x8x8xbf16>
      %c0_117 = arith.constant 0 : index
      %c0_118 = arith.constant 0 : index
      %c0_119 = arith.constant 0 : index
      %258 = vector.load %arg33[%c0_117, %c0_118, %c0_119] : memref<4x8x8xbf16, #tpu.memory_space<vmem>>, vector<4x8x8xbf16>
      tpu.vector_store %arg33[%c0_117, %c0_118, %c0_119], %257 {strides = array<i32>} : memref<4x8x8xbf16, #tpu.memory_space<vmem>>, vector<4x8x8xbf16>,
      %259 = arith.truncf %231 : vector<8x32xf32> to vector<8x32xbf16>
      %260 = vector.extract_strided_slice %259 {offsets = [0, 0], sizes = [8, 8], strides = [1, 1]} : vector<8x32xbf16> to vector<8x8xbf16>
      %261 = vector.extract_strided_slice %259 {offsets = [0, 8], sizes = [8, 8], strides = [1, 1]} : vector<8x32xbf16> to vector<8x8xbf16>
      %262 = vector.extract_strided_slice %259 {offsets = [0, 16], sizes = [8, 8], strides = [1, 1]} : vector<8x32xbf16> to vector<8x8xbf16>
      %263 = vector.extract_strided_slice %259 {offsets = [0, 24], sizes = [8, 8], strides = [1, 1]} : vector<8x32xbf16> to vector<8x8xbf16>
      %264 = vector.shape_cast %260 : vector<8x8xbf16> to vector<1x8x8xbf16>
      %265 = vector.shape_cast %261 : vector<8x8xbf16> to vector<1x8x8xbf16>
      %266 = vector.shape_cast %262 : vector<8x8xbf16> to vector<1x8x8xbf16>
      %267 = vector.shape_cast %263 : vector<8x8xbf16> to vector<1x8x8xbf16>
      %268 = tpu.concatenate %264, %265, %266, %267 in 0 : vector<1x8x8xbf16>, vector<1x8x8xbf16>, vector<1x8x8xbf16>, vector<1x8x8xbf16> -> vector<4x8x8xbf16>
      %c0_120 = arith.constant 0 : index
      %c0_121 = arith.constant 0 : index
      %c0_122 = arith.constant 0 : index
      %269 = vector.load %arg34[%c0_120, %c0_121, %c0_122] : memref<4x8x8xbf16, #tpu.memory_space<vmem>>, vector<4x8x8xbf16>
      tpu.vector_store %arg34[%c0_120, %c0_121, %c0_122], %268 {strides = array<i32>} : memref<4x8x8xbf16, #tpu.memory_space<vmem>>, vector<4x8x8xbf16>,
      %270 = arith.truncf %236 : vector<8x32xf32> to vector<8x32xbf16>
      %271 = vector.extract_strided_slice %270 {offsets = [0, 0], sizes = [8, 8], strides = [1, 1]} : vector<8x32xbf16> to vector<8x8xbf16>
      %272 = vector.extract_strided_slice %270 {offsets = [0, 8], sizes = [8, 8], strides = [1, 1]} : vector<8x32xbf16> to vector<8x8xbf16>
      %273 = vector.extract_strided_slice %270 {offsets = [0, 16], sizes = [8, 8], strides = [1, 1]} : vector<8x32xbf16> to vector<8x8xbf16>
      %274 = vector.extract_strided_slice %270 {offsets = [0, 24], sizes = [8, 8], strides = [1, 1]} : vector<8x32xbf16> to vector<8x8xbf16>
      %275 = vector.shape_cast %271 : vector<8x8xbf16> to vector<1x8x8xbf16>
      %276 = vector.shape_cast %272 : vector<8x8xbf16> to vector<1x8x8xbf16>
      %277 = vector.shape_cast %273 : vector<8x8xbf16> to vector<1x8x8xbf16>
      %278 = vector.shape_cast %274 : vector<8x8xbf16> to vector<1x8x8xbf16>
      %279 = tpu.concatenate %275, %276, %277, %278 in 0 : vector<1x8x8xbf16>, vector<1x8x8xbf16>, vector<1x8x8xbf16>, vector<1x8x8xbf16> -> vector<4x8x8xbf16>
      %c0_123 = arith.constant 0 : index
      %c0_124 = arith.constant 0 : index
      %c0_125 = arith.constant 0 : index
      %280 = vector.load %arg35[%c0_123, %c0_124, %c0_125] : memref<4x8x8xbf16, #tpu.memory_space<vmem>>, vector<4x8x8xbf16>
      tpu.vector_store %arg35[%c0_123, %c0_124, %c0_125], %279 {strides = array<i32>} : memref<4x8x8xbf16, #tpu.memory_space<vmem>>, vector<4x8x8xbf16>,
    } else {
    }
    %c8_i32 = arith.constant 8 : i32
    %3 = arith.muli %arg1, %c8_i32 : i32
    %4 = tpu.assume_multiple %3, 8 : i32
    %c0 = arith.constant 0 : index
    %5 = arith.index_cast %4 : i32 to index
    %c0_1 = arith.constant 0 : index
    %6 = vector.load %arg2[%c0, %5, %c0_1] : memref<1x8x32xf32, #tpu.memory_space<vmem>>, vector<1x8x32xf32>
    %7 = vector.shape_cast %6 : vector<1x8x32xf32> to vector<8x32xf32>
    %8 = tpu.iota {dimensions = array<i32: 0>} : vector<8x1xi32>
    %9 = vector.broadcast %4 : i32 to vector<8x1xi32>
    %10 = arith.addi %9, %8 : vector<8x1xi32>
    %11 = tpu.iota {dimensions = array<i32: 1>} : vector<1x8xi32>
    %12 = vector.broadcast %10 : vector<8x1xi32> to vector<8x8xi32>
    %13 = vector.broadcast %11 : vector<1x8xi32> to vector<8x8xi32>
    %14 = arith.cmpi sge, %12, %13 : vector<8x8xi32>
    %c0_2 = arith.constant 0 : index
    %c0_3 = arith.constant 0 : index
    %c0_4 = arith.constant 0 : index
    %15 = vector.load %arg4[%c0_2, %c0_3, %c0_4] : memref<1x1x8xf32, #tpu.memory_space<vmem>>, vector<1x1x8xf32>
    %16 = vector.shape_cast %15 : vector<1x1x8xf32> to vector<1x8xf32>
    %cst = arith.constant 0.000000e+00 : f32
    %17 = vector.broadcast %cst : f32 to vector<1x8xf32>
    %18 = arith.cmpf ogt, %16, %17 : vector<1x8xf32>
    %19 = arith.truncf %7 : vector<8x32xf32> to vector<8x32xbf16>
    %c0_5 = arith.constant 0 : index
    %c0_6 = arith.constant 0 : index
    %20 = vector.load %arg5[%c0_5, %c0_6] : memref<32x32xbf16, #tpu.memory_space<vmem>>, vector<32x32xbf16>
    %cst_7 = arith.constant dense<0.000000e+00> : vector<8x32xf32>
    %21 = tpu.matmul %19, %20, %cst_7 {dimension_numbers = #tpu.dot_dimension_numbers<[1], [0], [0], [1], [0, 0, 1, 1], [], []>} : vector<8x32xbf16>, vector<32x32xbf16>, vector<8x32xf32> -> vector<8x32xf32>
    %c0_8 = arith.constant 0 : index
    %c0_9 = arith.constant 0 : index
    %22 = vector.load %arg9[%c0_8, %c0_9] : memref<1x32xf32, #tpu.memory_space<vmem>>, vector<1x32xf32>
    %23 = vector.broadcast %22 : vector<1x32xf32> to vector<8x32xf32>
    %24 = arith.addf %21, %23 : vector<8x32xf32>
    %25 = arith.truncf %24 : vector<8x32xf32> to vector<8x32xbf16>
    %26 = vector.extract_strided_slice %25 {offsets = [0, 0], sizes = [8, 8], strides = [1, 1]} : vector<8x32xbf16> to vector<8x8xbf16>
    %27 = vector.extract_strided_slice %25 {offsets = [0, 8], sizes = [8, 8], strides = [1, 1]} : vector<8x32xbf16> to vector<8x8xbf16>
    %28 = vector.extract_strided_slice %25 {offsets = [0, 16], sizes = [8, 8], strides = [1, 1]} : vector<8x32xbf16> to vector<8x8xbf16>
    %29 = vector.extract_strided_slice %25 {offsets = [0, 24], sizes = [8, 8], strides = [1, 1]} : vector<8x32xbf16> to vector<8x8xbf16>
    %30 = vector.shape_cast %26 : vector<8x8xbf16> to vector<1x8x8xbf16>
    %31 = vector.shape_cast %27 : vector<8x8xbf16> to vector<1x8x8xbf16>
    %32 = vector.shape_cast %28 : vector<8x8xbf16> to vector<1x8x8xbf16>
    %33 = vector.shape_cast %29 : vector<8x8xbf16> to vector<1x8x8xbf16>
    %34 = tpu.concatenate %30, %31, %32, %33 in 0 : vector<1x8x8xbf16>, vector<1x8x8xbf16>, vector<1x8x8xbf16>, vector<1x8x8xbf16> -> vector<4x8x8xbf16>
    %c0_10 = arith.constant 0 : index
    %c0_11 = arith.constant 0 : index
    %c0_12 = arith.constant 0 : index
    %35 = vector.load %arg32[%c0_10, %c0_11, %c0_12] : memref<4x8x8xbf16, #tpu.memory_space<vmem>>, vector<4x8x8xbf16>
    "tpu.trace_start"() <{level = 10 : i32, message = "hqe,hke->hqk"}> : () -> ()
    %cst_13 = arith.constant dense<0.000000e+00> : vector<4x8x8xf32>
    %36 = tpu.matmul %34, %35, %cst_13 {dimension_numbers = #tpu.dot_dimension_numbers<[2], [2], [1], [1], [0, 0, 0, 1, 1, 1], [0], [0]>} : vector<4x8x8xbf16>, vector<4x8x8xbf16>, vector<4x8x8xf32> -> vector<4x8x8xf32>
    %cst_14 = arith.constant -1.000000e+09 : f32
    "tpu.trace_stop"() : () -> ()
    %37 = vector.shape_cast %14 : vector<8x8xi1> to vector<1x8x8xi1>
    %38 = vector.broadcast %37 : vector<1x8x8xi1> to vector<4x8x8xi1>
    %39 = vector.broadcast %cst_14 : f32 to vector<4x8x8xf32>
    %40 = arith.select %38, %36, %39 : vector<4x8x8xi1>, vector<4x8x8xf32>
    %cst_15 = arith.constant dense<0xFF800000> : vector<4x8xf32>
    %41 = vector.multi_reduction <maximumf>, %40, %cst_15 [2] : vector<4x8x8xf32> to vector<4x8xf32>
    %42 = vector.shape_cast %41 : vector<4x8xf32> to vector<4x8x1xf32>
    %43 = vector.broadcast %42 : vector<4x8x1xf32> to vector<4x8x8xf32>
    %44 = arith.subf %40, %43 : vector<4x8x8xf32>
    %45 = math.exp %44 : vector<4x8x8xf32>
    %cst_16 = arith.constant dense<0.000000e+00> : vector<4x8xf32>
    %46 = vector.multi_reduction <add>, %45, %cst_16 [2] : vector<4x8x8xf32> to vector<4x8xf32>
    %47 = vector.shape_cast %46 : vector<4x8xf32> to vector<4x8x1xf32>
    %48 = tpu.reciprocal %47 {approx = true} : vector<4x8x1xf32> -> vector<4x8x1xf32>
    %49 = vector.broadcast %48 : vector<4x8x1xf32> to vector<4x8x8xf32>
    %50 = arith.mulf %45, %49 : vector<4x8x8xf32>
    %51 = arith.truncf %50 : vector<4x8x8xf32> to vector<4x8x8xbf16>
    %c0_17 = arith.constant 0 : index
    %c0_18 = arith.constant 0 : index
    %c0_19 = arith.constant 0 : index
    %52 = vector.load %arg33[%c0_17, %c0_18, %c0_19] : memref<4x8x8xbf16, #tpu.memory_space<vmem>>, vector<4x8x8xbf16>
    "tpu.trace_start"() <{level = 10 : i32, message = "hqk,hke->hqe"}> : () -> ()
    %cst_20 = arith.constant dense<0.000000e+00> : vector<4x8x8xf32>
    %53 = tpu.matmul %51, %52, %cst_20 {dimension_numbers = #tpu.dot_dimension_numbers<[2], [1], [1], [2], [0, 0, 0, 1, 1, 2], [0], [0]>} : vector<4x8x8xbf16>, vector<4x8x8xbf16>, vector<4x8x8xf32> -> vector<4x8x8xf32>
    "tpu.trace_stop"() : () -> ()
    %54 = vector.extract_strided_slice %53 {offsets = [0, 0, 0], sizes = [1, 8, 8], strides = [1, 1, 1]} : vector<4x8x8xf32> to vector<1x8x8xf32>
    %55 = vector.shape_cast %54 : vector<1x8x8xf32> to vector<8x8xf32>
    %56 = vector.extract_strided_slice %53 {offsets = [1, 0, 0], sizes = [1, 8, 8], strides = [1, 1, 1]} : vector<4x8x8xf32> to vector<1x8x8xf32>
    %57 = vector.shape_cast %56 : vector<1x8x8xf32> to vector<8x8xf32>
    %58 = vector.extract_strided_slice %53 {offsets = [2, 0, 0], sizes = [1, 8, 8], strides = [1, 1, 1]} : vector<4x8x8xf32> to vector<1x8x8xf32>
    %59 = vector.shape_cast %58 : vector<1x8x8xf32> to vector<8x8xf32>
    %60 = vector.extract_strided_slice %53 {offsets = [3, 0, 0], sizes = [1, 8, 8], strides = [1, 1, 1]} : vector<4x8x8xf32> to vector<1x8x8xf32>
    %61 = vector.shape_cast %60 : vector<1x8x8xf32> to vector<8x8xf32>
    %62 = tpu.concatenate %55, %57, %59, %61 in 1 : vector<8x8xf32>, vector<8x8xf32>, vector<8x8xf32>, vector<8x8xf32> -> vector<8x32xf32>
    %63 = arith.truncf %62 : vector<8x32xf32> to vector<8x32xbf16>
    %c0_21 = arith.constant 0 : index
    %c0_22 = arith.constant 0 : index
    %64 = vector.load %arg8[%c0_21, %c0_22] : memref<32x32xbf16, #tpu.memory_space<vmem>>, vector<32x32xbf16>
    %cst_23 = arith.constant dense<0.000000e+00> : vector<8x32xf32>
    %65 = tpu.matmul %63, %64, %cst_23 {dimension_numbers = #tpu.dot_dimension_numbers<[1], [0], [0], [1], [0, 0, 1, 1], [], []>} : vector<8x32xbf16>, vector<32x32xbf16>, vector<8x32xf32> -> vector<8x32xf32>
    %c0_24 = arith.constant 0 : index
    %c0_25 = arith.constant 0 : index
    %66 = vector.load %arg12[%c0_24, %c0_25] : memref<1x32xf32, #tpu.memory_space<vmem>>, vector<1x32xf32>
    %67 = vector.broadcast %66 : vector<1x32xf32> to vector<8x32xf32>
    %68 = arith.addf %65, %67 : vector<8x32xf32>
    %69 = arith.addf %68, %7 : vector<8x32xf32>
    %cst_26 = arith.constant dense<0.000000e+00> : vector<8xf32>
    %70 = vector.multi_reduction <add>, %69, %cst_26 [1] : vector<8x32xf32> to vector<8xf32>
    %71 = vector.shape_cast %70 : vector<8xf32> to vector<8x1xf32>
    %cst_27 = arith.constant 3.200000e+01 : f32
    %72 = vector.broadcast %cst_27 : f32 to vector<8x1xf32>
    %73 = arith.divf %71, %72 : vector<8x1xf32>
    %74 = vector.broadcast %73 : vector<8x1xf32> to vector<8x32xf32>
    %75 = arith.subf %69, %74 : vector<8x32xf32>
    %76 = arith.mulf %75, %75 : vector<8x32xf32>
    %cst_28 = arith.constant dense<0.000000e+00> : vector<8xf32>
    %77 = vector.multi_reduction <add>, %76, %cst_28 [1] : vector<8x32xf32> to vector<8xf32>
    %78 = vector.shape_cast %77 : vector<8xf32> to vector<8x1xf32>
    %cst_29 = arith.constant 3.200000e+01 : f32
    %79 = vector.broadcast %cst_29 : f32 to vector<8x1xf32>
    %80 = arith.divf %78, %79 : vector<8x1xf32>
    %81 = vector.broadcast %73 : vector<8x1xf32> to vector<8x32xf32>
    %82 = arith.subf %69, %81 : vector<8x32xf32>
    %cst_30 = arith.constant 9.99999974E-6 : f32
    %83 = vector.broadcast %cst_30 : f32 to vector<8x1xf32>
    %84 = arith.addf %80, %83 : vector<8x1xf32>
    %85 = math.rsqrt %84 : vector<8x1xf32>
    %86 = vector.broadcast %85 : vector<8x1xf32> to vector<8x32xf32>
    %87 = arith.mulf %82, %86 : vector<8x32xf32>
    %c0_31 = arith.constant 0 : index
    %c0_32 = arith.constant 0 : index
    %88 = vector.load %arg25[%c0_31, %c0_32] : memref<1x32xf32, #tpu.memory_space<vmem>>, vector<1x32xf32>
    %89 = vector.broadcast %88 : vector<1x32xf32> to vector<8x32xf32>
    %90 = arith.mulf %87, %89 : vector<8x32xf32>
    %c0_33 = arith.constant 0 : index
    %c0_34 = arith.constant 0 : index
    %91 = vector.load %arg26[%c0_33, %c0_34] : memref<1x32xf32, #tpu.memory_space<vmem>>, vector<1x32xf32>
    %92 = vector.broadcast %91 : vector<1x32xf32> to vector<8x32xf32>
    %93 = arith.addf %90, %92 : vector<8x32xf32>
    %94 = arith.truncf %93 : vector<8x32xf32> to vector<8x32xbf16>
    %c0_35 = arith.constant 0 : index
    %c0_36 = arith.constant 0 : index
    %95 = vector.load %arg13[%c0_35, %c0_36] : memref<32x32xbf16, #tpu.memory_space<vmem>>, vector<32x32xbf16>
    %cst_37 = arith.constant dense<0.000000e+00> : vector<8x32xf32>
    %96 = tpu.matmul %94, %95, %cst_37 {dimension_numbers = #tpu.dot_dimension_numbers<[1], [0], [0], [1], [0, 0, 1, 1], [], []>} : vector<8x32xbf16>, vector<32x32xbf16>, vector<8x32xf32> -> vector<8x32xf32>
    %c0_38 = arith.constant 0 : index
    %c0_39 = arith.constant 0 : index
    %97 = vector.load %arg17[%c0_38, %c0_39] : memref<1x32xf32, #tpu.memory_space<vmem>>, vector<1x32xf32>
    %98 = vector.broadcast %97 : vector<1x32xf32> to vector<8x32xf32>
    %99 = arith.addf %96, %98 : vector<8x32xf32>
    %100 = arith.truncf %99 : vector<8x32xf32> to vector<8x32xbf16>
    %101 = vector.extract_strided_slice %100 {offsets = [0, 0], sizes = [8, 8], strides = [1, 1]} : vector<8x32xbf16> to vector<8x8xbf16>
    %102 = vector.extract_strided_slice %100 {offsets = [0, 8], sizes = [8, 8], strides = [1, 1]} : vector<8x32xbf16> to vector<8x8xbf16>
    %103 = vector.extract_strided_slice %100 {offsets = [0, 16], sizes = [8, 8], strides = [1, 1]} : vector<8x32xbf16> to vector<8x8xbf16>
    %104 = vector.extract_strided_slice %100 {offsets = [0, 24], sizes = [8, 8], strides = [1, 1]} : vector<8x32xbf16> to vector<8x8xbf16>
    %105 = vector.shape_cast %101 : vector<8x8xbf16> to vector<1x8x8xbf16>
    %106 = vector.shape_cast %102 : vector<8x8xbf16> to vector<1x8x8xbf16>
    %107 = vector.shape_cast %103 : vector<8x8xbf16> to vector<1x8x8xbf16>
    %108 = vector.shape_cast %104 : vector<8x8xbf16> to vector<1x8x8xbf16>
    %109 = tpu.concatenate %105, %106, %107, %108 in 0 : vector<1x8x8xbf16>, vector<1x8x8xbf16>, vector<1x8x8xbf16>, vector<1x8x8xbf16> -> vector<4x8x8xbf16>
    %c0_40 = arith.constant 0 : index
    %c0_41 = arith.constant 0 : index
    %c0_42 = arith.constant 0 : index
    %110 = vector.load %arg34[%c0_40, %c0_41, %c0_42] : memref<4x8x8xbf16, #tpu.memory_space<vmem>>, vector<4x8x8xbf16>
    "tpu.trace_start"() <{level = 10 : i32, message = "hqe,hke->hqk"}> : () -> ()
    %cst_43 = arith.constant dense<0.000000e+00> : vector<4x8x8xf32>
    %111 = tpu.matmul %109, %110, %cst_43 {dimension_numbers = #tpu.dot_dimension_numbers<[2], [2], [1], [1], [0, 0, 0, 1, 1, 1], [0], [0]>} : vector<4x8x8xbf16>, vector<4x8x8xbf16>, vector<4x8x8xf32> -> vector<4x8x8xf32>
    %cst_44 = arith.constant -1.000000e+09 : f32
    "tpu.trace_stop"() : () -> ()
    %112 = vector.shape_cast %18 : vector<1x8xi1> to vector<1x1x8xi1>
    %113 = vector.broadcast %112 : vector<1x1x8xi1> to vector<4x8x8xi1>
    %114 = vector.broadcast %cst_44 : f32 to vector<4x8x8xf32>
    %115 = arith.select %113, %111, %114 : vector<4x8x8xi1>, vector<4x8x8xf32>
    %cst_45 = arith.constant dense<0xFF800000> : vector<4x8xf32>
    %116 = vector.multi_reduction <maximumf>, %115, %cst_45 [2] : vector<4x8x8xf32> to vector<4x8xf32>
    %117 = vector.shape_cast %116 : vector<4x8xf32> to vector<4x8x1xf32>
    %118 = vector.broadcast %117 : vector<4x8x1xf32> to vector<4x8x8xf32>
    %119 = arith.subf %115, %118 : vector<4x8x8xf32>
    %120 = math.exp %119 : vector<4x8x8xf32>
    %cst_46 = arith.constant dense<0.000000e+00> : vector<4x8xf32>
    %121 = vector.multi_reduction <add>, %120, %cst_46 [2] : vector<4x8x8xf32> to vector<4x8xf32>
    %122 = vector.shape_cast %121 : vector<4x8xf32> to vector<4x8x1xf32>
    %123 = tpu.reciprocal %122 {approx = true} : vector<4x8x1xf32> -> vector<4x8x1xf32>
    %124 = vector.broadcast %123 : vector<4x8x1xf32> to vector<4x8x8xf32>
    %125 = arith.mulf %120, %124 : vector<4x8x8xf32>
    %126 = arith.truncf %125 : vector<4x8x8xf32> to vector<4x8x8xbf16>
    %c0_47 = arith.constant 0 : index
    %c0_48 = arith.constant 0 : index
    %c0_49 = arith.constant 0 : index
    %127 = vector.load %arg35[%c0_47, %c0_48, %c0_49] : memref<4x8x8xbf16, #tpu.memory_space<vmem>>, vector<4x8x8xbf16>
    "tpu.trace_start"() <{level = 10 : i32, message = "hqk,hke->hqe"}> : () -> ()
    %cst_50 = arith.constant dense<0.000000e+00> : vector<4x8x8xf32>
    %128 = tpu.matmul %126, %127, %cst_50 {dimension_numbers = #tpu.dot_dimension_numbers<[2], [1], [1], [2], [0, 0, 0, 1, 1, 2], [0], [0]>} : vector<4x8x8xbf16>, vector<4x8x8xbf16>, vector<4x8x8xf32> -> vector<4x8x8xf32>
    "tpu.trace_stop"() : () -> ()
    %129 = vector.extract_strided_slice %128 {offsets = [0, 0, 0], sizes = [1, 8, 8], strides = [1, 1, 1]} : vector<4x8x8xf32> to vector<1x8x8xf32>
    %130 = vector.shape_cast %129 : vector<1x8x8xf32> to vector<8x8xf32>
    %131 = vector.extract_strided_slice %128 {offsets = [1, 0, 0], sizes = [1, 8, 8], strides = [1, 1, 1]} : vector<4x8x8xf32> to vector<1x8x8xf32>
    %132 = vector.shape_cast %131 : vector<1x8x8xf32> to vector<8x8xf32>
    %133 = vector.extract_strided_slice %128 {offsets = [2, 0, 0], sizes = [1, 8, 8], strides = [1, 1, 1]} : vector<4x8x8xf32> to vector<1x8x8xf32>
    %134 = vector.shape_cast %133 : vector<1x8x8xf32> to vector<8x8xf32>
    %135 = vector.extract_strided_slice %128 {offsets = [3, 0, 0], sizes = [1, 8, 8], strides = [1, 1, 1]} : vector<4x8x8xf32> to vector<1x8x8xf32>
    %136 = vector.shape_cast %135 : vector<1x8x8xf32> to vector<8x8xf32>
    %137 = tpu.concatenate %130, %132, %134, %136 in 1 : vector<8x8xf32>, vector<8x8xf32>, vector<8x8xf32>, vector<8x8xf32> -> vector<8x32xf32>
    %138 = arith.truncf %137 : vector<8x32xf32> to vector<8x32xbf16>
    %c0_51 = arith.constant 0 : index
    %c0_52 = arith.constant 0 : index
    %139 = vector.load %arg16[%c0_51, %c0_52] : memref<32x32xbf16, #tpu.memory_space<vmem>>, vector<32x32xbf16>
    %cst_53 = arith.constant dense<0.000000e+00> : vector<8x32xf32>
    %140 = tpu.matmul %138, %139, %cst_53 {dimension_numbers = #tpu.dot_dimension_numbers<[1], [0], [0], [1], [0, 0, 1, 1], [], []>} : vector<8x32xbf16>, vector<32x32xbf16>, vector<8x32xf32> -> vector<8x32xf32>
    %c0_54 = arith.constant 0 : index
    %c0_55 = arith.constant 0 : index
    %141 = vector.load %arg20[%c0_54, %c0_55] : memref<1x32xf32, #tpu.memory_space<vmem>>, vector<1x32xf32>
    %142 = vector.broadcast %141 : vector<1x32xf32> to vector<8x32xf32>
    %143 = arith.addf %140, %142 : vector<8x32xf32>
    %144 = arith.addf %143, %93 : vector<8x32xf32>
    %cst_56 = arith.constant dense<0.000000e+00> : vector<8xf32>
    %145 = vector.multi_reduction <add>, %144, %cst_56 [1] : vector<8x32xf32> to vector<8xf32>
    %146 = vector.shape_cast %145 : vector<8xf32> to vector<8x1xf32>
    %cst_57 = arith.constant 3.200000e+01 : f32
    %147 = vector.broadcast %cst_57 : f32 to vector<8x1xf32>
    %148 = arith.divf %146, %147 : vector<8x1xf32>
    %149 = vector.broadcast %148 : vector<8x1xf32> to vector<8x32xf32>
    %150 = arith.subf %144, %149 : vector<8x32xf32>
    %151 = arith.mulf %150, %150 : vector<8x32xf32>
    %cst_58 = arith.constant dense<0.000000e+00> : vector<8xf32>
    %152 = vector.multi_reduction <add>, %151, %cst_58 [1] : vector<8x32xf32> to vector<8xf32>
    %153 = vector.shape_cast %152 : vector<8xf32> to vector<8x1xf32>
    %cst_59 = arith.constant 3.200000e+01 : f32
    %154 = vector.broadcast %cst_59 : f32 to vector<8x1xf32>
    %155 = arith.divf %153, %154 : vector<8x1xf32>
    %156 = vector.broadcast %148 : vector<8x1xf32> to vector<8x32xf32>
    %157 = arith.subf %144, %156 : vector<8x32xf32>
    %cst_60 = arith.constant 9.99999974E-6 : f32
    %158 = vector.broadcast %cst_60 : f32 to vector<8x1xf32>
    %159 = arith.addf %155, %158 : vector<8x1xf32>
    %160 = math.rsqrt %159 : vector<8x1xf32>
    %161 = vector.broadcast %160 : vector<8x1xf32> to vector<8x32xf32>
    %162 = arith.mulf %157, %161 : vector<8x32xf32>
    %c0_61 = arith.constant 0 : index
    %c0_62 = arith.constant 0 : index
    %163 = vector.load %arg27[%c0_61, %c0_62] : memref<1x32xf32, #tpu.memory_space<vmem>>, vector<1x32xf32>
    %164 = vector.broadcast %163 : vector<1x32xf32> to vector<8x32xf32>
    %165 = arith.mulf %162, %164 : vector<8x32xf32>
    %c0_63 = arith.constant 0 : index
    %c0_64 = arith.constant 0 : index
    %166 = vector.load %arg28[%c0_63, %c0_64] : memref<1x32xf32, #tpu.memory_space<vmem>>, vector<1x32xf32>
    %167 = vector.broadcast %166 : vector<1x32xf32> to vector<8x32xf32>
    %168 = arith.addf %165, %167 : vector<8x32xf32>
    %169 = arith.truncf %168 : vector<8x32xf32> to vector<8x32xbf16>
    %c0_65 = arith.constant 0 : index
    %c0_66 = arith.constant 0 : index
    %170 = vector.load %arg21[%c0_65, %c0_66] : memref<32x64xbf16, #tpu.memory_space<vmem>>, vector<32x64xbf16>
    %cst_67 = arith.constant dense<0.000000e+00> : vector<8x64xf32>
    %171 = tpu.matmul %169, %170, %cst_67 {dimension_numbers = #tpu.dot_dimension_numbers<[1], [0], [0], [1], [0, 0, 1, 1], [], []>} : vector<8x32xbf16>, vector<32x64xbf16>, vector<8x64xf32> -> vector<8x64xf32>
    %c0_68 = arith.constant 0 : index
    %c0_69 = arith.constant 0 : index
    %172 = vector.load %arg22[%c0_68, %c0_69] : memref<1x64xf32, #tpu.memory_space<vmem>>, vector<1x64xf32>
    %173 = vector.broadcast %172 : vector<1x64xf32> to vector<8x64xf32>
    %174 = arith.addf %171, %173 : vector<8x64xf32>
    %cst_70 = arith.constant 0.000000e+00 : f32
    %175 = vector.broadcast %cst_70 : f32 to vector<8x64xf32>
    %176 = arith.maximumf %174, %175 : vector<8x64xf32>
    %177 = arith.truncf %176 : vector<8x64xf32> to vector<8x64xbf16>
    %c0_71 = arith.constant 0 : index
    %c0_72 = arith.constant 0 : index
    %178 = vector.load %arg23[%c0_71, %c0_72] : memref<64x32xbf16, #tpu.memory_space<vmem>>, vector<64x32xbf16>
    %cst_73 = arith.constant dense<0.000000e+00> : vector<8x32xf32>
    %179 = tpu.matmul %177, %178, %cst_73 {dimension_numbers = #tpu.dot_dimension_numbers<[1], [0], [0], [1], [0, 0, 1, 1], [], []>} : vector<8x64xbf16>, vector<64x32xbf16>, vector<8x32xf32> -> vector<8x32xf32>
    %c0_74 = arith.constant 0 : index
    %c0_75 = arith.constant 0 : index
    %180 = vector.load %arg24[%c0_74, %c0_75] : memref<1x32xf32, #tpu.memory_space<vmem>>, vector<1x32xf32>
    %181 = vector.broadcast %180 : vector<1x32xf32> to vector<8x32xf32>
    %182 = arith.addf %179, %181 : vector<8x32xf32>
    %183 = arith.addf %182, %168 : vector<8x32xf32>
    %cst_76 = arith.constant dense<0.000000e+00> : vector<8xf32>
    %184 = vector.multi_reduction <add>, %183, %cst_76 [1] : vector<8x32xf32> to vector<8xf32>
    %185 = vector.shape_cast %184 : vector<8xf32> to vector<8x1xf32>
    %cst_77 = arith.constant 3.200000e+01 : f32
    %186 = vector.broadcast %cst_77 : f32 to vector<8x1xf32>
    %187 = arith.divf %185, %186 : vector<8x1xf32>
    %188 = vector.broadcast %187 : vector<8x1xf32> to vector<8x32xf32>
    %189 = arith.subf %183, %188 : vector<8x32xf32>
    %190 = arith.mulf %189, %189 : vector<8x32xf32>
    %cst_78 = arith.constant dense<0.000000e+00> : vector<8xf32>
    %191 = vector.multi_reduction <add>, %190, %cst_78 [1] : vector<8x32xf32> to vector<8xf32>
    %192 = vector.shape_cast %191 : vector<8xf32> to vector<8x1xf32>
    %cst_79 = arith.constant 3.200000e+01 : f32
    %193 = vector.broadcast %cst_79 : f32 to vector<8x1xf32>
    %194 = arith.divf %192, %193 : vector<8x1xf32>
    %195 = vector.broadcast %187 : vector<8x1xf32> to vector<8x32xf32>
    %196 = arith.subf %183, %195 : vector<8x32xf32>
    %cst_80 = arith.constant 9.99999974E-6 : f32
    %197 = vector.broadcast %cst_80 : f32 to vector<8x1xf32>
    %198 = arith.addf %194, %197 : vector<8x1xf32>
    %199 = math.rsqrt %198 : vector<8x1xf32>
    %200 = vector.broadcast %199 : vector<8x1xf32> to vector<8x32xf32>
    %201 = arith.mulf %196, %200 : vector<8x32xf32>
    %c0_81 = arith.constant 0 : index
    %c0_82 = arith.constant 0 : index
    %202 = vector.load %arg29[%c0_81, %c0_82] : memref<1x32xf32, #tpu.memory_space<vmem>>, vector<1x32xf32>
    %203 = vector.broadcast %202 : vector<1x32xf32> to vector<8x32xf32>
    %204 = arith.mulf %201, %203 : vector<8x32xf32>
    %c0_83 = arith.constant 0 : index
    %c0_84 = arith.constant 0 : index
    %205 = vector.load %arg30[%c0_83, %c0_84] : memref<1x32xf32, #tpu.memory_space<vmem>>, vector<1x32xf32>
    %206 = vector.broadcast %205 : vector<1x32xf32> to vector<8x32xf32>
    %207 = arith.addf %204, %206 : vector<8x32xf32>
    %c0_85 = arith.constant 0 : index
    %c0_86 = arith.constant 0 : index
    %c0_87 = arith.constant 0 : index
    %208 = vector.load %arg31[%c0_85, %c0_86, %c0_87] : memref<1x8x32xf32, #tpu.memory_space<vmem>>, vector<1x8x32xf32>
    %209 = vector.shape_cast %208 : vector<1x8x32xf32> to vector<8x32xf32>
    %210 = vector.shape_cast %207 : vector<8x32xf32> to vector<1x8x32xf32>
    tpu.vector_store %arg31[%c0_85, %c0_86, %c0_87], %210 {strides = array<i32>} : memref<1x8x32xf32, #tpu.memory_space<vmem>>, vector<1x8x32xf32>,
    return
  }
  func.func @transform_0(%arg0: i32, %arg1: i32) -> (i32, i32, i32) {
    %c0_i32 = arith.constant 0 : i32
    %c0_i32_0 = arith.constant 0 : i32
    %c0_i32_1 = arith.constant 0 : i32
    return %arg0, %c0_i32, %c0_i32_0 : i32, i32, i32
  }
  func.func @transform_1(%arg0: i32, %arg1: i32) -> (i32, i32, i32) {
    %c0_i32 = arith.constant 0 : i32
    %c0_i32_0 = arith.constant 0 : i32
    %c0_i32_1 = arith.constant 0 : i32
    return %arg0, %c0_i32, %c0_i32_0 : i32, i32, i32
  }
  func.func @transform_2(%arg0: i32, %arg1: i32) -> (i32, i32, i32) {
    %c0_i32 = arith.constant 0 : i32
    %c0_i32_0 = arith.constant 0 : i32
    %c0_i32_1 = arith.constant 0 : i32
    return %arg0, %c0_i32, %c0_i32_0 : i32, i32, i32
  }
  func.func @transform_3(%arg0: i32, %arg1: i32) -> (i32, i32) {
    %c0_i32 = arith.constant 0 : i32
    %c0_i32_0 = arith.constant 0 : i32
    %c0_i32_1 = arith.constant 0 : i32
    return %c0_i32, %c0_i32_0 : i32, i32
  }
  func.func @transform_4(%arg0: i32, %arg1: i32) -> (i32, i32) {
    %c0_i32 = arith.constant 0 : i32
    %c0_i32_0 = arith.constant 0 : i32
    %c0_i32_1 = arith.constant 0 : i32
    return %c0_i32, %c0_i32_0 : i32, i32
  }
  func.func @transform_5(%arg0: i32, %arg1: i32) -> (i32, i32) {
    %c0_i32 = arith.constant 0 : i32
    %c0_i32_0 = arith.constant 0 : i32
    %c0_i32_1 = arith.constant 0 : i32
    return %c0_i32, %c0_i32_0 : i32, i32
  }
  func.func @transform_6(%arg0: i32, %arg1: i32) -> (i32, i32) {
    %c0_i32 = arith.constant 0 : i32
    %c0_i32_0 = arith.constant 0 : i32
    %c0_i32_1 = arith.constant 0 : i32
    return %c0_i32, %c0_i32_0 : i32, i32
  }
  func.func @transform_7(%arg0: i32, %arg1: i32) -> (i32, i32) {
    %c0_i32 = arith.constant 0 : i32
    %c0_i32_0 = arith.constant 0 : i32
    %c0_i32_1 = arith.constant 0 : i32
    return %c0_i32, %c0_i32_0 : i32, i32
  }
  func.func @transform_8(%arg0: i32, %arg1: i32) -> (i32, i32) {
    %c0_i32 = arith.constant 0 : i32
    %c0_i32_0 = arith.constant 0 : i32
    %c0_i32_1 = arith.constant 0 : i32
    return %c0_i32, %c0_i32_0 : i32, i32
  }
  func.func @transform_9(%arg0: i32, %arg1: i32) -> (i32, i32) {
    %c0_i32 = arith.constant 0 : i32
    %c0_i32_0 = arith.constant 0 : i32
    %c0_i32_1 = arith.constant 0 : i32
    return %c0_i32, %c0_i32_0 : i32, i32
  }
  func.func @transform_10(%arg0: i32, %arg1: i32) -> (i32, i32) {
    %c0_i32 = arith.constant 0 : i32
    %c0_i32_0 = arith.constant 0 : i32
    %c0_i32_1 = arith.constant 0 : i32
    return %c0_i32, %c0_i32_0 : i32, i32
  }
  func.func @transform_11(%arg0: i32, %arg1: i32) -> (i32, i32) {
    %c0_i32 = arith.constant 0 : i32
    %c0_i32_0 = arith.constant 0 : i32
    %c0_i32_1 = arith.constant 0 : i32
    return %c0_i32, %c0_i32_0 : i32, i32
  }
  func.func @transform_12(%arg0: i32, %arg1: i32) -> (i32, i32) {
    %c0_i32 = arith.constant 0 : i32
    %c0_i32_0 = arith.constant 0 : i32
    %c0_i32_1 = arith.constant 0 : i32
    return %c0_i32, %c0_i32_0 : i32, i32
  }
  func.func @transform_13(%arg0: i32, %arg1: i32) -> (i32, i32) {
    %c0_i32 = arith.constant 0 : i32
    %c0_i32_0 = arith.constant 0 : i32
    %c0_i32_1 = arith.constant 0 : i32
    return %c0_i32, %c0_i32_0 : i32, i32
  }
  func.func @transform_14(%arg0: i32, %arg1: i32) -> (i32, i32) {
    %c0_i32 = arith.constant 0 : i32
    %c0_i32_0 = arith.constant 0 : i32
    %c0_i32_1 = arith.constant 0 : i32
    return %c0_i32, %c0_i32_0 : i32, i32
  }
  func.func @transform_15(%arg0: i32, %arg1: i32) -> (i32, i32) {
    %c0_i32 = arith.constant 0 : i32
    %c0_i32_0 = arith.constant 0 : i32
    %c0_i32_1 = arith.constant 0 : i32
    return %c0_i32, %c0_i32_0 : i32, i32
  }
  func.func @transform_16(%arg0: i32, %arg1: i32) -> (i32, i32) {
    %c0_i32 = arith.constant 0 : i32
    %c0_i32_0 = arith.constant 0 : i32
    %c0_i32_1 = arith.constant 0 : i32
    return %c0_i32, %c0_i32_0 : i32, i32
  }
  func.func @transform_17(%arg0: i32, %arg1: i32) -> (i32, i32) {
    %c0_i32 = arith.constant 0 : i32
    %c0_i32_0 = arith.constant 0 : i32
    %c0_i32_1 = arith.constant 0 : i32
    return %c0_i32, %c0_i32_0 : i32, i32
  }
  func.func @transform_18(%arg0: i32, %arg1: i32) -> (i32, i32) {
    %c0_i32 = arith.constant 0 : i32
    %c0_i32_0 = arith.constant 0 : i32
    %c0_i32_1 = arith.constant 0 : i32
    return %c0_i32, %c0_i32_0 : i32, i32
  }
  func.func @transform_19(%arg0: i32, %arg1: i32) -> (i32, i32) {
    %c0_i32 = arith.constant 0 : i32
    %c0_i32_0 = arith.constant 0 : i32
    %c0_i32_1 = arith.constant 0 : i32
    return %c0_i32, %c0_i32_0 : i32, i32
  }
  func.func @transform_20(%arg0: i32, %arg1: i32) -> (i32, i32) {
    %c0_i32 = arith.constant 0 : i32
    %c0_i32_0 = arith.constant 0 : i32
    %c0_i32_1 = arith.constant 0 : i32
    return %c0_i32, %c0_i32_0 : i32, i32
  }
  func.func @transform_21(%arg0: i32, %arg1: i32) -> (i32, i32) {
    %c0_i32 = arith.constant 0 : i32
    %c0_i32_0 = arith.constant 0 : i32
    %c0_i32_1 = arith.constant 0 : i32
    return %c0_i32, %c0_i32_0 : i32, i32
  }
  func.func @transform_22(%arg0: i32, %arg1: i32) -> (i32, i32) {
    %c0_i32 = arith.constant 0 : i32
    %c0_i32_0 = arith.constant 0 : i32
    %c0_i32_1 = arith.constant 0 : i32
    return %c0_i32, %c0_i32_0 : i32, i32
  }
  func.func @transform_23(%arg0: i32, %arg1: i32) -> (i32, i32) {
    %c0_i32 = arith.constant 0 : i32
    %c0_i32_0 = arith.constant 0 : i32
    %c0_i32_1 = arith.constant 0 : i32
    return %c0_i32, %c0_i32_0 : i32, i32
  }
  func.func @transform_24(%arg0: i32, %arg1: i32) -> (i32, i32) {
    %c0_i32 = arith.constant 0 : i32
    %c0_i32_0 = arith.constant 0 : i32
    %c0_i32_1 = arith.constant 0 : i32
    return %c0_i32, %c0_i32_0 : i32, i32
  }
  func.func @transform_25(%arg0: i32, %arg1: i32) -> (i32, i32) {
    %c0_i32 = arith.constant 0 : i32
    %c0_i32_0 = arith.constant 0 : i32
    %c0_i32_1 = arith.constant 0 : i32
    return %c0_i32, %c0_i32_0 : i32, i32
  }
  func.func @transform_26(%arg0: i32, %arg1: i32) -> (i32, i32) {
    %c0_i32 = arith.constant 0 : i32
    %c0_i32_0 = arith.constant 0 : i32
    %c0_i32_1 = arith.constant 0 : i32
    return %c0_i32, %c0_i32_0 : i32, i32
  }
  func.func @transform_27(%arg0: i32, %arg1: i32) -> (i32, i32) {
    %c0_i32 = arith.constant 0 : i32
    %c0_i32_0 = arith.constant 0 : i32
    %c0_i32_1 = arith.constant 0 : i32
    return %c0_i32, %c0_i32_0 : i32, i32
  }
  func.func @transform_28(%arg0: i32, %arg1: i32) -> (i32, i32) {
    %c0_i32 = arith.constant 0 : i32
    %c0_i32_0 = arith.constant 0 : i32
    %c0_i32_1 = arith.constant 0 : i32
    return %c0_i32, %c0_i32_0 : i32, i32
  }
  func.func @transform_29(%arg0: i32, %arg1: i32) -> (i32, i32, i32) {
    %c0_i32 = arith.constant 0 : i32
    %c0_i32_0 = arith.constant 0 : i32
    return %arg0, %arg1, %c0_i32 : i32, i32, i32
  }
}

</mosaic_0001>

<bundles_post_ra>
// kernel: tpu_custom_call.1
= control target key start
LH: loop header
LB: loop body
LE: loop exit
PB: predicated region body
PF: predicated region fallthrough
CT: control target
= control target key end

     0   :  { %s3545_s6 = smov 1   ;;  %s3546_s10 = smov 2   ;;  %s4281_s0 = inlined_call_operand.smem [shape: u32[30], index: -1, kind: input, shape index: {}] }
   0x1   :  { %s3606_s5 = sld [smem:[%s4281_s0]]   ;;  %s3547_s14 = smov 3  }
   0x2   :  { %s3611_s9 = sld [smem:[%s4281_s0 + %s3545_s6]]   ;;  %s3548_s18 = smov 4  }
   0x3   :  { %s3616_s13 = sld [smem:[%s4281_s0 + %s3546_s10]]   ;;  %s3549_s22 = smov 5  }
   0x4   :  { %s3621_s17 = sld [smem:[%s4281_s0 + %s3547_s14]]   ;;  %s3550_s26 = smov 6  }
   0x5   :  { %s3626_s21 = sld [smem:[%s4281_s0 + %s3548_s18]]   ;;  %s3551_s30 = smov 7  }
   0x6   :  { %s3631_s25 = sld [smem:[%s4281_s0 + %s3549_s22]]   ;;  %s3552_s4 = smov 8  }
   0x7   :  { %4301 = sst [smem:[#allocation40_spill]] %s3606_s5  ;;  %s3553_s10 = smov 9  }
   0x8   :  { %4302 = sst [smem:[#allocation41_spill]] %s3611_s9  ;;  %s3554_s15 = smov 10  }
   0x9   :  { %4303 = sst [smem:[#allocation42_spill]] %s3616_s13  ;;  %s3555_s20 = smov 11  }
   0xa   :  { %4304 = sst [smem:[#allocation43_spill]] %s3621_s17  ;;  %s3557_s1 = smov 13  }
   0xb   :  { %4305 = sst [smem:[#allocation44_spill]] %s3626_s21  ;;  %s3558_s7 = smov 14  }
   0xc   :  { %s3636_s29 = sld [smem:[%s4281_s0 + %s3550_s26]]   ;;  %s3556_s26 = smov 12  }
   0xd   :  { %s3641_s3 = sld [smem:[%s4281_s0 + %s3551_s30]]   ;;  %s3560_s22 = smov 16  }
   0xe   :  { %s3646_s8 = sld [smem:[%s4281_s0 + %s3552_s4]]   ;;  %s3561_s28 = smov 17  }
   0xf   :  { %s3651_s14 = sld [smem:[%s4281_s0 + %s3553_s10]]  }
  0x10   :  { %s3656_s19 = sld [smem:[%s4281_s0 + %s3554_s15]]   ;;  %s3559_s15 = smov 15  }
  0x11   :  { %s3661_s24 = sld [smem:[%s4281_s0 + %s3555_s20]]  }
  0x12   :  { %s3666_s30 = sld [smem:[%s4281_s0 + %s3556_s26]]  }
  0x13   :  { %4306 = sst [smem:[#allocation45_spill]] %s3641_s3 }
  0x14   :  { %4307 = sst [smem:[#allocation46_spill]] %s3646_s8 }
  0x15   :  { %s3671_s6 = sld [smem:[%s4281_s0 + %s3557_s1]]  }
  0x16   :  { %s3676_s12 = sld [smem:[%s4281_s0 + %s3558_s7]]   ;;  %s3562_s7 = smov 18  }
  0x17   :  { %s3681_s20 = sld [smem:[%s4281_s0 + %s3559_s15]]   ;;  %s3563_s15 = smov 19  }
  0x18   :  { %s3686_s27 = sld [smem:[%s4281_s0 + %s3560_s22]]   ;;  %s3564_s22 = smov 20  }
  0x19   :  { %s3691_s4 = sld [smem:[%s4281_s0 + %s3561_s28]]   ;;  %s3565_s28 = smov 21  }
  0x1a   :  { %s3696_s9 = sld [smem:[%s4281_s0 + %s3562_s7]]   ;;  %s3566_s7 = smov 22  }
  0x1b   :  { %4308 = sst [smem:[#allocation47_spill]] %s3671_s6 }
  0x1c   :  { %4309 = sst [smem:[#allocation48_spill]] %s3676_s12 }
  0x1d   :  { %s3701_s17 = sld [smem:[%s4281_s0 + %s3563_s15]]   ;;  %s3567_s15 = smov 23  }
  0x1e   :  { %s3706_s5 = sld [smem:[%s4281_s0 + %s3564_s22]]   ;;  %s3568_s22 = smov 24  }
  0x1f   :  { %4310 = sst [smem:[#allocation49_spill]] %s3691_s4 }
  0x20   :  { %4311 = sst [smem:[#allocation50_spill]] %s3696_s9 }
  0x21   :  { %s3711_s13 = sld [smem:[%s4281_s0 + %s3565_s28]]   ;;  %s3569_s28 = smov 25  }
  0x22   :  { %s3716_s9 = sld [smem:[%s4281_s0 + %s3566_s7]]   ;;  %s3570_s7 = smov 26  }
  0x23   :  { %4312 = sst [smem:[#allocation51_spill]] %s3701_s17 }
  0x24   :  { %4313 = sst [smem:[#allocation52_spill]] %s3706_s5 }
  0x25   :  { %s3721_s17 = sld [smem:[%s4281_s0 + %s3567_s15]]   ;;  %s3571_s15 = smov 27  }
  0x26   :  { %s3726_s5 = sld [smem:[%s4281_s0 + %s3568_s22]]   ;;  %s3572_s22 = smov 28  }
  0x27   :  { %4314 = sst [smem:[#allocation53_spill]] %s3711_s13 }
  0x28   :  { %4315 = sst [smem:[#allocation54_spill]] %s3716_s9 }
  0x29   :  { %s3731_s13 = sld [smem:[%s4281_s0 + %s3569_s28]]   ;;  %s3573_s28 = smov 29  }
  0x2a   :  { %s3736_s9 = sld [smem:[%s4281_s0 + %s3570_s7]]  }
  0x2b   :  { %4316 = sst [smem:[#allocation55_spill]] %s3721_s17 }
  0x2c   :  { %4317 = sst [smem:[#allocation56_spill]] %s3726_s5 }
  0x2d   :  { %s3741_s17 = sld [smem:[%s4281_s0 + %s3571_s15]]  }
  0x2e   :  { %s3746_s5 = sld [smem:[%s4281_s0 + %s3572_s22]]  }
  0x2f   :  { %4318 = sst [smem:[#allocation57_spill]] %s3731_s13 }
  0x30   :  { %4319 = sst [smem:[#allocation58_spill]] %s3736_s9 }
  0x31   :  { %s3751_s13 = sld [smem:[%s4281_s0 + %s3573_s28]]  }
  0x33   :  { %4320 = sst [smem:[#allocation59_spill]] %s3741_s17 }
  0x34   :  { %4321 = sst [smem:[#allocation60_spill]] %s3746_s5 }
  0x37   :  { %4322 = sst [smem:[#allocation61_spill]] %s3751_s13 }
  0x38   :  { %64 = vsyncpa [#allocation7], 0 }
  0x39   :  { %66 = vsyncpa [#allocation7 + $0x1], 0 }
  0x3a   :  { %67 = vsyncpa [#allocation10], 0 }
  0x3b   :  { %68 = vsyncpa [#allocation13], 0 }
  0x3c   :  { %69 = vsyncpa [#allocation16], 0 }
  0x3d   :  { %70 = vsyncpa [#allocation19], 0 }
  0x3e   :  { %71 = vsyncpa [#allocation22], 0 }
  0x3f   :  { %72 = vsyncpa [#allocation25], 0 }
  0x40   :  { %73 = vsyncpa [#allocation28], 0 }
  0x41   :  { %74 = vsyncpa [#allocation8], 0 }
  0x42   :  { %76 = vsyncpa [#allocation8 + $0x1], 0  ;;  %s3753_s7 = smov 0   ;;  %s3755_s10 = smov 0  }
  0x43   :  { %s3757_s11 = smov 0   ;;  %s3759_s15 = smov 0  }
  0x44   :  { %s3761_s0 = smov 0   ;;  %s3763_s16 = smov 0  }
  0x45 LB: > { %s4323_s12 = sld [smem:[#allocation48_spill]]  ;;  %s4286_s18 = sadd.s32 4294967295, %s3543_s16   ;;  %s3543_s16 = sphi %s3763_s16, %s82_s16   ;;  %s3539_s0 = sphi %s3761_s0, %s4369_s0   ;;  %s3535_s15 = sphi %s3759_s15, %s4368_s15   ;;  %s3531_s11 = sphi %s3757_s11, %s4367_s11   ;;  %s3527_s10 = sphi %s3755_s10, %s4366_s10   ;;  %s3523_s7 = sphi %s3753_s7, %s4365_s7  }
  0x46   : > { %s4324_s8 = sld [smem:[#allocation46_spill]]  ;;  %p2511_p0 = scmp.ge.s32.totalorder %s3543_s16, 1 }
  0x47   : > { %s4325_s6 = sld [smem:[#allocation47_spill]]  ;;  %p3787_p1 = scmp.eq.s32.totalorder %s4286_s18, 0 }
  0x48   : > { %s4326_s4 = sld [smem:[#allocation49_spill]]  ;;  %p751_p2 = scmp.lt.s32.totalorder %s3543_s16, 3 }
  0x49   : > { %s4327_s3 = sld [smem:[#allocation45_spill]]  ;;  %s3574_s28 = smov [#allocation9]  }
  0x4a   : > { %s4328_s21 = sld [smem:[#allocation44_spill]]  ;;  %p3793_p3 = pnand %p2511_p0, %p751_p2 }
  0x4b   : > { %4329 = sst [smem:[#allocation62_spill]] %s3535_s15  ;;  %s767_s1 = sshll.u32 %s3574_s28, 4  ;;  %s768_s1 = int_to_ptr.vmem [resolvable:$true] %s767_s1 }
  0x4c   : > { %s4330_s22 = scalar_select %p3787_p1, 1, 0 }
  0x4d   : > { %s4332_s26 = scalar_select %p3793_p3, 1, 0 }
  0x4e   : > { %4331 = sst [smem:[#allocation63_spill]] %s4330_s22  ;;  %p2745_p4 = pneg %p3793_p3 }
  0x4f   : > { %4333 = sst [smem:[#allocation64_spill]] %s4332_s26  ;;  %s793_s18 = sshll.u32 %s3636_s29, 4  ;;  %s3807_s18 = int_to_ptr.hbm [resolvable:$true] %s793_s18 }
  0x50   : > { %s765_s23 = sshll.u32 %s4328_s21, 4  ;;  %p3801_p5 = pnand %p2745_p4, %p3787_p1  ;;  %s766_s23 = int_to_ptr.hbm [resolvable:$true] %s765_s23 }
  0x51   : > { %s2983_s5 = sshra.s32 %s766_s23, 4  ;;  %s2990_s28 = scalar_lea.hbm %s4328_s21, 16  ;;  %s2984_s5 = int_to_ptr.hbm [resolvable:$true] %s2983_s5 }
  0x52   : > { %s2985_s13 = scalar_lea.hbm %s2984_s5, 16  ;;  %p3811_p8 = pneg %p3801_p5 }
  0x53   : > { %p2986_p7 = scmp.ne.s32.totalorder %s2984_s5, %s2985_s13  ;;  %p2991_p11 = scmp.lt.s32.totalorder %s2984_s5, %s4328_s21 }
  0x54   : > { %p2992_p12 = scmp.lt.s32.totalorder %s2990_s28, %s2985_s13 }
  0x55   : > { %p2988_p9 = pnand %p3811_p8, %p2986_p7 }
  0x56   : > { %p2993_p13 = por %p2992_p12, %p2991_p11 }
  0x57   : > { %p2989_p10 = pneg %p2988_p9 }
  0x59   : > { %p2994_p0 = pnand %p2993_p13, %p2989_p10 }
  0x5b   : > { %2997 = shalt.err (!%p2994_p0)
}
  0x5c   : > { %s3575_s9 = smov 64   ;;  %s3576_s15 = smov 4  }
  0x5d   : > { %2748 = dma.hbm_to_vmem [thread:$0]  (!%p3801_p5), %s766_s23, 256, %s768_s1, [#allocation10], %s3575_s9, %s3575_s9, %s3576_s15  }
  0x5e   : > { %s3577_s26 = smov [#allocation12]   ;;  %s820_s5 = sshll.u32 %s4324_s8, 4  ;;  %s3825_s5 = int_to_ptr.hbm [resolvable:$true] %s820_s5 }
  0x5f   : > { %s795_s22 = sshll.u32 %s3577_s26, 4  ;;  %s3013_s13 = sshra.s32 %s3807_s18, 4  ;;  %s796_s22 = int_to_ptr.vmem [resolvable:$true] %s795_s22  ;;  %s3014_s13 = int_to_ptr.hbm [resolvable:$true] %s3013_s13 }
  0x60   : > { %s3015_s28 = scalar_lea.hbm %s3014_s13, 16  ;;  %s3020_s21 = scalar_lea.hbm %s3636_s29, 16 }
  0x61   : > { %p3016_p2 = scmp.ne.s32.totalorder %s3014_s13, %s3015_s28  ;;  %p3021_p9 = scmp.lt.s32.totalorder %s3014_s13, %s3636_s29 }
  0x62   : > { %p3022_p10 = scmp.lt.s32.totalorder %s3020_s21, %s3015_s28 }
  0x63   : > { %p3018_p4 = pnand %p3016_p2, %p3811_p8 }
  0x64   : > { %p3023_p11 = por %p3022_p10, %p3021_p9 }
  0x65   : > { %p3019_p7 = pneg %p3018_p4 }
  0x67   : > { %p3024_p12 = pnand %p3023_p11, %p3019_p7 }
  0x69   : > { %3027 = shalt.err (!%p3024_p12)
}
  0x6a   : > { %2754 = dma.hbm_to_vmem [thread:$0]  (!%p3801_p5), %s3807_s18, 256, %s796_s22, [#allocation13], %s3575_s9, %s3575_s9, %s3576_s15  }
  0x6b   : > { %s844_s23 = sshll.u32 %s3656_s19, 4  ;;  %s3578_s26 = smov [#allocation15]   ;;  %s3839_s23 = int_to_ptr.hbm [resolvable:$true] %s844_s23 }
  0x6c   : > { %s822_s1 = sshll.u32 %s3578_s26, 4  ;;  %s3043_s21 = sshra.s32 %s3825_s5, 4  ;;  %s823_s1 = int_to_ptr.vmem [resolvable:$true] %s822_s1  ;;  %s3044_s21 = int_to_ptr.hbm [resolvable:$true] %s3043_s21 }
  0x6d   : > { %s3045_s13 = scalar_lea.hbm %s3044_s21, 1  ;;  %s3050_s28 = scalar_lea.hbm %s4324_s8, 1 }
  0x6e   : > { %p3046_p13 = scmp.ne.s32.totalorder %s3044_s21, %s3045_s13  ;;  %p3051_p4 = scmp.lt.s32.totalorder %s3044_s21, %s4324_s8 }
  0x6f   : > { %p3052_p7 = scmp.lt.s32.totalorder %s3050_s28, %s3045_s13 }
  0x70   : > { %p3048_p0 = pnand %p3046_p13, %p3811_p8 }
  0x71   : > { %p3053_p9 = por %p3052_p7, %p3051_p4 }
  0x72   : > { %p3049_p2 = pneg %p3048_p0 }
  0x74   : > { %p3054_p10 = pnand %p3053_p9, %p3049_p2 }
  0x76   : > { %3057 = shalt.err (!%p3054_p10)
}
  0x77   : > { %2760 = dma.hbm_to_vmem [thread:$0]  (!%p3801_p5), %s3825_s5, 16, %s823_s1, [#allocation16]  }
  0x78   : > { %s3579_s18 = smov [#allocation18]   ;;  %s869_s26 = sshll.u32 %s3666_s30, 4  ;;  %s3850_s26 = int_to_ptr.hbm [resolvable:$true] %s869_s26 }
  0x79   : > { %s846_s22 = sshll.u32 %s3579_s18, 4  ;;  %s3073_s21 = sshra.s32 %s3839_s23, 4  ;;  %s847_s22 = int_to_ptr.vmem [resolvable:$true] %s846_s22  ;;  %s3074_s21 = int_to_ptr.hbm [resolvable:$true] %s3073_s21 }
  0x7a   : > { %s3075_s13 = scalar_lea.hbm %s3074_s21, 1  ;;  %s3080_s28 = scalar_lea.hbm %s3656_s19, 1 }
  0x7b   : > { %p3076_p11 = scmp.ne.s32.totalorder %s3074_s21, %s3075_s13  ;;  %p3081_p0 = scmp.lt.s32.totalorder %s3074_s21, %s3656_s19 }
  0x7c   : > { %p3082_p2 = scmp.lt.s32.totalorder %s3080_s28, %s3075_s13 }
  0x7d   : > { %p3078_p12 = pnand %p3076_p11, %p3811_p8 }
  0x7e   : > { %p3083_p4 = por %p3082_p2, %p3081_p0 }
  0x7f   : > { %p3079_p13 = pneg %p3078_p12 }
  0x81   : > { %p3084_p7 = pnand %p3083_p4, %p3079_p13 }
  0x83   : > { %3087 = shalt.err (!%p3084_p7)
}
  0x84   : > { %2766 = dma.hbm_to_vmem [thread:$0]  (!%p3801_p5), %s3839_s23, 16, %s847_s22, [#allocation19]  }
  0x85   : > { %s897_s5 = sshll.u32 %s4323_s12, 4  ;;  %s3580_s1 = smov [#allocation21]   ;;  %s3861_s5 = int_to_ptr.hbm [resolvable:$true] %s897_s5 }
  0x86   : > { %s871_s18 = sshll.u32 %s3580_s1, 4  ;;  %s3103_s21 = sshra.s32 %s3850_s26, 4  ;;  %s872_s18 = int_to_ptr.vmem [resolvable:$true] %s871_s18  ;;  %s3104_s21 = int_to_ptr.hbm [resolvable:$true] %s3103_s21 }
  0x87   : > { %s3105_s13 = scalar_lea.hbm %s3104_s21, 16  ;;  %s3110_s28 = scalar_lea.hbm %s3666_s30, 16 }
  0x88   : > { %p3106_p9 = scmp.ne.s32.totalorder %s3104_s21, %s3105_s13  ;;  %p3111_p12 = scmp.lt.s32.totalorder %s3104_s21, %s3666_s30 }
  0x89   : > { %p3112_p13 = scmp.lt.s32.totalorder %s3110_s28, %s3105_s13 }
  0x8a   : > { %p3108_p10 = pnand %p3106_p9, %p3811_p8 }
  0x8b   : > { %p3113_p0 = por %p3112_p13, %p3111_p12 }
  0x8c   : > { %p3109_p11 = pneg %p3108_p10 }
  0x8e   : > { %p3114_p2 = pnand %p3113_p0, %p3109_p11 }
  0x90   : > { %3117 = shalt.err (!%p3114_p2)
}
  0x91   : > { %2772 = dma.hbm_to_vmem [thread:$0]  (!%p3801_p5), %s3850_s26, 256, %s872_s18, [#allocation22], %s3575_s9, %s3575_s9, %s3576_s15  }
  0x92   : > { %s3581_s23 = smov [#allocation24]   ;;  %s924_s1 = sshll.u32 %s3686_s27, 4  ;;  %s3875_s1 = int_to_ptr.hbm [resolvable:$true] %s924_s1 }
  0x93   : > { %s899_s22 = sshll.u32 %s3581_s23, 4  ;;  %s3133_s21 = sshra.s32 %s3861_s5, 4  ;;  %s900_s22 = int_to_ptr.vmem [resolvable:$true] %s899_s22  ;;  %s3134_s21 = int_to_ptr.hbm [resolvable:$true] %s3133_s21 }
  0x94   : > { %s3135_s13 = scalar_lea.hbm %s3134_s21, 16  ;;  %s3140_s28 = scalar_lea.hbm %s4323_s12, 16 }
  0x95   : > { %p3136_p4 = scmp.ne.s32.totalorder %s3134_s21, %s3135_s13  ;;  %p3141_p10 = scmp.lt.s32.totalorder %s3134_s21, %s4323_s12 }
  0x96   : > { %p3142_p11 = scmp.lt.s32.totalorder %s3140_s28, %s3135_s13 }
  0x97   : > { %p3138_p7 = pnand %p3136_p4, %p3811_p8 }
  0x98   : > { %p3143_p12 = por %p3142_p11, %p3141_p10 }
  0x99   : > { %p3139_p9 = pneg %p3138_p7 }
  0x9b   : > { %p3144_p13 = pnand %p3143_p12, %p3139_p9 }
  0x9d   : > { %3147 = shalt.err (!%p3144_p13)
}
  0x9e   : > { %2778 = dma.hbm_to_vmem [thread:$0]  (!%p3801_p5), %s3861_s5, 256, %s900_s22, [#allocation25], %s3575_s9, %s3575_s9, %s3576_s15  }
  0x9f   : > { %s779_s26 = sshll.u32 %s3631_s25, 4  ;;  %s3582_s18 = smov [#allocation27]   ;;  %s3889_s26 = int_to_ptr.hbm [resolvable:$true] %s779_s26 }
  0xa0   : > { %s926_s23 = sshll.u32 %s3582_s18, 4  ;;  %s3163_s21 = sshra.s32 %s3875_s1, 4  ;;  %s927_s23 = int_to_ptr.vmem [resolvable:$true] %s926_s23  ;;  %s3164_s21 = int_to_ptr.hbm [resolvable:$true] %s3163_s21 }
  0xa1   : > { %s3165_s13 = scalar_lea.hbm %s3164_s21, 1  ;;  %s3170_s28 = scalar_lea.hbm %s3686_s27, 1 }
  0xa2   : > { %p3166_p0 = scmp.ne.s32.totalorder %s3164_s21, %s3165_s13  ;;  %p3171_p7 = scmp.lt.s32.totalorder %s3164_s21, %s3686_s27 }
  0xa3   : > { %p3172_p9 = scmp.lt.s32.totalorder %s3170_s28, %s3165_s13 }
  0xa4   : > { %p3168_p2 = pnand %p3166_p0, %p3811_p8 }
  0xa5   : > { %p3173_p10 = por %p3172_p9, %p3171_p7 }
  0xa6   : > { %p3169_p4 = pneg %p3168_p2 }
  0xa8   : > { %p3174_p11 = pnand %p3173_p10, %p3169_p4 }
  0xaa   : > { %3177 = shalt.err (!%p3174_p11)
}
  0xab   : > { %2784 = dma.hbm_to_vmem [thread:$0]  (!%p3801_p5), %s3875_s1, 16, %s927_s23, [#allocation28]  }
  0xac   : > { %s3583_s5 = smov [#allocation11]   ;;  %s808_s18 = sshll.u32 %s4327_s3, 4  ;;  %s3900_s18 = int_to_ptr.hbm [resolvable:$true] %s808_s18 }
  0xad   : > { %s781_s22 = sshll.u32 %s3583_s5, 4  ;;  %s3193_s21 = sshra.s32 %s3889_s26, 4  ;;  %s782_s22 = int_to_ptr.vmem [resolvable:$true] %s781_s22  ;;  %s3194_s21 = int_to_ptr.hbm [resolvable:$true] %s3193_s21 }
  0xae   : > { %s3195_s13 = scalar_lea.hbm %s3194_s21, 16  ;;  %s3200_s28 = scalar_lea.hbm %s3631_s25, 16 }
  0xaf   : > { %p3196_p12 = scmp.ne.s32.totalorder %s3194_s21, %s3195_s13  ;;  %p3201_p2 = scmp.lt.s32.totalorder %s3194_s21, %s3631_s25 }
  0xb0   : > { %p3202_p4 = scmp.lt.s32.totalorder %s3200_s28, %s3195_s13 }
  0xb1   : > { %p3198_p13 = pnand %p3196_p12, %p3811_p8 }
  0xb2   : > { %p3203_p7 = por %p3202_p4, %p3201_p2 }
  0xb3   : > { %p3199_p0 = pneg %p3198_p13 }
  0xb5   : > { %p3204_p9 = pnand %p3203_p7, %p3199_p0 }
  0xb7   : > { %3207 = shalt.err (!%p3204_p9)
}
  0xb8   : > { %2751 = dma.hbm_to_vmem [thread:$0]  (!%p3801_p5), %s3889_s26, 256, %s782_s22, [#allocation10], %s3575_s9, %s3575_s9, %s3576_s15  }
  0xb9   : > { %s832_s1 = sshll.u32 %s3651_s14, 4  ;;  %s3584_s23 = smov [#allocation14]   ;;  %s3914_s1 = int_to_ptr.hbm [resolvable:$true] %s832_s1 }
  0xba   : > { %s810_s5 = sshll.u32 %s3584_s23, 4  ;;  %s3223_s21 = sshra.s32 %s3900_s18, 4  ;;  %s811_s5 = int_to_ptr.vmem [resolvable:$true] %s810_s5  ;;  %s3224_s21 = int_to_ptr.hbm [resolvable:$true] %s3223_s21 }
  0xbb   : > { %s3225_s13 = scalar_lea.hbm %s3224_s21, 1  ;;  %s3230_s28 = scalar_lea.hbm %s4327_s3, 1 }
  0xbc   : > { %p3226_p10 = scmp.ne.s32.totalorder %s3224_s21, %s3225_s13  ;;  %p3231_p13 = scmp.lt.s32.totalorder %s3224_s21, %s4327_s3 }
  0xbd   : > { %p3232_p0 = scmp.lt.s32.totalorder %s3230_s28, %s3225_s13 }
  0xbe   : > { %p3228_p11 = pnand %p3226_p10, %p3811_p8 }
  0xbf   : > { %p3233_p2 = por %p3232_p0, %p3231_p13 }
  0xc0   : > { %p3229_p12 = pneg %p3228_p11 }
  0xc2   : > { %p3234_p4 = pnand %p3233_p2, %p3229_p12 }
  0xc4   : > { %3237 = shalt.err (!%p3234_p4)
}
  0xc5   : > { %2757 = dma.hbm_to_vmem [thread:$0]  (!%p3801_p5), %s3900_s18, 16, %s811_s5, [#allocation13]  }
  0xc6   : > { %s3585_s26 = smov [#allocation17]   ;;  %s855_s23 = sshll.u32 %s3661_s24, 4  ;;  %s3925_s23 = int_to_ptr.hbm [resolvable:$true] %s855_s23 }
  0xc7   : > { %s834_s22 = sshll.u32 %s3585_s26, 4  ;;  %s3253_s21 = sshra.s32 %s3914_s1, 4  ;;  %s835_s22 = int_to_ptr.vmem [resolvable:$true] %s834_s22  ;;  %s3254_s21 = int_to_ptr.hbm [resolvable:$true] %s3253_s21 }
  0xc8   : > { %s3255_s13 = scalar_lea.hbm %s3254_s21, 1  ;;  %s3260_s28 = scalar_lea.hbm %s3651_s14, 1 }
  0xc9   : > { %p3256_p7 = scmp.ne.s32.totalorder %s3254_s21, %s3255_s13  ;;  %p3261_p11 = scmp.lt.s32.totalorder %s3254_s21, %s3651_s14 }
  0xca   : > { %p3262_p12 = scmp.lt.s32.totalorder %s3260_s28, %s3255_s13 }
  0xcb   : > { %p3258_p9 = pnand %p3256_p7, %p3811_p8 }
  0xcc   : > { %p3263_p13 = por %p3262_p12, %p3261_p11 }
  0xcd   : > { %p3259_p10 = pneg %p3258_p9 }
  0xcf   : > { %p3264_p0 = pnand %p3263_p13, %p3259_p10 }
  0xd1   : > { %3267 = shalt.err (!%p3264_p0)
}
  0xd2   : > { %2763 = dma.hbm_to_vmem [thread:$0]  (!%p3801_p5), %s3914_s1, 16, %s835_s22, [#allocation16]  }
  0xd3   : > { %s883_s18 = sshll.u32 %s4325_s6, 4  ;;  %s3586_s5 = smov [#allocation20]   ;;  %s3936_s18 = int_to_ptr.hbm [resolvable:$true] %s883_s18 }
  0xd4   : > { %s857_s26 = sshll.u32 %s3586_s5, 4  ;;  %s3283_s21 = sshra.s32 %s3925_s23, 4  ;;  %s858_s26 = int_to_ptr.vmem [resolvable:$true] %s857_s26  ;;  %s3284_s21 = int_to_ptr.hbm [resolvable:$true] %s3283_s21 }
  0xd5   : > { %s3285_s13 = scalar_lea.hbm %s3284_s21, 16  ;;  %s3290_s28 = scalar_lea.hbm %s3661_s24, 16 }
  0xd6   : > { %p3286_p2 = scmp.ne.s32.totalorder %s3284_s21, %s3285_s13  ;;  %p3291_p9 = scmp.lt.s32.totalorder %s3284_s21, %s3661_s24 }
  0xd7   : > { %p3292_p10 = scmp.lt.s32.totalorder %s3290_s28, %s3285_s13 }
  0xd8   : > { %p3288_p4 = pnand %p3286_p2, %p3811_p8 }
  0xd9   : > { %p3293_p11 = por %p3292_p10, %p3291_p9 }
  0xda   : > { %p3289_p7 = pneg %p3288_p4 }
  0xdc   : > { %p3294_p12 = pnand %p3293_p11, %p3289_p7 }
  0xde   : > { %3297 = shalt.err (!%p3294_p12)
}
  0xdf   : > { %2769 = dma.hbm_to_vmem [thread:$0]  (!%p3801_p5), %s3925_s23, 256, %s858_s26, [#allocation19], %s3575_s9, %s3575_s9, %s3576_s15  }
  0xe0   : > { %s3587_s1 = smov [#allocation23]   ;;  %s912_s5 = sshll.u32 %s3681_s20, 4  ;;  %s3950_s5 = int_to_ptr.hbm [resolvable:$true] %s912_s5 }
  0xe1   : > { %s885_s22 = sshll.u32 %s3587_s1, 4  ;;  %s3313_s21 = sshra.s32 %s3936_s18, 4  ;;  %s886_s22 = int_to_ptr.vmem [resolvable:$true] %s885_s22  ;;  %s3314_s21 = int_to_ptr.hbm [resolvable:$true] %s3313_s21 }
  0xe2   : > { %s3315_s13 = scalar_lea.hbm %s3314_s21, 16  ;;  %s3320_s28 = scalar_lea.hbm %s4325_s6, 16 }
  0xe3   : > { %p3316_p13 = scmp.ne.s32.totalorder %s3314_s21, %s3315_s13  ;;  %p3321_p4 = scmp.lt.s32.totalorder %s3314_s21, %s4325_s6 }
  0xe4   : > { %p3322_p7 = scmp.lt.s32.totalorder %s3320_s28, %s3315_s13 }
  0xe5   : > { %p3318_p0 = pnand %p3316_p13, %p3811_p8 }
  0xe6   : > { %p3323_p9 = por %p3322_p7, %p3321_p4 }
  0xe7   : > { %p3319_p2 = pneg %p3318_p0 }
  0xe9   : > { %p3324_p10 = pnand %p3323_p9, %p3319_p2 }
  0xeb   : > { %3327 = shalt.err (!%p3324_p10)
}
  0xec   : > { %2775 = dma.hbm_to_vmem [thread:$0]  (!%p3801_p5), %s3936_s18, 256, %s886_s22, [#allocation22], %s3575_s9, %s3575_s9, %s3576_s15  }
  0xed   : > { %s936_s23 = sshll.u32 %s4326_s4, 4  ;;  %s3588_s26 = smov [#allocation26]   ;;  %s3964_s23 = int_to_ptr.hbm [resolvable:$true] %s936_s23 }
  0xee   : > { %s914_s1 = sshll.u32 %s3588_s26, 4  ;;  %s3343_s21 = sshra.s32 %s3950_s5, 4  ;;  %s915_s1 = int_to_ptr.vmem [resolvable:$true] %s914_s1  ;;  %s3344_s21 = int_to_ptr.hbm [resolvable:$true] %s3343_s21 }
  0xef   : > { %s3345_s13 = scalar_lea.hbm %s3344_s21, 1  ;;  %s3350_s28 = scalar_lea.hbm %s3681_s20, 1 }
  0xf0   : > { %p3346_p11 = scmp.ne.s32.totalorder %s3344_s21, %s3345_s13  ;;  %p3351_p0 = scmp.lt.s32.totalorder %s3344_s21, %s3681_s20 }
  0xf1   : > { %p3352_p2 = scmp.lt.s32.totalorder %s3350_s28, %s3345_s13 }
  0xf2   : > { %p3348_p12 = pnand %p3346_p11, %p3811_p8 }
  0xf3   : > { %p3353_p4 = por %p3352_p2, %p3351_p0 }
  0xf4   : > { %p3349_p13 = pneg %p3348_p12 }
  0xf6   : > { %p3354_p7 = pnand %p3353_p4, %p3349_p13 }
  0xf8   : > { %3357 = shalt.err (!%p3354_p7)
}
  0xf9   : > { %2781 = dma.hbm_to_vmem [thread:$0]  (!%p3801_p5), %s3950_s5, 16, %s915_s1, [#allocation25]  }
  0xfa   : > { %s3589_s9 = smov [#allocation29]   ;;  %s3373_s18 = sshra.s32 %s3964_s23, 4  ;;  %s3374_s18 = int_to_ptr.hbm [resolvable:$true] %s3373_s18 }
  0xfb   : > { %s938_s15 = sshll.u32 %s3589_s9, 4  ;;  %s3375_s22 = scalar_lea.hbm %s3374_s18, 1  ;;  %s939_s15 = int_to_ptr.vmem [resolvable:$true] %s938_s15 }
  0xfc   : > { %p3376_p9 = scmp.ne.s32.totalorder %s3374_s18, %s3375_s22  ;;  %s3380_s26 = scalar_lea.hbm %s4326_s4, 1 }
  0xfd   : > { %p3381_p12 = scmp.lt.s32.totalorder %s3374_s18, %s4326_s4  ;;  %p3382_p13 = scmp.lt.s32.totalorder %s3380_s26, %s3375_s22 }
  0xfe   : > { %p3378_p10 = pnand %p3376_p9, %p3811_p8 }
  0xff   : > { %p3383_p0 = por %p3382_p13, %p3381_p12 }
 0x100   : > { %p3379_p11 = pneg %p3378_p10 }
 0x102   : > { %p3384_p2 = pnand %p3383_p0, %p3379_p11 }
 0x104   : > { %3387 = shalt.err (!%p3384_p2)
}
 0x105   : > { %2787 = dma.hbm_to_vmem [thread:$0]  (!%p3801_p5), %s3964_s23, 16, %s939_s15, [#allocation28]  }
 0x106   : > { %s2510_s5 = sadd.s32 4294967294, %s3543_s16   ;;  %s94_s1 = sadd.s32 1, %s3539_s0 }
 0x107   : > { %p96_p8 = scmp.ge.s32.totalorder %s94_s1, 2  ;;  %s153_s2 = sadd.s32 1, %s3531_s11 }
 0x108   : > { %s4337_s21 = sld [smem:[#allocation42_spill]]  ;;  %p160_p4 = scmp.ne.s32.totalorder %s3531_s11, %s3527_s10 }
 0x109   : > { %p161_p7 = scmp.eq.s32.totalorder %s3543_s16, 0  ;;  %s4371_s1 = smov (%p96_p8, %s94_s1), 0 }
 0x10a   : > { %p166_p10 = scmp.ne.s32.totalorder %s3527_s10, %s3523_s7  ;;  %s150_s23 = ssub.s32 %s3539_s0, %s4371_s1 }
 0x10b   : > { %p3990_p9 = por %p161_p7, %p160_p4  ;;  %s4339_s28 = sadd.s32 4294967295, %s3543_s16  }
 0x10c   : > { %p738_p5 = scmp.eq.s32.totalorder %s4339_s28, 1  ;;  %p151_p11 = scmp.eq.s32.totalorder %s150_s23, 0 }
 0x10d   : > { %p4002_p12 = por %p3787_p1, %p166_p10  ;;  %p744_p0 = scmp.eq.s32.totalorder %s2510_s5, 1 }
 0x10e   : > { %p4006_p13 = por %p738_p5, %p160_p4  ;;  %p2810_p8 = scmp.lt.s32.totalorder %s3543_s16, 2 }
 0x10f   : > { %s4011_s18 = scalar_select %p151_p11, %s3531_s11, %s153_s2  }
 0x110   : > { %s4341_s15 = scalar_select %p4006_p13, 1, 0 }
 0x111   : > { %p4013_p2 = por %p744_p0, %p166_p10  ;;  %s996_s26 = sand.u32 1, %s3531_s11  }
 0x112   : > { %s1002_s23 = scalar_lea.hbm %s4337_s21, %s3539_s0  ;;  %s999_s28 = scalar_lea.vmem [#allocation6], %s996_s26 }
 0x113   : > { %s4342_s22 = scalar_select %p4013_p2, 1, 0 }
 0x114   : > { %s1004_s17 = sshll.u32 %s1002_s23, 4  ;;  %s1006_s3 = sshll.u32 %s999_s28, 4  ;;  %s1005_s17 = int_to_ptr.hbm [resolvable:$true] %s1004_s17  ;;  %s1007_s3 = int_to_ptr.vmem [resolvable:$true] %s1006_s3 }
 0x115   : > { %p4023_p4 = pnand %p2810_p8, %p3990_p9  ;;  %s997_s5 = scalar_lea.sflag [#allocation7], %s996_s26 }
 0x116   : > { %s3403_s2 = sshra.s32 %s1005_s17, 4  ;;  %s3410_s23 = scalar_lea.hbm %s4337_s21, 2  ;;  %s3404_s2 = int_to_ptr.hbm [resolvable:$true] %s3403_s2 }
 0x117   : > { %s3405_s6 = scalar_lea.hbm %s3404_s2, 1  ;;  %p3407_p10 = pneg %p4023_p4 }
 0x118   : > { %p3406_p7 = scmp.ne.s32.totalorder %s3404_s2, %s3405_s6  ;;  %p3411_p0 = scmp.lt.s32.totalorder %s3404_s2, %s4337_s21 }
 0x119   : > { %p3412_p6 = scmp.lt.s32.totalorder %s3410_s23, %s3405_s6 }
 0x11a   : > { %p3408_p5 = pnand %p3407_p10, %p3406_p7 }
 0x11b   : > { %p3413_p2 = por %p3412_p6, %p3411_p0 }
 0x11c   : > { %p3409_p11 = pneg %p3408_p5 }
 0x11e   : > { %p3414_p13 = pnand %p3413_p2, %p3409_p11 }
 0x120   : > { %3417 = shalt.err (!%p3414_p13)
}
 0x121   : > { %2791 = dma.hbm_to_vmem [thread:$0]  (!%p4023_p4), %s1005_s17, 16, %s1007_s3, %s997_s5  }
 0x122   : > { %1015 = sbr.rel (%p3793_p3) target bundleno = 3480 (0xd98), region = 136  ;;  %s4036_s26 = sand.u32 (!%p3793_p3), 1, %s3527_s10  }
 0x123   : > { %s1018_s28 = scalar_lea.sflag (!%p3793_p3), [#allocation7], %s4036_s26  ;;  %s1020_s8 = scalar_lea.vmem (!%p3793_p3), [#allocation6], %s4036_s26 }
 0x127   : > { %3486 = dma.done.wait (%p4002_p12), %s1018_s28, 16  }
 0x128   : > { %3488 = vsyncadd (%p4002_p12), %s1018_s28, 4294967280 }
 0x129   : > { %3490 = dma.done.wait (%p3787_p1), [#allocation10], 512  }
 0x12a   : > { %3492 = vsyncadd (%p3787_p1), [#allocation10], 4294966784 }
 0x12b   : > { %3494 = dma.done.wait (%p3787_p1), [#allocation13], 272  }
 0x12c   : > { %3496 = vsyncadd (%p3787_p1), [#allocation13], 4294967024 }
 0x12d   : > { %3498 = dma.done.wait (%p3787_p1), [#allocation16], 32  }
 0x12e   : > { %3500 = vsyncadd (%p3787_p1), [#allocation16], 4294967264 }
 0x12f   : > { %3502 = dma.done.wait (%p3787_p1), [#allocation19], 272  }
 0x130   : > { %3504 = vsyncadd (%p3787_p1), [#allocation19], 4294967024 }
 0x131   : > { %3506 = dma.done.wait (%p3787_p1), [#allocation22], 512  }
 0x132   : > { %3508 = vsyncadd (%p3787_p1), [#allocation22], 4294966784 }
 0x133   : > { %3510 = dma.done.wait (%p3787_p1), [#allocation25], 272  }
 0x134   : > { %3512 = vsyncadd (%p3787_p1), [#allocation25], 4294967024 }
 0x135   : > { %3514 = dma.done.wait (%p3787_p1), [#allocation28], 32  }
 0x136   : > { %3516 = vsyncadd (%p3787_p1), [#allocation28], 4294967264  ;;  %s4346_s3 = sld [smem:[#allocation62_spill]]  ;;  %v2664_v0 = vld [vmem:[#allocation9 + $0x8] sm:$0xff]  ;;  %v2663_v1 = vld [vmem:[#allocation9] sm:$0xff]  ;;  %vm1210_vm0 = vcmask 261120   ;;  %v1393_v55 = vlaneseq }
 0x137   : > { %s4347_s4 = sld [smem:[#allocation40_spill]]  ;;  %v2666_v3 = vld [vmem:[#allocation11 + $0x8] sm:$0xff]  ;;  %1220 = vmatpush.bf16.msra.mxu0 %v2664_v0  ;;  %v2665_v7 = vld [vmem:[#allocation11] sm:$0xff]  ;;  %v2667_v10 = vld [vmem:[#allocation21] sm:$0xff]  ;;  %vm1340_vm1 = vcmask 60416   ;;  %s3590_s23 = smov 104  }
 0x138   : > { %s4348_s9 = sld [smem:[#allocation43_spill]]  ;;  %1253 = vmatpush.bf16.msra.mxu1 %v2666_v3  ;;  %v2927_v8 = vld [vmem:[#allocation15] ss:$0 sm:$0xff]  ;;  %s3591_s13 = smov 120   ;;  %vm1452_vm2 = vcmask 64512   ;;  %v2670_v24 = vld [vmem:[#allocation23 + $0x8] sm:$0xff] }
 0x139   : > { %v2668_v9 = vld [vmem:[#allocation21 + $0x8] sm:$0xff]  ;;  %s4349_s28 = sld [smem:[#allocation41_spill]]  ;;  %s3592_s6 = smov 112   ;;  %1322 = vmatpush.bf16.msra.mxu3 %v2670_v24  ;;  %v2669_v25 = vld [vmem:[#allocation23] sm:$0xff]  ;;  %v1394_v56 = vshrl.u32 %v1393_v55, 7  ;;  %v1398_v57 = vand.u32 127, %v1393_v55 }
 0x13a   : > { %1289 = vmatpush.bf16.msra.mxu2 %v2668_v9  ;;  %v2928_v17 = vld [vmem:[#allocation14] ss:$0 sm:$0xff]  ;;  %v2929_v26 = vld [vmem:[#allocation17] ss:$0 sm:$0xff]  ;;  %v2930_v45 = vld [vmem:[#allocation27] ss:$0 sm:$0xff] }
 0x13b   : > { %1221 = vmatpush.bf16.msra.mxu0 %v2663_v1  ;;  %v2931_v49 = vld [vmem:[#allocation29] ss:$0 sm:$0xff]  ;;  %vm1399_vm3 = vcmp.ge.s32.totalorder %v1394_v56, %v1398_v57  ;;  %vm1590_vm4 = vcmask 1043456   ;;  %vm1677_vm5 = vcmask 130048   ;;  %vm1679_vm6 = vcmask 195584   ;;  %p4362_p6 = scmp.ne.s32.totalorder %s4341_s15, 0 }
 0x13c   : > { %p1173_p3 = scmp.lt.s32.totalorder %s4346_s3, 1  ;;  %1254 = vmatpush.bf16.msra.mxu1 %v2665_v7 }
 0x13d   : > { %1323 = vmatpush.bf16.msra.mxu3 %v2669_v25 }
 0x13e   : > { %s4074_s17 = scalar_select %p1173_p3, %s4346_s3, 1  ;;  %v2672_v4 = vld [vmem:[%s4348_s9 + $0x8] sm:$0xff]  ;;  %v2671_v6 = vld [vmem:[%s4348_s9] sm:$0xff]  ;;  %1290 = vmatpush.bf16.msra.mxu2 %v2667_v10 }
 0x13f   : > { %1433 = vmatpush.bf16.msrb.mxu0 %v2672_v4 }
 0x140   : > { %s2543_s5 = sshll.u32 %s4074_s17, 3  ;;  %s3593_s17 = smov 8  }
 0x141   : > { %s1176_s2 = scalar_lea.vmem %s4347_s4, %s2543_s5  ;;  %s1180_s4 = scalar_lea.vmem %s4349_s28, %s2543_s5 }
 0x142   : > { %v4080_v2 = vld [vmem:[%s1176_s2] sm:$0xff]  ;;  %s3594_s5 = smov 16   ;;  %s3595_s2 = smov 24  }
 0x143   : > { %v1187_v5 = vpack.c.bf16 %v4080_v2, %v4080_v2  ;;  %1434 = vmatpush.bf16.msrb.mxu0 %v2671_v6  ;;  %v1188_v22 = vld [vmem:[%s1180_s4] sm:$0xff]  ;;  %s4350_s28 = sld [smem:[#allocation55_spill]] }
 0x144   : > { %v1189_v23 = vpack.c.bf16 %v1188_v22, %v1188_v22  ;;  %s4351_s4 = sld [smem:[#allocation56_spill]] }
 0x145   : > { %2553 = vmatmul.msk.bf16.vlgmr.msra.gmra.mxu0 %vm1210_vm0, %v1187_v5  ;;  %2562 = vmatmul.msk.bf16.vlgmr.msra.gmra.mxu1 %vm1210_vm0, %v1187_v5 }
 0x146   : > { %2571 = vmatmul.msk.bf16.vlgmr.msra.gmra.mxu2 %vm1210_vm0, %v1189_v23  ;;  %2580 = vmatmul.msk.bf16.vlgmr.msra.gmra.mxu3 %vm1210_vm0, %v1189_v23 }
 0x155   : > { %2589 = vmatmul.msk.bf16.vlgmr.msrb.gmra.mxu0 %vm1210_vm0, %v1187_v5 }
 0x1c2   : > { %v1223_v11 = vpop.f32.mrf.mxu0  ;;  %v1256_v27 = vpop.f32.mrf.mxu1 }
 0x1c3   : > { %v1224_v12 = vadd.f32 %v2927_v8, %v1223_v11  ;;  %v1257_v28 = vadd.f32 %v2929_v26, %v1256_v27 }
 0x1c5   : > { %v1329_v13 = vpack.c.bf16 %v1224_v12, %v1224_v12  ;;  %v4103_v29 = vpack.c.bf16 %v1257_v28, %v1257_v28 }
 0x1c7   : > { %1341 = vst.msk [vmem:[#allocation2] sm:$0xf] %vm1340_vm1, %v1329_v13  ;;  %1337 = vrot.lane.b32.xlu1 %v1329_v13, %s3590_s23  ;;  %1331 = vrot.lane.b32.xlu0 %v1329_v13, %s3591_s13 }
 0x1c8   : > { %1356 = vst.msk [vmem:[#allocation3] sm:$0xf] %vm1340_vm1, %v4103_v29 }
 0x1c9   : > { %v1292_v46 = vpop.f32.mrf.mxu2  ;;  %v1325_v50 = vpop.f32.mrf.mxu3 }
 0x1ca   : > { %v1225_v14 = vpop.f32.mrf.mxu0  ;;  %v1258_v30 = vpop.f32.mrf.mxu1  ;;  %v1293_v47 = vadd.f32 %v2930_v45, %v1292_v46  ;;  %v1326_v52 = vadd.f32 %v2931_v49, %v1325_v50 }
 0x1cc   : > { %v4116_v48 = vpack.c.bf16 %v1293_v47, %v1293_v47  ;;  %v4120_v53 = vpack.c.bf16 %v1326_v52, %v1326_v52 }
 0x1ce   : > { %v1448_v15 = vld [vmem:[#allocation2] sm:$0xf]  ;;  %1371 = vst.msk [vmem:[#allocation4] sm:$0xf] %vm1340_vm1, %v4116_v48 }
 0x1cf   : > { %1334 = vrot.lane.b32.xlu0 %v1329_v13, %s3592_s6  ;;  %v1457_v16 = vsel %vm1452_vm2, %v1448_v15, 0  ;;  %1386 = vst.msk [vmem:[#allocation5] sm:$0xf] %vm1340_vm1, %v4120_v53  ;;  %v1583_v9 = vld [vmem:[#allocation3] sm:$0xf] }
 0x1d0   : > { %1466 = vmatpush.bf16.xpose.msrb.mxu1 %v1457_v16  ;;  %v1592_v10 = vsel %vm1590_vm4, %v1583_v9, 0 }
 0x1d1   : > { %v1294_v51 = vpop.f32.mrf.mxu2  ;;  %v1327_v54 = vpop.f32.mrf.mxu3 }
 0x1d2   : > { %v1436_v18 = vpop.f32.mrf.mxu0 }
 0x1d3   : > { %v1437_v19 = vadd.f32 %v2928_v17, %v1436_v18 }
 0x1d5   : > { %v1440_v20 = vpack.c.bf16 %v1437_v19, %v1437_v19 }
 0x1d6   : > { %v1938_v52 = vld [vmem:[#allocation5] sm:$0xf] }
 0x1d7   : > { %1444 = vrot.lane.b32.xlu2 %v1440_v20, %s3592_s6  ;;  %1442 = vrot.lane.b32.xlu1 %v1440_v20, %s3591_s13  ;;  %v1946_v55 = vsel %vm1590_vm4, %v1938_v52, 0 }
 0x1d8   : > { %2590 = vmatmul.msk.bf16.vlgmr.msrb.gmra.mxu1 %vm1452_vm2, %v1440_v20 }
 0x1d9   : > { %1601 = vmatpush.bf16.msra.mxu1 %v1592_v10  ;;  %v2674_v10 = vld [vmem:[#allocation12 + $0x8] sm:$0xff] }
 0x1da   : > { %v1438_v21 = vpop.f32.mrf.mxu0 }
 0x1dd   : > { %1711 = vmatpush.bf16.msrb.mxu1 %v2674_v10 }
 0x1df   : > { %1446 = vrot.lane.b32.xlu2 %v1440_v20, %s3590_s23 }
 0x231   : > { %v1445_v33 = vpop.permute.xlu2 %1444 }
 0x239   : > { %v1338_v31 = vpop.permute.xlu1 %1337  ;;  %v1332_v32 = vpop.permute.xlu0 %1331 }
 0x23a   : > { %1344 = vst.msk [vmem:[#allocation2 + $0xc] sm:$0xf] %vm1340_vm1, %v1338_v31  ;;  %v1447_v39 = vpop.permute.xlu2 %1446  ;;  %v1803_v31 = vld [vmem:[#allocation4] sm:$0xf] }
 0x23b   : > { %1342 = vst.msk [vmem:[#allocation2 + $0x4] sm:$0xf] %vm1340_vm1, %v1332_v32 }
 0x241   : > { %v1451_v34 = vld [vmem:[#allocation2 + $0xc] sm:$0xf]  ;;  %v1335_v35 = vpop.permute.xlu0 %1334 }
 0x242   : > { %v1449_v36 = vld [vmem:[#allocation2 + $0x4] sm:$0xf]  ;;  %v1514_v37 = vsel %vm1452_vm2, %v1451_v34, 0  ;;  %1343 = vst.msk [vmem:[#allocation2 + $0x8] sm:$0xf] %vm1340_vm1, %v1335_v35  ;;  %v1811_v35 = vsel %vm1452_vm2, %v1803_v31, 0 }
 0x243   : > { %v1476_v38 = vsel %vm1452_vm2, %v1449_v36, 0  ;;  %1523 = vmatpush.bf16.xpose.msra.mxu0 %v1514_v37 }
 0x244   : > { %1485 = vmatpush.bf16.xpose.msrb.mxu2 %v1476_v38 }
 0x249   : > { %v1443_v40 = vpop.permute.xlu1 %1442  ;;  %v1450_v41 = vld [vmem:[#allocation2 + $0x8] sm:$0xf] }
 0x24a   : > { %2593 = vmatmul.msk.bf16.vlgmr.msra.gmra.mxu0 %vm1452_vm2, %v1447_v39  ;;  %v1495_v42 = vsel %vm1452_vm2, %v1450_v41, 0 }
 0x24b   : > { %2591 = vmatmul.msk.bf16.vlgmr.msrb.gmra.mxu2 %vm1452_vm2, %v1443_v40  ;;  %1504 = vmatpush.bf16.xpose.msrb.mxu3 %v1495_v42 }
 0x252   : > { %2592 = vmatmul.msk.bf16.vlgmr.msrb.gmra.mxu3 %vm1452_vm2, %v1445_v33 }
 0x255   : > { %v1468_v43 = vpop.f32.mrf.mxu1 }
 0x256   : > { %v1531_v61 = vsel %vm1399_vm3, %v1468_v43, -1e+09 }
 0x257   : > { %v1535_v3 = vsel %vm1452_vm2, %v1531_v61, -inf }
 0x25d   : > { %v1470_v44 = vpop.f32.mrf.mxu1 }
 0x2c7   : > { %v1525_v58 = vpop.f32.mrf.mxu0 }
 0x2c8   : > { %v1534_v59 = vsel %vm1399_vm3, %v1525_v58, -1e+09 }
 0x2c9   : > { %v1544_v60 = vsel %vm1452_vm2, %v1534_v59, -inf }
 0x2ca   : > { %1545 = vmax.xlane.f32.xlu2 %v1544_v60 }
 0x2ce   : > { %v1487_v62 = vpop.f32.mrf.mxu2 }
 0x2cf   : > { %v1532_v63 = vsel %vm1399_vm3, %v1487_v62, -1e+09  ;;  %v1527_v0 = vpop.f32.mrf.mxu0 }
 0x2d0   : > { %v1538_v1 = vsel %vm1452_vm2, %v1532_v63, -inf }
 0x2d1   : > { %1539 = vmax.xlane.f32.xlu0 %v1538_v1 }
 0x2d2   : > { %1536 = vmax.xlane.f32.xlu2 %v1535_v3 }
 0x2d5   : > { %v1506_v5 = vpop.f32.mrf.mxu3 }
 0x2d6   : > { %v1489_v4 = vpop.f32.mrf.mxu2  ;;  %v1533_v6 = vsel %vm1399_vm3, %v1506_v5, -1e+09 }
 0x2d7   : > { %v1541_v7 = vsel %vm1452_vm2, %v1533_v6, -inf }
 0x2d8   : > { %1542 = vmax.xlane.f32.xlu1 %v1541_v7 }
 0x2dd   : > { %v1508_v8 = vpop.f32.mrf.mxu3 }
 0x2e5   : > { %1347 = vrot.lane.b32.xlu0 %v4103_v29, %s3591_s13 }
 0x2ea   : > { %1350 = vrot.lane.b32.xlu2 %v4103_v29, %s3592_s6 }
 0x33d   : > { %v1546_v11 = vpop.xlane.xlu2 %1545 }
 0x33e   : > { %v1550_v12 = vsub.f32 %v1534_v59, %v1546_v11  ;;  %v2673_v11 = vld [vmem:[#allocation12] sm:$0xff] }
 0x33f   : > { %1712 = vmatpush.bf16.msrb.mxu1 %v2673_v11 }
 0x340   : > { %v1557_v13 = vmul.f32 1.442695, %v1550_v12 }
 0x342   : > { %2943 = vpow2.f32 %v1557_v13 }
 0x344   : > { %v1540_v14 = vpop.xlane.xlu0 %1539 }
 0x345   : > { %v1548_v15 = vsub.f32 %v1532_v63, %v1540_v14  ;;  %v1537_v16 = vpop.xlane.xlu2 %1536 }
 0x346   : > { %v1547_v17 = vsub.f32 %v1531_v61, %v1537_v16 }
 0x347   : > { %v1553_v18 = vmul.f32 1.442695, %v1548_v15 }
 0x348   : > { %v2944_v19 = vpop.eup %2943  ;;  %v1551_v20 = vmul.f32 1.442695, %v1547_v17 }
 0x349   : > { %2945 = vpow2.f32 %v1553_v18  ;;  %v1568_v21 = vsel %vm1452_vm2, %v2944_v19, 0.0 }
 0x34a   : > { %2947 = vpow2.f32 %v1551_v20  ;;  %1569 = vadd.xlane.f32.xlu0 %v1568_v21 }
 0x34b   : > { %v1543_v22 = vpop.xlane.xlu1 %1542 }
 0x34c   : > { %v1549_v23 = vsub.f32 %v1533_v6, %v1543_v22 }
 0x34d   : > { %v1351_v24 = vpop.permute.xlu2 %1350 }
 0x34e   : > { %1358 = vst.msk [vmem:[#allocation3 + $0x8] sm:$0xf] %vm1340_vm1, %v1351_v24  ;;  %v1555_v26 = vmul.f32 1.442695, %v1549_v23 }
 0x34f   : > { %v2946_v25 = vpop.eup %2945 }
 0x350   : > { %v2948_v27 = vpop.eup %2947  ;;  %v1562_v28 = vsel %vm1452_vm2, %v2946_v25, 0.0  ;;  %2949 = vpow2.f32 %v1555_v26 }
 0x351   : > { %1563 = vadd.xlane.f32.xlu1 %v1562_v28  ;;  %v1559_v30 = vsel %vm1452_vm2, %v2948_v27, 0.0 }
 0x352   : > { %1560 = vadd.xlane.f32.xlu2 %v1559_v30  ;;  %v2676_v30 = vld [vmem:[#allocation20 + $0x8] sm:$0xff] }
 0x355   : > { %v1585_v32 = vld [vmem:[#allocation3 + $0x8] sm:$0xf] }
 0x356   : > { %v1630_v33 = vsel %vm1590_vm4, %v1585_v32, 0  ;;  %v2950_v34 = vpop.eup %2949 }
 0x357   : > { %1639 = vmatpush.bf16.msra.mxu3 %v1630_v33  ;;  %v1348_v36 = vpop.permute.xlu0 %1347  ;;  %v1565_v37 = vsel %vm1452_vm2, %v2950_v34, 0.0 }
 0x358   : > { %1357 = vst.msk [vmem:[#allocation3 + $0x4] sm:$0xf] %vm1340_vm1, %v1348_v36 }
 0x359   : > { %1566 = vadd.xlane.f32.xlu1 %v1565_v37 }
 0x35b   : > { %1820 = vmatpush.bf16.xpose.msrb.mxu3 %v1811_v35 }
 0x35f   : > { %v1584_v38 = vld [vmem:[#allocation3 + $0x4] sm:$0xf] }
 0x360   : > { %v1611_v39 = vsel %vm1590_vm4, %v1584_v38, 0 }
 0x361   : > { %1620 = vmatpush.bf16.msra.mxu2 %v1611_v39 }
 0x365   : > { %1788 = vmatpush.bf16.msrb.mxu2 %v2676_v30 }
 0x36a   : > { %1362 = vrot.lane.b32.xlu2 %v4116_v48, %s3591_s13 }
 0x372   : > { %1353 = vrot.lane.b32.xlu1 %v4103_v29, %s3590_s23 }
 0x3bd   : > { %v1570_v56 = vpop.xlane.xlu0 %1569 }
 0x3c4   : > { %v1564_v40 = vpop.xlane.xlu1 %1563 }
 0x3c5   : > { %2951 = vrcp.f32 %v1564_v40  ;;  %v1561_v41 = vpop.xlane.xlu2 %1560 }
 0x3c6   : > { %2953 = vrcp.f32 %v1561_v41 }
 0x3cb   : > { %v2952_v42 = vpop.eup %2951 }
 0x3cc   : > { %v2954_v43 = vpop.eup %2953  ;;  %v1576_v44 = vmul.f32 %v2952_v42, %v2946_v25  ;;  %v1567_v45 = vpop.xlane.xlu1 %1566  ;;  %v3596_v25 = vmov 32.0  }
 0x3cd   : > { %v1575_v46 = vmul.f32 %v2954_v43, %v2948_v27  ;;  %2955 = vrcp.f32 %v1567_v45  ;;  %v1363_v47 = vpop.permute.xlu2 %1362 }
 0x3ce   : > { %v1580_v49 = vpack.c.bf16 %v1576_v44, %v1576_v44  ;;  %1372 = vst.msk [vmem:[#allocation4 + $0x4] sm:$0xf] %vm1340_vm1, %v1363_v47  ;;  %2957 = vrcp.f32 %v1570_v56  ;;  %v2934_v56 = vld [vmem:[%s4351_s4] ss:$0 sm:$0xff]  ;;  %s4360_s4 = sld [smem:[#allocation61_spill]] }
 0x3cf   : > { %v1579_v50 = vpack.c.bf16 %v1575_v46, %v1575_v46  ;;  %2959 = vrcp.f32 %v3596_v25 }
 0x3d0   : > { %2595 = vmatmul.msk.bf16.vlgmr.msra.gmra.mxu2 %vm1452_vm2, %v1580_v49 }
 0x3d1   : > { %2594 = vmatmul.msk.bf16.vlgmr.msra.gmra.mxu1 %vm1452_vm2, %v1579_v50 }
 0x3d3   : > { %v2956_v29 = vpop.eup %2955 }
 0x3d4   : > { %v1577_v51 = vmul.f32 %v2956_v29, %v2950_v34  ;;  %v2958_v58 = vpop.eup %2957 }
 0x3d5   : > { %v1578_v59 = vmul.f32 %v2958_v58, %v2944_v19  ;;  %v1804_v60 = vld [vmem:[#allocation4 + $0x4] sm:$0xf]  ;;  %v2932_v19 = vld [vmem:[#allocation18] ss:$0 sm:$0xff]  ;;  %v2960_v26 = vpop.eup %2959 }
 0x3d6   : > { %v1581_v54 = vpack.c.bf16 %v1577_v51, %v1577_v51  ;;  %v1830_v63 = vsel %vm1452_vm2, %v1804_v60, 0  ;;  %v1723_v27 = vmul.f32 32.0, %v2960_v26  ;;  %vm1727_vm7 = vweird.f32 %v2960_v26 }
 0x3d7   : > { %v1582_v0 = vpack.c.bf16 %v1578_v59, %v1578_v59 }
 0x3d8   : > { %2596 = vmatmul.msk.bf16.vlgmr.msra.gmra.mxu3 %vm1452_vm2, %v1581_v54  ;;  %v1724_v28 = vsub.f32 1.0, %v1723_v27  ;;  %v2933_v54 = vld [vmem:[%s4350_s28] ss:$0 sm:$0xff]  ;;  %s4359_s28 = sld [smem:[#allocation59_spill]] }
 0x3d9   : > { %1955 = vmatpush.bf16.msra.mxu3 %v1946_v55 }
 0x3da   : > { %v1725_v31 = vmul.f32 %v2960_v26, %v1724_v28 }
 0x3dc   : > { %v1726_v32 = vadd.f32 %v2960_v26, %v1725_v31 }
 0x3de   : > { %v4168_v33 = vsel %vm1727_vm7, %v2960_v26, %v1726_v32 }
 0x3e4   : > { %v1354_v57 = vpop.permute.xlu1 %1353 }
 0x3e5   : > { %1359 = vst.msk [vmem:[#allocation3 + $0xc] sm:$0xf] %vm1340_vm1, %v1354_v57 }
 0x3ec   : > { %v1586_v61 = vld [vmem:[#allocation3 + $0xc] sm:$0xf] }
 0x3ed   : > { %v1649_v62 = vsel %vm1590_vm4, %v1586_v61, 0  ;;  %v2935_v61 = vld [vmem:[#allocation26] ss:$0 sm:$0xff] }
 0x3ee   : > { %1658 = vmatpush.bf16.msrb.mxu0 %v1649_v62 }
 0x3f1   : > { %2597 = vmatmul.msk.bf16.vlgmr.msrb.gmra.mxu0 %vm1452_vm2, %v1582_v0 }
 0x3f2   : > { %1839 = vmatpush.bf16.xpose.msra.mxu0 %v1830_v63 }
 0x44e   : > { %v1603_v1 = vpop.f32.mrf.mxu1 }
 0x453   : > { %v1622_v3 = vpop.f32.mrf.mxu2 }
 0x454   : > { %1665 = vrot.lane.b32.xlu1 %v1622_v3, %s3593_s17 }
 0x456   : > { %v1605_v4 = vpop.f32.mrf.mxu1 }
 0x45b   : > { %v1624_v5 = vpop.f32.mrf.mxu2  ;;  %v1641_v6 = vpop.f32.mrf.mxu3 }
 0x45c   : > { %1669 = vrot.lane.b32.xlu1 %v1641_v6, %s3594_s5 }
 0x463   : > { %v1643_v7 = vpop.f32.mrf.mxu3 }
 0x46e   : > { %v1660_v8 = vpop.f32.mrf.mxu0 }
 0x46f   : > { %1673 = vrot.lane.b32.xlu1 %v1660_v8, %s3595_s2  ;;  %v1400_v8 = vld [vmem:[%s1020_s8] sm:$0x1]  ;;  %s4352_s8 = sld [smem:[#allocation50_spill]] }
 0x470   : > { %vm1401_vm11 = vcmp.gt.f32.partialorder %v1400_v8, 0.0 }
 0x476   : > { %v1662_v9 = vpop.f32.mrf.mxu0 }
 0x477   : > { %v3597_v9 = vmov 0  }
 0x478   : > { %v1883_v10 = vsel %vm1401_vm11, 1, %v3597_v9 }
 0x479   : > { %v1884_v11 = vperm.slane %v1883_v10, 0 }
 0x47b   : > { %vm1885_vm12 = vcmp.eq.s32.totalorder %v1884_v11, 1 }
 0x4c6   : > { %v1666_v12 = vpop.permute.xlu1 %1665 }
 0x4c7   : > { %v1676_v14 = vsel %vm1452_vm2, %v1603_v1, %v1666_v12 }
 0x4ce   : > { %v1670_v13 = vpop.permute.xlu1 %1669 }
 0x4cf   : > { %v1678_v15 = vsel %vm1677_vm5, %v1676_v14, %v1670_v13 }
 0x4e1   : > { %v1674_v16 = vpop.permute.xlu1 %1673 }
 0x4e2   : > { %v1680_v17 = vsel %vm1679_vm6, %v1678_v15, %v1674_v16 }
 0x4e3   : > { %v1681_v18 = vpack.c.bf16 %v1680_v17, %v1680_v17 }
 0x4e5   : > { %2606 = vmatmul.msk.bf16.vlgmr.msrb.gmra.mxu1 %vm1210_vm0, %v1681_v18 }
 0x562   : > { %v1714_v20 = vpop.f32.mrf.mxu1 }
 0x563   : > { %v1715_v21 = vadd.f32 %v2932_v19, %v1714_v20 }
 0x565   : > { %v1718_v22 = vadd.f32 %v1715_v21, %v4080_v2  ;;  %v2675_v2 = vld [vmem:[#allocation20] sm:$0xff] }
 0x566   : > { %1789 = vmatpush.bf16.msrb.mxu2 %v2675_v2 }
 0x567   : > { %v1719_v23 = vsel %vm1210_vm0, %v1718_v22, 0.0 }
 0x568   : > { %1720 = vadd.xlane.f32.xlu0 %v1719_v23 }
 0x56a   : > { %v1716_v24 = vpop.f32.mrf.mxu1 }
 0x57c   : > { %1368 = vrot.lane.b32.xlu0 %v4116_v48, %s3590_s23 }
 0x584   : > { %1365 = vrot.lane.b32.xlu0 %v4116_v48, %s3592_s6 }
 0x5db   : > { %v1721_v34 = vpop.xlane.xlu0 %1720 }
 0x5dc   : > { %v1729_v35 = vmul.f32 %v4168_v33, %v1721_v34 }
 0x5de   : > { %v1730_v36 = vsub.f32 %v1718_v22, %v1729_v35 }
 0x5e0   : > { %v1731_v37 = vmul.f32 %v1730_v36, %v1730_v36 }
 0x5e2   : > { %v1732_v48 = vsel %vm1210_vm0, %v1731_v37, 0.0 }
 0x5e3   : > { %1733 = vadd.xlane.f32.xlu1 %v1732_v48 }
 0x5ee   : > { %v1369_v38 = vpop.permute.xlu0 %1368 }
 0x5ef   : > { %1374 = vst.msk [vmem:[#allocation4 + $0xc] sm:$0xf] %vm1340_vm1, %v1369_v38 }
 0x5f6   : > { %v1366_v39 = vpop.permute.xlu0 %1365  ;;  %v1806_v40 = vld [vmem:[#allocation4 + $0xc] sm:$0xf] }
 0x5f7   : > { %1373 = vst.msk [vmem:[#allocation4 + $0x8] sm:$0xf] %vm1340_vm1, %v1366_v39  ;;  %v1868_v41 = vsel %vm1452_vm2, %v1806_v40, 0 }
 0x5f8   : > { %1877 = vmatpush.bf16.xpose.msra.mxu2 %v1868_v41 }
 0x5fe   : > { %v1805_v42 = vld [vmem:[#allocation4 + $0x8] sm:$0xf] }
 0x5ff   : > { %v1849_v43 = vsel %vm1452_vm2, %v1805_v42, 0 }
 0x600   : > { %1858 = vmatpush.bf16.xpose.msra.mxu1 %v1849_v43 }
 0x656   : > { %v1734_v44 = vpop.xlane.xlu1 %1733 }
 0x657   : > { %v1735_v45 = vmul.f32 %v1734_v44, %v4168_v33 }
 0x659   : > { %v1736_v46 = vadd.f32 1e-05, %v1735_v45 }
 0x65b   : > { %2961 = vrsqrt.f32 %v1736_v46  ;;  %vm1743_vm9 = vweird.f32 %v1736_v46 }
 0x661   : > { %v2962_v47 = vpop.eup %2961 }
 0x662   : > { %v1738_v49 = vmul.f32 %v2962_v47, %v1736_v46  ;;  %vm1744_vm8 = vweird.f32 %v2962_v47 }
 0x663   : > { %vm1745_vm10 = vmor %vm1743_vm9, %vm1744_vm8 }
 0x664   : > { %v1739_v50 = vmul.f32 %v2962_v47, %v1738_v49 }
 0x666   : > { %v1740_v29 = vmul.f32 0.5, %v1739_v50 }
 0x668   : > { %v1741_v51 = vsub.f32 1.5, %v1740_v29 }
 0x66a   : > { %v1742_v52 = vmul.f32 %v2962_v47, %v1741_v51 }
 0x66c   : > { %v1746_v55 = vsel %vm1745_vm10, %v2962_v47, %v1742_v52 }
 0x66d   : > { %v1747_v57 = vmul.f32 %v1746_v55, %v1730_v36 }
 0x66f   : > { %v1752_v58 = vmul.f32 %v2933_v54, %v1747_v57 }
 0x671   : > { %v4179_v59 = vadd.f32 %v2934_v56, %v1752_v58 }
 0x673   : > { %v1758_v60 = vpack.c.bf16 %v4179_v59, %v4179_v59 }
 0x675   : > { %2615 = vmatmul.msk.bf16.vlgmr.msrb.gmra.mxu2 %vm1210_vm0, %v1758_v60 }
 0x6f8   : > { %v1791_v62 = vpop.f32.mrf.mxu2 }
 0x6f9   : > { %v1792_v63 = vadd.f32 %v2935_v61, %v1791_v62 }
 0x6fb   : > { %v1795_v0 = vpack.c.bf16 %v1792_v63, %v1792_v63 }
 0x6fd   : > { %1797 = vrot.lane.b32.xlu0 %v1795_v0, %s3591_s13  ;;  %1801 = vrot.lane.b32.xlu2 %v1795_v0, %s3590_s23 }
 0x6fe   : > { %2616 = vmatmul.msk.bf16.vlgmr.msrb.gmra.mxu3 %vm1452_vm2, %v1795_v0 }
 0x700   : > { %v1793_v1 = vpop.f32.mrf.mxu2 }
 0x705   : > { %1799 = vrot.lane.b32.xlu2 %v1795_v0, %s3592_s6 }
 0x757   : > { %v1802_v3 = vpop.permute.xlu2 %1801 }
 0x758   : > { %2619 = vmatmul.msk.bf16.vlgmr.msra.gmra.mxu2 %vm1452_vm2, %v1802_v3 }
 0x75f   : > { %v1800_v4 = vpop.permute.xlu2 %1799 }
 0x760   : > { %2618 = vmatmul.msk.bf16.vlgmr.msra.gmra.mxu1 %vm1452_vm2, %v1800_v4 }
 0x76f   : > { %v1798_v5 = vpop.permute.xlu0 %1797 }
 0x770   : > { %2617 = vmatmul.msk.bf16.vlgmr.msra.gmra.mxu0 %vm1452_vm2, %v1798_v5 }
 0x781   : > { %v1822_v6 = vpop.f32.mrf.mxu3 }
 0x782   : > { %v1886_v23 = vsel %vm1885_vm12, %v1822_v6, -1e+09 }
 0x783   : > { %v1890_v25 = vsel %vm1452_vm2, %v1886_v23, -inf }
 0x789   : > { %v1824_v7 = vpop.f32.mrf.mxu3 }
 0x7db   : > { %v1879_v12 = vpop.f32.mrf.mxu2 }
 0x7dc   : > { %v1889_v13 = vsel %vm1885_vm12, %v1879_v12, -1e+09 }
 0x7dd   : > { %v1860_v14 = vpop.f32.mrf.mxu1  ;;  %v1899_v15 = vsel %vm1452_vm2, %v1889_v13, -inf }
 0x7de   : > { %v1888_v16 = vsel %vm1885_vm12, %v1860_v14, -1e+09  ;;  %1900 = vmax.xlane.f32.xlu0 %v1899_v15 }
 0x7df   : > { %v1896_v17 = vsel %vm1452_vm2, %v1888_v16, -inf }
 0x7e0   : > { %1897 = vmax.xlane.f32.xlu2 %v1896_v17  ;;  %v2678_v17 = vld [vmem:[#allocation24 + $0x8] sm:$0xff] }
 0x7e1   : > { %2063 = vmatpush.bf16.msrb.mxu3 %v2678_v17 }
 0x7e3   : > { %v1881_v18 = vpop.f32.mrf.mxu2 }
 0x7e4   : > { %v2677_v18 = vld [vmem:[#allocation24] sm:$0xff] }
 0x7e5   : > { %v1862_v19 = vpop.f32.mrf.mxu1  ;;  %2064 = vmatpush.bf16.msrb.mxu3 %v2677_v18 }
 0x7ed   : > { %v1841_v20 = vpop.f32.mrf.mxu0 }
 0x7ee   : > { %v1887_v21 = vsel %vm1885_vm12, %v1841_v20, -1e+09 }
 0x7ef   : > { %v1893_v22 = vsel %vm1452_vm2, %v1887_v21, -inf }
 0x7f0   : > { %1894 = vmax.xlane.f32.xlu1 %v1893_v22 }
 0x7f5   : > { %v1843_v24 = vpop.f32.mrf.mxu0 }
 0x7f8   : > { %1891 = vmax.xlane.f32.xlu1 %v1890_v25 }
 0x811   : > { %1383 = vrot.lane.b32.xlu1 %v4120_v53, %s3590_s23  ;;  %s4353_s23 = sld [smem:[#allocation51_spill]] }
 0x819   : > { %1377 = vrot.lane.b32.xlu1 %v4120_v53, %s3591_s13  ;;  %s4354_s13 = sld [smem:[#allocation53_spill]] }
 0x851   : > { %v1901_v26 = vpop.xlane.xlu0 %1900 }
 0x852   : > { %v1905_v27 = vsub.f32 %v1889_v13, %v1901_v26  ;;  %v2936_v26 = vld [vmem:[%s4352_s8] ss:$0 sm:$0xff]  ;;  %s4361_s8 = sld [smem:[#allocation60_spill]] }
 0x853   : > { %v1898_v28 = vpop.xlane.xlu2 %1897 }
 0x854   : > { %v1912_v30 = vmul.f32 1.442695, %v1905_v27  ;;  %v1904_v31 = vsub.f32 %v1888_v16, %v1898_v28 }
 0x856   : > { %2963 = vpow2.f32 %v1912_v30  ;;  %v1910_v32 = vmul.f32 1.442695, %v1904_v31 }
 0x858   : > { %2965 = vpow2.f32 %v1910_v32 }
 0x85c   : > { %v2964_v2 = vpop.eup %2963 }
 0x85d   : > { %v1923_v34 = vsel %vm1452_vm2, %v2964_v2, 0.0 }
 0x85e   : > { %v2966_v35 = vpop.eup %2965  ;;  %1924 = vadd.xlane.f32.xlu0 %v1923_v34 }
 0x85f   : > { %v1920_v36 = vsel %vm1452_vm2, %v2966_v35, 0.0 }
 0x860   : > { %1921 = vadd.xlane.f32.xlu1 %v1920_v36 }
 0x863   : > { %v1895_v37 = vpop.xlane.xlu1 %1894 }
 0x864   : > { %v1903_v48 = vsub.f32 %v1887_v21, %v1895_v37 }
 0x866   : > { %v1908_v38 = vmul.f32 1.442695, %v1903_v48  ;;  %v2680_v48 = vld [vmem:[%s4353_s23 + $0x8] sm:$0xff] }
 0x868   : > { %2967 = vpow2.f32 %v1908_v38  ;;  %v2679_v38 = vld [vmem:[%s4353_s23] sm:$0xff] }
 0x86b   : > { %v1892_v39 = vpop.xlane.xlu1 %1891 }
 0x86c   : > { %v1902_v40 = vsub.f32 %v1886_v23, %v1892_v39  ;;  %v2684_v39 = vld [vmem:[%s4354_s13 + $0x18] sm:$0xff] }
 0x86e   : > { %v2968_v41 = vpop.eup %2967  ;;  %v1906_v42 = vmul.f32 1.442695, %v1902_v40 }
 0x86f   : > { %v1917_v43 = vsel %vm1452_vm2, %v2968_v41, 0.0 }
 0x870   : > { %2969 = vpow2.f32 %v1906_v42  ;;  %1918 = vadd.xlane.f32.xlu2 %v1917_v43 }
 0x872   : > { %1380 = vrot.lane.b32.xlu0 %v4120_v53, %s3592_s6  ;;  %s4355_s6 = sld [smem:[#allocation57_spill]] }
 0x876   : > { %v2970_v44 = vpop.eup %2969 }
 0x877   : > { %v1914_v45 = vsel %vm1452_vm2, %v2970_v44, 0.0 }
 0x878   : > { %1915 = vadd.xlane.f32.xlu2 %v1914_v45 }
 0x883   : > { %v1384_v46 = vpop.permute.xlu1 %1383 }
 0x884   : > { %1389 = vst.msk [vmem:[#allocation5 + $0xc] sm:$0xf] %vm1340_vm1, %v1384_v46 }
 0x88b   : > { %v1378_v47 = vpop.permute.xlu1 %1377  ;;  %v1941_v49 = vld [vmem:[#allocation5 + $0xc] sm:$0xf] }
 0x88c   : > { %1387 = vst.msk [vmem:[#allocation5 + $0x4] sm:$0xf] %vm1340_vm1, %v1378_v47  ;;  %v2003_v50 = vsel %vm1590_vm4, %v1941_v49, 0 }
 0x88d   : > { %2012 = vmatpush.bf16.msrb.mxu2 %v2003_v50  ;;  %v2937_v50 = vld [vmem:[%s4355_s6] ss:$0 sm:$0xff]  ;;  %s2542_s6 = sshll.u32 %s4036_s26, 3 }
 0x893   : > { %v1939_v29 = vld [vmem:[#allocation5 + $0x4] sm:$0xf] }
 0x894   : > { %v1965_v51 = vsel %vm1590_vm4, %v1939_v29, 0 }
 0x895   : > { %1974 = vmatpush.bf16.msrb.mxu0 %v1965_v51 }
 0x899   : > { %2133 = vmatpush.bf16.msra.mxu0 %v2680_v48 }
 0x89d   : > { %2134 = vmatpush.bf16.msra.mxu0 %v2679_v38 }
 0x8d1   : > { %v1925_v52 = vpop.xlane.xlu0 %1924 }
 0x8d2   : > { %2971 = vrcp.f32 %v1925_v52 }
 0x8d3   : > { %v1922_v56 = vpop.xlane.xlu1 %1921 }
 0x8d4   : > { %2973 = vrcp.f32 %v1922_v56  ;;  %v2682_v56 = vld [vmem:[%s4354_s13 + $0x8] sm:$0xff] }
 0x8d8   : > { %v2972_v53 = vpop.eup %2971 }
 0x8d9   : > { %v1933_v54 = vmul.f32 %v2972_v53, %v2964_v2 }
 0x8da   : > { %v2974_v60 = vpop.eup %2973 }
 0x8db   : > { %v1937_v55 = vpack.c.bf16 %v1933_v54, %v1933_v54  ;;  %v1932_v62 = vmul.f32 %v2974_v60, %v2966_v35 }
 0x8dd   : > { %2623 = vmatmul.msk.bf16.vlgmr.msrb.gmra.mxu2 %vm1452_vm2, %v1937_v55  ;;  %v1936_v5 = vpack.c.bf16 %v1932_v62, %v1932_v62 }
 0x8e3   : > { %v1919_v57 = vpop.xlane.xlu2 %1918 }
 0x8e4   : > { %2975 = vrcp.f32 %v1919_v57  ;;  %v1381_v58 = vpop.permute.xlu0 %1380  ;;  %v2681_v57 = vld [vmem:[%s4354_s13] sm:$0xff] }
 0x8e5   : > { %1388 = vst.msk [vmem:[#allocation5 + $0x8] sm:$0xf] %vm1340_vm1, %v1381_v58  ;;  %vm2178_vm1 = vcmask 523264  }
 0x8ea   : > { %v2976_v61 = vpop.eup %2975 }
 0x8eb   : > { %v1931_v63 = vmul.f32 %v2976_v61, %v2968_v41  ;;  %v1916_v0 = vpop.xlane.xlu2 %1915  ;;  %v2683_v41 = vld [vmem:[%s4354_s13 + $0x10] sm:$0xff] }
 0x8ec   : > { %2977 = vrcp.f32 %v1916_v0  ;;  %v1940_v1 = vld [vmem:[#allocation5 + $0x8] sm:$0xf] }
 0x8ed   : > { %v1935_v3 = vpack.c.bf16 %v1931_v63, %v1931_v63  ;;  %v1984_v4 = vsel %vm1590_vm4, %v1940_v1, 0 }
 0x8ee   : > { %1993 = vmatpush.bf16.msrb.mxu1 %v1984_v4 }
 0x8ef   : > { %2621 = vmatmul.msk.bf16.vlgmr.msrb.gmra.mxu0 %vm1452_vm2, %v1935_v3 }
 0x8f1   : > { %2622 = vmatmul.msk.bf16.vlgmr.msrb.gmra.mxu1 %vm1452_vm2, %v1936_v5 }
 0x8f2   : > { %v2978_v6 = vpop.eup %2977  ;;  %2186 = vmatpush.bf16.msra.mxu1 %v2684_v39 }
 0x8f3   : > { %v1930_v7 = vmul.f32 %v2978_v6, %v2970_v44 }
 0x8f5   : > { %v1934_v8 = vpack.c.bf16 %v1930_v7, %v1930_v7 }
 0x8f6   : > { %2187 = vmatpush.bf16.msra.mxu1 %v2683_v41 }
 0x8f7   : > { %2620 = vmatmul.msk.bf16.vlgmr.msra.gmra.mxu3 %vm1452_vm2, %v1934_v8 }
 0x8fa   : > { %2188 = vmatpush.bf16.msra.mxu1 %v2682_v56 }
 0x8fe   : > { %2189 = vmatpush.bf16.msra.mxu1 %v2681_v57 }
 0x960   : > { %v2014_v9 = vpop.f32.mrf.mxu2 }
 0x968   : > { %v2016_v10 = vpop.f32.mrf.mxu2 }
 0x96c   : > { %v1976_v11 = vpop.f32.mrf.mxu0 }
 0x96d   : > { %2019 = vrot.lane.b32.xlu2 %v1976_v11, %s3593_s17  ;;  %s4356_s17 = sld [smem:[#allocation58_spill]] }
 0x96e   : > { %v1995_v12 = vpop.f32.mrf.mxu1 }
 0x96f   : > { %2023 = vrot.lane.b32.xlu0 %v1995_v12, %s3594_s5  ;;  %s4357_s5 = sld [smem:[#allocation52_spill]] }
 0x973   : > { %v2938_v51 = vld [vmem:[%s4356_s17] ss:$0 sm:$0xff]  ;;  %s2660_s17 = sshll.u32 %s4346_s3, 3  ;;  %s2230_s3 = scalar_lea.sflag [#allocation8], %s4036_s26 }
 0x974   : > { %v1978_v13 = vpop.f32.mrf.mxu0 }
 0x975   : > { %v2939_v58 = vld [vmem:[%s4357_s5] ss:$0 sm:$0xff]  ;;  %s2241_s5 = scalar_lea.hbm %s4360_s4, %s2660_s17 }
 0x976   : > { %v1997_v14 = vpop.f32.mrf.mxu1  ;;  %s2245_s12 = sshll.u32 %s2241_s5, 4  ;;  %s2246_s12 = int_to_ptr.hbm [resolvable:$true] %s2245_s12 }
 0x977   : > { %2027 = vrot.lane.b32.xlu0 %v2014_v9, %s3595_s2  ;;  %s4358_s2 = sld [smem:[#allocation54_spill]]  ;;  %s3447_s13 = sshra.s32 %s2246_s12, 4  ;;  %s3448_s13 = int_to_ptr.hbm [resolvable:$true] %s3447_s13 }
 0x978   : > { %p3454_p13 = scmp.lt.s32.totalorder %s3448_s13, %s4360_s4 }
 0x97a   : > { %v1957_v15 = vpop.f32.mrf.mxu3 }
 0x97d   : > { %v2940_v1 = vld [vmem:[%s4358_s2] ss:$0 sm:$0xff]  ;;  %s1172_s2 = scalar_lea.vmem [#allocation30], %s2542_s6 }
 0x97e   : > { %s2243_s9 = sshll.u32 %s1172_s2, 4  ;;  %s2244_s9 = int_to_ptr.vmem [resolvable:$true] %s2243_s9 }
 0x982   : > { %v1959_v16 = vpop.f32.mrf.mxu3 }
 0x9c7   : > { %v2020_v20 = vpop.permute.xlu2 %2019 }
 0x9c8   : > { %v2030_v21 = vsel %vm1452_vm2, %v1957_v15, %v2020_v20 }
 0x9e1   : > { %v2024_v19 = vpop.permute.xlu0 %2023 }
 0x9e2   : > { %v2031_v22 = vsel %vm1677_vm5, %v2030_v21, %v2024_v19 }
 0x9e9   : > { %v2028_v23 = vpop.permute.xlu0 %2027 }
 0x9ea   : > { %v2032_v24 = vsel %vm1679_vm6, %v2031_v22, %v2028_v23  ;;  %v2941_v22 = vld [vmem:[%s4359_s28] ss:$0 sm:$0xff]  ;;  %s3449_s28 = scalar_lea.hbm %s3448_s13, 8 }
 0x9eb   : > { %v2033_v25 = vpack.c.bf16 %v2032_v24, %v2032_v24  ;;  %v2942_v24 = vld [vmem:[%s4361_s8] ss:$0 sm:$0xff]  ;;  %p3450_p1 = scmp.ne.s32.totalorder %s3448_s13, %s3449_s28  ;;  %s3453_s8 = scalar_lea.hbm %s4360_s4, 16 }
 0x9ec   : > { %p3455_p2 = scmp.lt.s32.totalorder %s3453_s8, %s3449_s28 }
 0x9ed   : > { %2632 = vmatmul.msk.bf16.vlgmr.msrb.gmra.mxu3 %vm1210_vm0, %v2033_v25  ;;  %p3451_p9 = pnand %p3450_p1, %p4362_p6 }
 0x9ee   : > { %p3456_p8 = por %p3455_p2, %p3454_p13 }
 0x9ef   : > { %p3452_p12 = pneg %p3451_p9 }
 0x9f1   : > { %p3457_p4 = pnand %p3456_p8, %p3452_p12 }
 0xa70   : > { %v2066_v27 = vpop.f32.mrf.mxu3 }
 0xa71   : > { %v2067_v28 = vadd.f32 %v2936_v26, %v2066_v27 }
 0xa73   : > { %v2070_v30 = vadd.f32 %v2067_v28, %v4179_v59 }
 0xa75   : > { %v2071_v31 = vsel %vm1210_vm0, %v2070_v30, 0.0 }
 0xa76   : > { %2072 = vadd.xlane.f32.xlu0 %v2071_v31 }
 0xa78   : > { %v2068_v32 = vpop.f32.mrf.mxu3 }
 0xae9   : > { %v2073_v2 = vpop.xlane.xlu0 %2072 }
 0xaea   : > { %v2074_v34 = vmul.f32 %v2073_v2, %v4168_v33 }
 0xaec   : > { %v2075_v35 = vsub.f32 %v2070_v30, %v2074_v34 }
 0xaee   : > { %v2076_v36 = vmul.f32 %v2075_v35, %v2075_v35 }
 0xaf0   : > { %v2077_v37 = vsel %vm1210_vm0, %v2076_v36, 0.0 }
 0xaf1   : > { %2078 = vadd.xlane.f32.xlu2 %v2077_v37 }
 0xb64   : > { %v2079_v59 = vpop.xlane.xlu2 %2078 }
 0xb65   : > { %v2080_v40 = vmul.f32 %v2079_v59, %v4168_v33 }
 0xb67   : > { %v2081_v42 = vadd.f32 1e-05, %v2080_v40 }
 0xb69   : > { %2979 = vrsqrt.f32 %v2081_v42  ;;  %vm2088_vm14 = vweird.f32 %v2081_v42 }
 0xb6f   : > { %v2980_v43 = vpop.eup %2979 }
 0xb70   : > { %v2083_v44 = vmul.f32 %v2980_v43, %v2081_v42  ;;  %vm2089_vm13 = vweird.f32 %v2980_v43 }
 0xb71   : > { %vm2090_vm15 = vmor %vm2088_vm14, %vm2089_vm13 }
 0xb72   : > { %v2084_v45 = vmul.f32 %v2980_v43, %v2083_v44 }
 0xb74   : > { %v2085_v46 = vmul.f32 0.5, %v2084_v45 }
 0xb76   : > { %v2086_v47 = vsub.f32 1.5, %v2085_v46 }
 0xb78   : > { %v2087_v49 = vmul.f32 %v2980_v43, %v2086_v47 }
 0xb7a   : > { %v2091_v29 = vsel %vm2090_vm15, %v2980_v43, %v2087_v49 }
 0xb7b   : > { %v2092_v52 = vmul.f32 %v2091_v29, %v2075_v35 }
 0xb7d   : > { %v2097_v53 = vmul.f32 %v2937_v50, %v2092_v52 }
 0xb7f   : > { %v2102_v54 = vadd.f32 %v2938_v51, %v2097_v53 }
 0xb81   : > { %v2103_v55 = vpack.c.bf16 %v2102_v54, %v2102_v54 }
 0xb83   : > { %2641 = vmatmul.msk.bf16.vlgmr.msra.gmra.mxu0 %vm1210_vm0, %v2103_v55 }
 0xc00   : > { %v2136_v60 = vpop.f32.mrf.mxu0 }
 0xc01   : > { %v2137_v61 = vadd.f32 %v2939_v58, %v2136_v60 }
 0xc03   : > { %v2140_v62 = vmax.f32 %v2137_v61, 0.0 }
 0xc05   : > { %v2141_v63 = vpack.c.bf16 %v2140_v62, %v2140_v62 }
 0xc07   : > { %2658 = vmatmul.msk.bf16.vlgmr.msra.gmra.mxu1 %vm2178_vm1, %v2141_v63 }
 0xc08   : > { %v2138_v0 = vpop.f32.mrf.mxu0 }
 0xc84   : > { %v2191_v3 = vpop.f32.mrf.mxu1 }
 0xc85   : > { %v2192_v4 = vadd.f32 %v2940_v1, %v2191_v3 }
 0xc87   : > { %v2195_v5 = vadd.f32 %v2192_v4, %v2102_v54 }
 0xc89   : > { %v2196_v6 = vsel %vm1210_vm0, %v2195_v5, 0.0 }
 0xc8a   : > { %2197 = vadd.xlane.f32.xlu1 %v2196_v6 }
 0xc8c   : > { %v2193_v7 = vpop.f32.mrf.mxu1 }
 0xcfd   : > { %v2198_v8 = vpop.xlane.xlu1 %2197 }
 0xcfe   : > { %v2199_v9 = vmul.f32 %v2198_v8, %v4168_v33 }
 0xd00   : > { %v2200_v10 = vsub.f32 %v2195_v5, %v2199_v9 }
 0xd02   : > { %v2201_v11 = vmul.f32 %v2200_v10, %v2200_v10 }
 0xd04   : > { %v2202_v12 = vsel %vm1210_vm0, %v2201_v11, 0.0 }
 0xd05   : > { %2203 = vadd.xlane.f32.xlu1 %v2202_v12 }
 0xd78   : > { %v2204_v13 = vpop.xlane.xlu1 %2203 }
 0xd79   : > { %v2205_v14 = vmul.f32 %v2204_v13, %v4168_v33 }
 0xd7b   : > { %v2206_v15 = vadd.f32 1e-05, %v2205_v14 }
 0xd7d   : > { %2981 = vrsqrt.f32 %v2206_v15  ;;  %vm2213_vm3 = vweird.f32 %v2206_v15 }
 0xd83   : > { %v2982_v16 = vpop.eup %2981 }
 0xd84   : > { %v2208_v17 = vmul.f32 %v2982_v16, %v2206_v15  ;;  %vm2214_vm2 = vweird.f32 %v2982_v16 }
 0xd85   : > { %vm2215_vm4 = vmor %vm2213_vm3, %vm2214_vm2 }
 0xd86   : > { %v2209_v18 = vmul.f32 %v2982_v16, %v2208_v17 }
 0xd88   : > { %v2210_v19 = vmul.f32 0.5, %v2209_v18 }
 0xd8a   : > { %v2211_v20 = vsub.f32 1.5, %v2210_v19 }
 0xd8c   : > { %v2212_v21 = vmul.f32 %v2982_v16, %v2211_v20 }
 0xd8e   : > { %v2216_v23 = vsel %vm2215_vm4, %v2982_v16, %v2212_v21 }
 0xd8f   : > { %v2217_v33 = vmul.f32 %v2216_v23, %v2200_v10 }
 0xd91   : > { %v2222_v25 = vmul.f32 %v2941_v22, %v2217_v33 }
 0xd93   : > { %v2227_v26 = vadd.f32 %v2942_v24, %v2222_v25 }
 0xd95   : > { %2228 = vst.msk [vmem:[%s1172_s2] sm:$0xff] %vm1210_vm0, %v2227_v26 }
 0xd96   : > { %3460 = shalt.err (!%p3457_p4)
}
 0xd97   : > { %2743 = dma.vmem_to_hbm [thread:$0]  (%p4362_p6), %s2244_s9, 128, %s2246_s12, %s2230_s3  }
 0xd98 PF: > { %s2257_s26 = sand.u32 1, %s3523_s7   ;;  %p4363_p7 = scmp.ne.s32.totalorder %s4342_s22, 0 }
 0xd99   : > { %p4364_p10 = scmp.ge.s32.totalorder %s3543_s16, 2  ;;  %s2258_s6 = scalar_lea.sflag [#allocation8], %s2257_s26 }
 0xd9b   : > { %p2793_p5 = pnand %p4364_p10, %p4363_p7 }
 0xd9d   : > { %p2794_p11 = pneg %p2793_p5 }
 0xd9f   : > { %3518 = dma.done.wait (%p2794_p11), %s2258_s6, 128  }
 0xda0   : > { %3520 = vsyncadd (%p2794_p11), %s2258_s6, 4294967168  ;;  %s82_s16 = sadd.s32 1, %s3543_s16   ;;  %s4365_s7 = smov %s3527_s10 }
 0xda1   : > { %p79_p0 = scmp.ge.s32.totalorder %s82_s16, 4   ;;  %s4366_s10 = smov %s3531_s11 }
 0xda2   : > { %s4367_s11 = smov %s4011_s18  ;;  %s4368_s15 = smov %s3539_s0 }
 0xda3   : > { %s4369_s0 = smov %s4371_s1  ;;  %81 = sbr.rel (!%p79_p0) target bundleno = 69 (0x45), region = 277 }
 0xda8   :  { %2264 = vsyncpa [#allocation7], 1 }
 0xda9   :  { %2266 = vsyncpa [#allocation7 + $0x1], 1 }
 0xdaa   :  { %2267 = vsyncpa [#allocation10], 1 }
 0xdab   :  { %2268 = vsyncpa [#allocation13], 1 }
 0xdac   :  { %2269 = vsyncpa [#allocation16], 1 }
 0xdad   :  { %2270 = vsyncpa [#allocation19], 1 }
 0xdae   :  { %2271 = vsyncpa [#allocation22], 1 }
 0xdaf   :  { %2272 = vsyncpa [#allocation25], 1 }
 0xdb0   :  { %2273 = vsyncpa [#allocation28], 1 }
 0xdb1   :  { %2274 = vsyncpa [#allocation8], 1 }
 0xdb2   :  { %2276 = vsyncpa [#allocation8 + $0x1], 1 }

// kernel: tpu_custom_call.1
= control target key start
LH: loop header
LB: loop body
LE: loop exit
PB: predicated region body
PF: predicated region fallthrough
CT: control target
= control target key end

     0   :  { %s3545_s6 = smov 1   ;;  %s3546_s10 = smov 2   ;;  %s4281_s0 = inlined_call_operand.smem [shape: u32[30], index: -1, kind: input, shape index: {}] }
   0x1   :  { %s3606_s5 = sld [smem:[%s4281_s0]]   ;;  %s3547_s14 = smov 3  }
   0x2   :  { %s3611_s9 = sld [smem:[%s4281_s0 + %s3545_s6]]   ;;  %s3548_s18 = smov 4  }
   0x3   :  { %s3616_s13 = sld [smem:[%s4281_s0 + %s3546_s10]]   ;;  %s3549_s22 = smov 5  }
   0x4   :  { %s3621_s17 = sld [smem:[%s4281_s0 + %s3547_s14]]   ;;  %s3550_s26 = smov 6  }
   0x5   :  { %s3626_s21 = sld [smem:[%s4281_s0 + %s3548_s18]]   ;;  %s3551_s30 = smov 7  }
   0x6   :  { %s3631_s25 = sld [smem:[%s4281_s0 + %s3549_s22]]   ;;  %s3552_s4 = smov 8  }
   0x7   :  { %4301 = sst [smem:[#allocation40_spill]] %s3606_s5  ;;  %s3553_s10 = smov 9  }
   0x8   :  { %4302 = sst [smem:[#allocation41_spill]] %s3611_s9  ;;  %s3554_s15 = smov 10  }
   0x9   :  { %4303 = sst [smem:[#allocation42_spill]] %s3616_s13  ;;  %s3555_s20 = smov 11  }
   0xa   :  { %4304 = sst [smem:[#allocation43_spill]] %s3621_s17  ;;  %s3557_s1 = smov 13  }
   0xb   :  { %4305 = sst [smem:[#allocation44_spill]] %s3626_s21  ;;  %s3558_s7 = smov 14  }
   0xc   :  { %s3636_s29 = sld [smem:[%s4281_s0 + %s3550_s26]]   ;;  %s3556_s26 = smov 12  }
   0xd   :  { %s3641_s3 = sld [smem:[%s4281_s0 + %s3551_s30]]   ;;  %s3560_s22 = smov 16  }
   0xe   :  { %s3646_s8 = sld [smem:[%s4281_s0 + %s3552_s4]]   ;;  %s3561_s28 = smov 17  }
   0xf   :  { %s3651_s14 = sld [smem:[%s4281_s0 + %s3553_s10]]  }
  0x10   :  { %s3656_s19 = sld [smem:[%s4281_s0 + %s3554_s15]]   ;;  %s3559_s15 = smov 15  }
  0x11   :  { %s3661_s24 = sld [smem:[%s4281_s0 + %s3555_s20]]  }
  0x12   :  { %s3666_s30 = sld [smem:[%s4281_s0 + %s3556_s26]]  }
  0x13   :  { %4306 = sst [smem:[#allocation45_spill]] %s3641_s3 }
  0x14   :  { %4307 = sst [smem:[#allocation46_spill]] %s3646_s8 }
  0x15   :  { %s3671_s6 = sld [smem:[%s4281_s0 + %s3557_s1]]  }
  0x16   :  { %s3676_s12 = sld [smem:[%s4281_s0 + %s3558_s7]]   ;;  %s3562_s7 = smov 18  }
  0x17   :  { %s3681_s20 = sld [smem:[%s4281_s0 + %s3559_s15]]   ;;  %s3563_s15 = smov 19  }
  0x18   :  { %s3686_s27 = sld [smem:[%s4281_s0 + %s3560_s22]]   ;;  %s3564_s22 = smov 20  }
  0x19   :  { %s3691_s4 = sld [smem:[%s4281_s0 + %s3561_s28]]   ;;  %s3565_s28 = smov 21  }
  0x1a   :  { %s3696_s9 = sld [smem:[%s4281_s0 + %s3562_s7]]   ;;  %s3566_s7 = smov 22  }
  0x1b   :  { %4308 = sst [smem:[#allocation47_spill]] %s3671_s6 }
  0x1c   :  { %4309 = sst [smem:[#allocation48_spill]] %s3676_s12 }
  0x1d   :  { %s3701_s17 = sld [smem:[%s4281_s0 + %s3563_s15]]   ;;  %s3567_s15 = smov 23  }
  0x1e   :  { %s3706_s5 = sld [smem:[%s4281_s0 + %s3564_s22]]   ;;  %s3568_s22 = smov 24  }
  0x1f   :  { %4310 = sst [smem:[#allocation49_spill]] %s3691_s4 }
  0x20   :  { %4311 = sst [smem:[#allocation50_spill]] %s3696_s9 }
  0x21   :  { %s3711_s13 = sld [smem:[%s4281_s0 + %s3565_s28]]   ;;  %s3569_s28 = smov 25  }
  0x22   :  { %s3716_s9 = sld [smem:[%s4281_s0 + %s3566_s7]]   ;;  %s3570_s7 = smov 26  }
  0x23   :  { %4312 = sst [smem:[#allocation51_spill]] %s3701_s17 }
  0x24   :  { %4313 = sst [smem:[#allocation52_spill]] %s3706_s5 }
  0x25   :  { %s3721_s17 = sld [smem:[%s4281_s0 + %s3567_s15]]   ;;  %s3571_s15 = smov 27  }
  0x26   :  { %s3726_s5 = sld [smem:[%s4281_s0 + %s3568_s22]]   ;;  %s3572_s22 = smov 28  }
  0x27   :  { %4314 = sst [smem:[#allocation53_spill]] %s3711_s13 }
  0x28   :  { %4315 = sst [smem:[#allocation54_spill]] %s3716_s9 }
  0x29   :  { %s3731_s13 = sld [smem:[%s4281_s0 + %s3569_s28]]   ;;  %s3573_s28 = smov 29  }
  0x2a   :  { %s3736_s9 = sld [smem:[%s4281_s0 + %s3570_s7]]  }
  0x2b   :  { %4316 = sst [smem:[#allocation55_spill]] %s3721_s17 }
  0x2c   :  { %4317 = sst [smem:[#allocation56_spill]] %s3726_s5 }
  0x2d   :  { %s3741_s17 = sld [smem:[%s4281_s0 + %s3571_s15]]  }
  0x2e   :  { %s3746_s5 = sld [smem:[%s4281_s0 + %s3572_s22]]  }
  0x2f   :  { %4318 = sst [smem:[#allocation57_spill]] %s3731_s13 }
  0x30   :  { %4319 = sst [smem:[#allocation58_spill]] %s3736_s9 }
  0x31   :  { %s3751_s13 = sld [smem:[%s4281_s0 + %s3573_s28]]  }
  0x33   :  { %4320 = sst [smem:[#allocation59_spill]] %s3741_s17 }
  0x34   :  { %4321 = sst [smem:[#allocation60_spill]] %s3746_s5 }
  0x37   :  { %4322 = sst [smem:[#allocation61_spill]] %s3751_s13 }
  0x38   :  { %64 = vsyncpa [#allocation7], 0 }
  0x39   :  { %66 = vsyncpa [#allocation7 + $0x1], 0 }
  0x3a   :  { %67 = vsyncpa [#allocation10], 0 }
  0x3b   :  { %68 = vsyncpa [#allocation13], 0 }
  0x3c   :  { %69 = vsyncpa [#allocation16], 0 }
  0x3d   :  { %70 = vsyncpa [#allocation19], 0 }
  0x3e   :  { %71 = vsyncpa [#allocation22], 0 }
  0x3f   :  { %72 = vsyncpa [#allocation25], 0 }
  0x40   :  { %73 = vsyncpa [#allocation28], 0 }
  0x41   :  { %74 = vsyncpa [#allocation8], 0 }
  0x42   :  { %76 = vsyncpa [#allocation8 + $0x1], 0  ;;  %s3753_s7 = smov 0   ;;  %s3755_s10 = smov 0  }
  0x43   :  { %s3757_s11 = smov 0   ;;  %s3759_s15 = smov 0  }
  0x44   :  { %s3761_s0 = smov 0   ;;  %s3763_s16 = smov 0  }
  0x45 LB: > { %s4323_s12 = sld [smem:[#allocation48_spill]]  ;;  %s4286_s18 = sadd.s32 4294967295, %s3543_s16   ;;  %s3543_s16 = sphi %s3763_s16, %s82_s16   ;;  %s3539_s0 = sphi %s3761_s0, %s4369_s0   ;;  %s3535_s15 = sphi %s3759_s15, %s4368_s15   ;;  %s3531_s11 = sphi %s3757_s11, %s4367_s11   ;;  %s3527_s10 = sphi %s3755_s10, %s4366_s10   ;;  %s3523_s7 = sphi %s3753_s7, %s4365_s7  }
  0x46   : > { %s4324_s8 = sld [smem:[#allocation46_spill]]  ;;  %p2511_p0 = scmp.ge.s32.totalorder %s3543_s16, 1 }
  0x47   : > { %s4325_s6 = sld [smem:[#allocation47_spill]]  ;;  %p3787_p1 = scmp.eq.s32.totalorder %s4286_s18, 0 }
  0x48   : > { %s4326_s4 = sld [smem:[#allocation49_spill]]  ;;  %p751_p2 = scmp.lt.s32.totalorder %s3543_s16, 3 }
  0x49   : > { %s4327_s3 = sld [smem:[#allocation45_spill]]  ;;  %s3574_s28 = smov [#allocation9]  }
  0x4a   : > { %s4328_s21 = sld [smem:[#allocation44_spill]]  ;;  %p3793_p3 = pnand %p2511_p0, %p751_p2 }
  0x4b   : > { %4329 = sst [smem:[#allocation62_spill]] %s3535_s15  ;;  %s767_s1 = sshll.u32 %s3574_s28, 4  ;;  %s768_s1 = int_to_ptr.vmem [resolvable:$true] %s767_s1 }
  0x4c   : > { %s4330_s22 = scalar_select %p3787_p1, 1, 0 }
  0x4d   : > { %s4332_s26 = scalar_select %p3793_p3, 1, 0 }
  0x4e   : > { %4331 = sst [smem:[#allocation63_spill]] %s4330_s22  ;;  %p2745_p4 = pneg %p3793_p3 }
  0x4f   : > { %4333 = sst [smem:[#allocation64_spill]] %s4332_s26  ;;  %s793_s18 = sshll.u32 %s3636_s29, 4  ;;  %s3807_s18 = int_to_ptr.hbm [resolvable:$true] %s793_s18 }
  0x50   : > { %s765_s23 = sshll.u32 %s4328_s21, 4  ;;  %p3801_p5 = pnand %p2745_p4, %p3787_p1  ;;  %s766_s23 = int_to_ptr.hbm [resolvable:$true] %s765_s23 }
  0x51   : > { %s2983_s5 = sshra.s32 %s766_s23, 4  ;;  %s2990_s28 = scalar_lea.hbm %s4328_s21, 16  ;;  %s2984_s5 = int_to_ptr.hbm [resolvable:$true] %s2983_s5 }
  0x52   : > { %s2985_s13 = scalar_lea.hbm %s2984_s5, 16  ;;  %p3811_p8 = pneg %p3801_p5 }
  0x53   : > { %p2986_p7 = scmp.ne.s32.totalorder %s2984_s5, %s2985_s13  ;;  %p2991_p11 = scmp.lt.s32.totalorder %s2984_s5, %s4328_s21 }
  0x54   : > { %p2992_p12 = scmp.lt.s32.totalorder %s2990_s28, %s2985_s13 }
  0x55   : > { %p2988_p9 = pnand %p3811_p8, %p2986_p7 }
  0x56   : > { %p2993_p13 = por %p2992_p12, %p2991_p11 }
  0x57   : > { %p2989_p10 = pneg %p2988_p9 }
  0x59   : > { %p2994_p0 = pnand %p2993_p13, %p2989_p10 }
  0x5b   : > { %2997 = shalt.err (!%p2994_p0)
}
  0x5c   : > { %s3575_s9 = smov 64   ;;  %s3576_s15 = smov 4  }
  0x5d   : > { %2748 = dma.hbm_to_vmem [thread:$0]  (!%p3801_p5), %s766_s23, 256, %s768_s1, [#allocation10], %s3575_s9, %s3575_s9, %s3576_s15  }
  0x5e   : > { %s3577_s26 = smov [#allocation12]   ;;  %s820_s5 = sshll.u32 %s4324_s8, 4  ;;  %s3825_s5 = int_to_ptr.hbm [resolvable:$true] %s820_s5 }
  0x5f   : > { %s795_s22 = sshll.u32 %s3577_s26, 4  ;;  %s3013_s13 = sshra.s32 %s3807_s18, 4  ;;  %s796_s22 = int_to_ptr.vmem [resolvable:$true] %s795_s22  ;;  %s3014_s13 = int_to_ptr.hbm [resolvable:$true] %s3013_s13 }
  0x60   : > { %s3015_s28 = scalar_lea.hbm %s3014_s13, 16  ;;  %s3020_s21 = scalar_lea.hbm %s3636_s29, 16 }
  0x61   : > { %p3016_p2 = scmp.ne.s32.totalorder %s3014_s13, %s3015_s28  ;;  %p3021_p9 = scmp.lt.s32.totalorder %s3014_s13, %s3636_s29 }
  0x62   : > { %p3022_p10 = scmp.lt.s32.totalorder %s3020_s21, %s3015_s28 }
  0x63   : > { %p3018_p4 = pnand %p3016_p2, %p3811_p8 }
  0x64   : > { %p3023_p11 = por %p3022_p10, %p3021_p9 }
  0x65   : > { %p3019_p7 = pneg %p3018_p4 }
  0x67   : > { %p3024_p12 = pnand %p3023_p11, %p3019_p7 }
  0x69   : > { %3027 = shalt.err (!%p3024_p12)
}
  0x6a   : > { %2754 = dma.hbm_to_vmem [thread:$0]  (!%p3801_p5), %s3807_s18, 256, %s796_s22, [#allocation13], %s3575_s9, %s3575_s9, %s3576_s15  }
  0x6b   : > { %s844_s23 = sshll.u32 %s3656_s19, 4  ;;  %s3578_s26 = smov [#allocation15]   ;;  %s3839_s23 = int_to_ptr.hbm [resolvable:$true] %s844_s23 }
  0x6c   : > { %s822_s1 = sshll.u32 %s3578_s26, 4  ;;  %s3043_s21 = sshra.s32 %s3825_s5, 4  ;;  %s823_s1 = int_to_ptr.vmem [resolvable:$true] %s822_s1  ;;  %s3044_s21 = int_to_ptr.hbm [resolvable:$true] %s3043_s21 }
  0x6d   : > { %s3045_s13 = scalar_lea.hbm %s3044_s21, 1  ;;  %s3050_s28 = scalar_lea.hbm %s4324_s8, 1 }
  0x6e   : > { %p3046_p13 = scmp.ne.s32.totalorder %s3044_s21, %s3045_s13  ;;  %p3051_p4 = scmp.lt.s32.totalorder %s3044_s21, %s4324_s8 }
  0x6f   : > { %p3052_p7 = scmp.lt.s32.totalorder %s3050_s28, %s3045_s13 }
  0x70   : > { %p3048_p0 = pnand %p3046_p13, %p3811_p8 }
  0x71   : > { %p3053_p9 = por %p3052_p7, %p3051_p4 }
  0x72   : > { %p3049_p2 = pneg %p3048_p0 }
  0x74   : > { %p3054_p10 = pnand %p3053_p9, %p3049_p2 }
  0x76   : > { %3057 = shalt.err (!%p3054_p10)
}
  0x77   : > { %2760 = dma.hbm_to_vmem [thread:$0]  (!%p3801_p5), %s3825_s5, 16, %s823_s1, [#allocation16]  }
  0x78   : > { %s3579_s18 = smov [#allocation18]   ;;  %s869_s26 = sshll.u32 %s3666_s30, 4  ;;  %s3850_s26 = int_to_ptr.hbm [resolvable:$true] %s869_s26 }
  0x79   : > { %s846_s22 = sshll.u32 %s3579_s18, 4  ;;  %s3073_s21 = sshra.s32 %s3839_s23, 4  ;;  %s847_s22 = int_to_ptr.vmem [resolvable:$true] %s846_s22  ;;  %s3074_s21 = int_to_ptr.hbm [resolvable:$true] %s3073_s21 }
  0x7a   : > { %s3075_s13 = scalar_lea.hbm %s3074_s21, 1  ;;  %s3080_s28 = scalar_lea.hbm %s3656_s19, 1 }
  0x7b   : > { %p3076_p11 = scmp.ne.s32.totalorder %s3074_s21, %s3075_s13  ;;  %p3081_p0 = scmp.lt.s32.totalorder %s3074_s21, %s3656_s19 }
  0x7c   : > { %p3082_p2 = scmp.lt.s32.totalorder %s3080_s28, %s3075_s13 }
  0x7d   : > { %p3078_p12 = pnand %p3076_p11, %p3811_p8 }
  0x7e   : > { %p3083_p4 = por %p3082_p2, %p3081_p0 }
  0x7f   : > { %p3079_p13 = pneg %p3078_p12 }
  0x81   : > { %p3084_p7 = pnand %p3083_p4, %p3079_p13 }
  0x83   : > { %3087 = shalt.err (!%p3084_p7)
}
  0x84   : > { %2766 = dma.hbm_to_vmem [thread:$0]  (!%p3801_p5), %s3839_s23, 16, %s847_s22, [#allocation19]  }
  0x85   : > { %s897_s5 = sshll.u32 %s4323_s12, 4  ;;  %s3580_s1 = smov [#allocation21]   ;;  %s3861_s5 = int_to_ptr.hbm [resolvable:$true] %s897_s5 }
  0x86   : > { %s871_s18 = sshll.u32 %s3580_s1, 4  ;;  %s3103_s21 = sshra.s32 %s3850_s26, 4  ;;  %s872_s18 = int_to_ptr.vmem [resolvable:$true] %s871_s18  ;;  %s3104_s21 = int_to_ptr.hbm [resolvable:$true] %s3103_s21 }
  0x87   : > { %s3105_s13 = scalar_lea.hbm %s3104_s21, 16  ;;  %s3110_s28 = scalar_lea.hbm %s3666_s30, 16 }
  0x88   : > { %p3106_p9 = scmp.ne.s32.totalorder %s3104_s21, %s3105_s13  ;;  %p3111_p12 = scmp.lt.s32.totalorder %s3104_s21, %s3666_s30 }
  0x89   : > { %p3112_p13 = scmp.lt.s32.totalorder %s3110_s28, %s3105_s13 }
  0x8a   : > { %p3108_p10 = pnand %p3106_p9, %p3811_p8 }
  0x8b   : > { %p3113_p0 = por %p3112_p13, %p3111_p12 }
  0x8c   : > { %p3109_p11 = pneg %p3108_p10 }
  0x8e   : > { %p3114_p2 = pnand %p3113_p0, %p3109_p11 }
  0x90   : > { %3117 = shalt.err (!%p3114_p2)
}
  0x91   : > { %2772 = dma.hbm_to_vmem [thread:$0]  (!%p3801_p5), %s3850_s26, 256, %s872_s18, [#allocation22], %s3575_s9, %s3575_s9, %s3576_s15  }
  0x92   : > { %s3581_s23 = smov [#allocation24]   ;;  %s924_s1 = sshll.u32 %s3686_s27, 4  ;;  %s3875_s1 = int_to_ptr.hbm [resolvable:$true] %s924_s1 }
  0x93   : > { %s899_s22 = sshll.u32 %s3581_s23, 4  ;;  %s3133_s21 = sshra.s32 %s3861_s5, 4  ;;  %s900_s22 = int_to_ptr.vmem [resolvable:$true] %s899_s22  ;;  %s3134_s21 = int_to_ptr.hbm [resolvable:$true] %s3133_s21 }
  0x94   : > { %s3135_s13 = scalar_lea.hbm %s3134_s21, 16  ;;  %s3140_s28 = scalar_lea.hbm %s4323_s12, 16 }
  0x95   : > { %p3136_p4 = scmp.ne.s32.totalorder %s3134_s21, %s3135_s13  ;;  %p3141_p10 = scmp.lt.s32.totalorder %s3134_s21, %s4323_s12 }
  0x96   : > { %p3142_p11 = scmp.lt.s32.totalorder %s3140_s28, %s3135_s13 }
  0x97   : > { %p3138_p7 = pnand %p3136_p4, %p3811_p8 }
  0x98   : > { %p3143_p12 = por %p3142_p11, %p3141_p10 }
  0x99   : > { %p3139_p9 = pneg %p3138_p7 }
  0x9b   : > { %p3144_p13 = pnand %p3143_p12, %p3139_p9 }
  0x9d   : > { %3147 = shalt.err (!%p3144_p13)
}
  0x9e   : > { %2778 = dma.hbm_to_vmem [thread:$0]  (!%p3801_p5), %s3861_s5, 256, %s900_s22, [#allocation25], %s3575_s9, %s3575_s9, %s3576_s15  }
  0x9f   : > { %s779_s26 = sshll.u32 %s3631_s25, 4  ;;  %s3582_s18 = smov [#allocation27]   ;;  %s3889_s26 = int_to_ptr.hbm [resolvable:$true] %s779_s26 }
  0xa0   : > { %s926_s23 = sshll.u32 %s3582_s18, 4  ;;  %s3163_s21 = sshra.s32 %s3875_s1, 4  ;;  %s927_s23 = int_to_ptr.vmem [resolvable:$true] %s926_s23  ;;  %s3164_s21 = int_to_ptr.hbm [resolvable:$true] %s3163_s21 }
  0xa1   : > { %s3165_s13 = scalar_lea.hbm %s3164_s21, 1  ;;  %s3170_s28 = scalar_lea.hbm %s3686_s27, 1 }
  0xa2   : > { %p3166_p0 = scmp.ne.s32.totalorder %s3164_s21, %s3165_s13  ;;  %p3171_p7 = scmp.lt.s32.totalorder %s3164_s21, %s3686_s27 }
  0xa3   : > { %p3172_p9 = scmp.lt.s32.totalorder %s3170_s28, %s3165_s13 }
  0xa4   : > { %p3168_p2 = pnand %p3166_p0, %p3811_p8 }
  0xa5   : > { %p3173_p10 = por %p3172_p9, %p3171_p7 }
  0xa6   : > { %p3169_p4 = pneg %p3168_p2 }
  0xa8   : > { %p3174_p11 = pnand %p3173_p10, %p3169_p4 }
  0xaa   : > { %3177 = shalt.err (!%p3174_p11)
}
  0xab   : > { %2784 = dma.hbm_to_vmem [thread:$0]  (!%p3801_p5), %s3875_s1, 16, %s927_s23, [#allocation28]  }
  0xac   : > { %s3583_s5 = smov [#allocation11]   ;;  %s808_s18 = sshll.u32 %s4327_s3, 4  ;;  %s3900_s18 = int_to_ptr.hbm [resolvable:$true] %s808_s18 }
  0xad   : > { %s781_s22 = sshll.u32 %s3583_s5, 4  ;;  %s3193_s21 = sshra.s32 %s3889_s26, 4  ;;  %s782_s22 = int_to_ptr.vmem [resolvable:$true] %s781_s22  ;;  %s3194_s21 = int_to_ptr.hbm [resolvable:$true] %s3193_s21 }
  0xae   : > { %s3195_s13 = scalar_lea.hbm %s3194_s21, 16  ;;  %s3200_s28 = scalar_lea.hbm %s3631_s25, 16 }
  0xaf   : > { %p3196_p12 = scmp.ne.s32.totalorder %s3194_s21, %s3195_s13  ;;  %p3201_p2 = scmp.lt.s32.totalorder %s3194_s21, %s3631_s25 }
  0xb0   : > { %p3202_p4 = scmp.lt.s32.totalorder %s3200_s28, %s3195_s13 }
  0xb1   : > { %p3198_p13 = pnand %p3196_p12, %p3811_p8 }
  0xb2   : > { %p3203_p7 = por %p3202_p4, %p3201_p2 }
  0xb3   : > { %p3199_p0 = pneg %p3198_p13 }
  0xb5   : > { %p3204_p9 = pnand %p3203_p7, %p3199_p0 }
  0xb7   : > { %3207 = shalt.err (!%p3204_p9)
}
  0xb8   : > { %2751 = dma.hbm_to_vmem [thread:$0]  (!%p3801_p5), %s3889_s26, 256, %s782_s22, [#allocation10], %s3575_s9, %s3575_s9, %s3576_s15  }
  0xb9   : > { %s832_s1 = sshll.u32 %s3651_s14, 4  ;;  %s3584_s23 = smov [#allocation14]   ;;  %s3914_s1 = int_to_ptr.hbm [resolvable:$true] %s832_s1 }
  0xba   : > { %s810_s5 = sshll.u32 %s3584_s23, 4  ;;  %s3223_s21 = sshra.s32 %s3900_s18, 4  ;;  %s811_s5 = int_to_ptr.vmem [resolvable:$true] %s810_s5  ;;  %s3224_s21 = int_to_ptr.hbm [resolvable:$true] %s3223_s21 }
  0xbb   : > { %s3225_s13 = scalar_lea.hbm %s3224_s21, 1  ;;  %s3230_s28 = scalar_lea.hbm %s4327_s3, 1 }
  0xbc   : > { %p3226_p10 = scmp.ne.s32.totalorder %s3224_s21, %s3225_s13  ;;  %p3231_p13 = scmp.lt.s32.totalorder %s3224_s21, %s4327_s3 }
  0xbd   : > { %p3232_p0 = scmp.lt.s32.totalorder %s3230_s28, %s3225_s13 }
  0xbe   : > { %p3228_p11 = pnand %p3226_p10, %p3811_p8 }
  0xbf   : > { %p3233_p2 = por %p3232_p0, %p3231_p13 }
  0xc0   : > { %p3229_p12 = pneg %p3228_p11 }
  0xc2   : > { %p3234_p4 = pnand %p3233_p2, %p3229_p12 }
  0xc4   : > { %3237 = shalt.err (!%p3234_p4)
}
  0xc5   : > { %2757 = dma.hbm_to_vmem [thread:$0]  (!%p3801_p5), %s3900_s18, 16, %s811_s5, [#allocation13]  }
  0xc6   : > { %s3585_s26 = smov [#allocation17]   ;;  %s855_s23 = sshll.u32 %s3661_s24, 4  ;;  %s3925_s23 = int_to_ptr.hbm [resolvable:$true] %s855_s23 }
  0xc7   : > { %s834_s22 = sshll.u32 %s3585_s26, 4  ;;  %s3253_s21 = sshra.s32 %s3914_s1, 4  ;;  %s835_s22 = int_to_ptr.vmem [resolvable:$true] %s834_s22  ;;  %s3254_s21 = int_to_ptr.hbm [resolvable:$true] %s3253_s21 }
  0xc8   : > { %s3255_s13 = scalar_lea.hbm %s3254_s21, 1  ;;  %s3260_s28 = scalar_lea.hbm %s3651_s14, 1 }
  0xc9   : > { %p3256_p7 = scmp.ne.s32.totalorder %s3254_s21, %s3255_s13  ;;  %p3261_p11 = scmp.lt.s32.totalorder %s3254_s21, %s3651_s14 }
  0xca   : > { %p3262_p12 = scmp.lt.s32.totalorder %s3260_s28, %s3255_s13 }
  0xcb   : > { %p3258_p9 = pnand %p3256_p7, %p3811_p8 }
  0xcc   : > { %p3263_p13 = por %p3262_p12, %p3261_p11 }
  0xcd   : > { %p3259_p10 = pneg %p3258_p9 }
  0xcf   : > { %p3264_p0 = pnand %p3263_p13, %p3259_p10 }
  0xd1   : > { %3267 = shalt.err (!%p3264_p0)
}
  0xd2   : > { %2763 = dma.hbm_to_vmem [thread:$0]  (!%p3801_p5), %s3914_s1, 16, %s835_s22, [#allocation16]  }
  0xd3   : > { %s883_s18 = sshll.u32 %s4325_s6, 4  ;;  %s3586_s5 = smov [#allocation20]   ;;  %s3936_s18 = int_to_ptr.hbm [resolvable:$true] %s883_s18 }
  0xd4   : > { %s857_s26 = sshll.u32 %s3586_s5, 4  ;;  %s3283_s21 = sshra.s32 %s3925_s23, 4  ;;  %s858_s26 = int_to_ptr.vmem [resolvable:$true] %s857_s26  ;;  %s3284_s21 = int_to_ptr.hbm [resolvable:$true] %s3283_s21 }
  0xd5   : > { %s3285_s13 = scalar_lea.hbm %s3284_s21, 16  ;;  %s3290_s28 = scalar_lea.hbm %s3661_s24, 16 }
  0xd6   : > { %p3286_p2 = scmp.ne.s32.totalorder %s3284_s21, %s3285_s13  ;;  %p3291_p9 = scmp.lt.s32.totalorder %s3284_s21, %s3661_s24 }
  0xd7   : > { %p3292_p10 = scmp.lt.s32.totalorder %s3290_s28, %s3285_s13 }
  0xd8   : > { %p3288_p4 = pnand %p3286_p2, %p3811_p8 }
  0xd9   : > { %p3293_p11 = por %p3292_p10, %p3291_p9 }
  0xda   : > { %p3289_p7 = pneg %p3288_p4 }
  0xdc   : > { %p3294_p12 = pnand %p3293_p11, %p3289_p7 }
  0xde   : > { %3297 = shalt.err (!%p3294_p12)
}
  0xdf   : > { %2769 = dma.hbm_to_vmem [thread:$0]  (!%p3801_p5), %s3925_s23, 256, %s858_s26, [#allocation19], %s3575_s9, %s3575_s9, %s3576_s15  }
  0xe0   : > { %s3587_s1 = smov [#allocation23]   ;;  %s912_s5 = sshll.u32 %s3681_s20, 4  ;;  %s3950_s5 = int_to_ptr.hbm [resolvable:$true] %s912_s5 }
  0xe1   : > { %s885_s22 = sshll.u32 %s3587_s1, 4  ;;  %s3313_s21 = sshra.s32 %s3936_s18, 4  ;;  %s886_s22 = int_to_ptr.vmem [resolvable:$true] %s885_s22  ;;  %s3314_s21 = int_to_ptr.hbm [resolvable:$true] %s3313_s21 }
  0xe2   : > { %s3315_s13 = scalar_lea.hbm %s3314_s21, 16  ;;  %s3320_s28 = scalar_lea.hbm %s4325_s6, 16 }
  0xe3   : > { %p3316_p13 = scmp.ne.s32.totalorder %s3314_s21, %s3315_s13  ;;  %p3321_p4 = scmp.lt.s32.totalorder %s3314_s21, %s4325_s6 }
  0xe4   : > { %p3322_p7 = scmp.lt.s32.totalorder %s3320_s28, %s3315_s13 }
  0xe5   : > { %p3318_p0 = pnand %p3316_p13, %p3811_p8 }
  0xe6   : > { %p3323_p9 = por %p3322_p7, %p3321_p4 }
  0xe7   : > { %p3319_p2 = pneg %p3318_p0 }
  0xe9   : > { %p3324_p10 = pnand %p3323_p9, %p3319_p2 }
  0xeb   : > { %3327 = shalt.err (!%p3324_p10)
}
  0xec   : > { %2775 = dma.hbm_to_vmem [thread:$0]  (!%p3801_p5), %s3936_s18, 256, %s886_s22, [#allocation22], %s3575_s9, %s3575_s9, %s3576_s15  }
  0xed   : > { %s936_s23 = sshll.u32 %s4326_s4, 4  ;;  %s3588_s26 = smov [#allocation26]   ;;  %s3964_s23 = int_to_ptr.hbm [resolvable:$true] %s936_s23 }
  0xee   : > { %s914_s1 = sshll.u32 %s3588_s26, 4  ;;  %s3343_s21 = sshra.s32 %s3950_s5, 4  ;;  %s915_s1 = int_to_ptr.vmem [resolvable:$true] %s914_s1  ;;  %s3344_s21 = int_to_ptr.hbm [resolvable:$true] %s3343_s21 }
  0xef   : > { %s3345_s13 = scalar_lea.hbm %s3344_s21, 1  ;;  %s3350_s28 = scalar_lea.hbm %s3681_s20, 1 }
  0xf0   : > { %p3346_p11 = scmp.ne.s32.totalorder %s3344_s21, %s3345_s13  ;;  %p3351_p0 = scmp.lt.s32.totalorder %s3344_s21, %s3681_s20 }
  0xf1   : > { %p3352_p2 = scmp.lt.s32.totalorder %s3350_s28, %s3345_s13 }
  0xf2   : > { %p3348_p12 = pnand %p3346_p11, %p3811_p8 }
  0xf3   : > { %p3353_p4 = por %p3352_p2, %p3351_p0 }
  0xf4   : > { %p3349_p13 = pneg %p3348_p12 }
  0xf6   : > { %p3354_p7 = pnand %p3353_p4, %p3349_p13 }
  0xf8   : > { %3357 = shalt.err (!%p3354_p7)
}
  0xf9   : > { %2781 = dma.hbm_to_vmem [thread:$0]  (!%p3801_p5), %s3950_s5, 16, %s915_s1, [#allocation25]  }
  0xfa   : > { %s3589_s9 = smov [#allocation29]   ;;  %s3373_s18 = sshra.s32 %s3964_s23, 4  ;;  %s3374_s18 = int_to_ptr.hbm [resolvable:$true] %s3373_s18 }
  0xfb   : > { %s938_s15 = sshll.u32 %s3589_s9, 4  ;;  %s3375_s22 = scalar_lea.hbm %s3374_s18, 1  ;;  %s939_s15 = int_to_ptr.vmem [resolvable:$true] %s938_s15 }
  0xfc   : > { %p3376_p9 = scmp.ne.s32.totalorder %s3374_s18, %s3375_s22  ;;  %s3380_s26 = scalar_lea.hbm %s4326_s4, 1 }
  0xfd   : > { %p3381_p12 = scmp.lt.s32.totalorder %s3374_s18, %s4326_s4  ;;  %p3382_p13 = scmp.lt.s32.totalorder %s3380_s26, %s3375_s22 }
  0xfe   : > { %p3378_p10 = pnand %p3376_p9, %p3811_p8 }
  0xff   : > { %p3383_p0 = por %p3382_p13, %p3381_p12 }
 0x100   : > { %p3379_p11 = pneg %p3378_p10 }
 0x102   : > { %p3384_p2 = pnand %p3383_p0, %p3379_p11 }
 0x104   : > { %3387 = shalt.err (!%p3384_p2)
}
 0x105   : > { %2787 = dma.hbm_to_vmem [thread:$0]  (!%p3801_p5), %s3964_s23, 16, %s939_s15, [#allocation28]  }
 0x106   : > { %s2510_s5 = sadd.s32 4294967294, %s3543_s16   ;;  %s94_s1 = sadd.s32 1, %s3539_s0 }
 0x107   : > { %p96_p8 = scmp.ge.s32.totalorder %s94_s1, 2  ;;  %s153_s2 = sadd.s32 1, %s3531_s11 }
 0x108   : > { %s4337_s21 = sld [smem:[#allocation42_spill]]  ;;  %p160_p4 = scmp.ne.s32.totalorder %s3531_s11, %s3527_s10 }
 0x109   : > { %p161_p7 = scmp.eq.s32.totalorder %s3543_s16, 0  ;;  %s4371_s1 = smov (%p96_p8, %s94_s1), 0 }
 0x10a   : > { %p166_p10 = scmp.ne.s32.totalorder %s3527_s10, %s3523_s7  ;;  %s150_s23 = ssub.s32 %s3539_s0, %s4371_s1 }
 0x10b   : > { %p3990_p9 = por %p161_p7, %p160_p4  ;;  %s4339_s28 = sadd.s32 4294967295, %s3543_s16  }
 0x10c   : > { %p738_p5 = scmp.eq.s32.totalorder %s4339_s28, 1  ;;  %p151_p11 = scmp.eq.s32.totalorder %s150_s23, 0 }
 0x10d   : > { %p4002_p12 = por %p3787_p1, %p166_p10  ;;  %p744_p0 = scmp.eq.s32.totalorder %s2510_s5, 1 }
 0x10e   : > { %p4006_p13 = por %p738_p5, %p160_p4  ;;  %p2810_p8 = scmp.lt.s32.totalorder %s3543_s16, 2 }
 0x10f   : > { %s4011_s18 = scalar_select %p151_p11, %s3531_s11, %s153_s2  }
 0x110   : > { %s4341_s15 = scalar_select %p4006_p13, 1, 0 }
 0x111   : > { %p4013_p2 = por %p744_p0, %p166_p10  ;;  %s996_s26 = sand.u32 1, %s3531_s11  }
 0x112   : > { %s1002_s23 = scalar_lea.hbm %s4337_s21, %s3539_s0  ;;  %s999_s28 = scalar_lea.vmem [#allocation6], %s996_s26 }
 0x113   : > { %s4342_s22 = scalar_select %p4013_p2, 1, 0 }
 0x114   : > { %s1004_s17 = sshll.u32 %s1002_s23, 4  ;;  %s1006_s3 = sshll.u32 %s999_s28, 4  ;;  %s1005_s17 = int_to_ptr.hbm [resolvable:$true] %s1004_s17  ;;  %s1007_s3 = int_to_ptr.vmem [resolvable:$true] %s1006_s3 }
 0x115   : > { %p4023_p4 = pnand %p2810_p8, %p3990_p9  ;;  %s997_s5 = scalar_lea.sflag [#allocation7], %s996_s26 }
 0x116   : > { %s3403_s2 = sshra.s32 %s1005_s17, 4  ;;  %s3410_s23 = scalar_lea.hbm %s4337_s21, 2  ;;  %s3404_s2 = int_to_ptr.hbm [resolvable:$true] %s3403_s2 }
 0x117   : > { %s3405_s6 = scalar_lea.hbm %s3404_s2, 1  ;;  %p3407_p10 = pneg %p4023_p4 }
 0x118   : > { %p3406_p7 = scmp.ne.s32.totalorder %s3404_s2, %s3405_s6  ;;  %p3411_p0 = scmp.lt.s32.totalorder %s3404_s2, %s4337_s21 }
 0x119   : > { %p3412_p6 = scmp.lt.s32.totalorder %s3410_s23, %s3405_s6 }
 0x11a   : > { %p3408_p5 = pnand %p3407_p10, %p3406_p7 }
 0x11b   : > { %p3413_p2 = por %p3412_p6, %p3411_p0 }
 0x11c   : > { %p3409_p11 = pneg %p3408_p5 }
 0x11e   : > { %p3414_p13 = pnand %p3413_p2, %p3409_p11 }
 0x120   : > { %3417 = shalt.err (!%p3414_p13)
}
 0x121   : > { %2791 = dma.hbm_to_vmem [thread:$0]  (!%p4023_p4), %s1005_s17, 16, %s1007_s3, %s997_s5  }
 0x122   : > { %1015 = sbr.rel (%p3793_p3) target bundleno = 3480 (0xd98), region = 136  ;;  %s4036_s26 = sand.u32 (!%p3793_p3), 1, %s3527_s10  }
 0x123   : > { %s1018_s28 = scalar_lea.sflag (!%p3793_p3), [#allocation7], %s4036_s26  ;;  %s1020_s8 = scalar_lea.vmem (!%p3793_p3), [#allocation6], %s4036_s26 }
 0x127   : > { %3486 = dma.done.wait (%p4002_p12), %s1018_s28, 16  }
 0x128   : > { %3488 = vsyncadd (%p4002_p12), %s1018_s28, 4294967280 }
 0x129   : > { %3490 = dma.done.wait (%p3787_p1), [#allocation10], 512  }
 0x12a   : > { %3492 = vsyncadd (%p3787_p1), [#allocation10], 4294966784 }
 0x12b   : > { %3494 = dma.done.wait (%p3787_p1), [#allocation13], 272  }
 0x12c   : > { %3496 = vsyncadd (%p3787_p1), [#allocation13], 4294967024 }
 0x12d   : > { %3498 = dma.done.wait (%p3787_p1), [#allocation16], 32  }
 0x12e   : > { %3500 = vsyncadd (%p3787_p1), [#allocation16], 4294967264 }
 0x12f   : > { %3502 = dma.done.wait (%p3787_p1), [#allocation19], 272  }
 0x130   : > { %3504 = vsyncadd (%p3787_p1), [#allocation19], 4294967024 }
 0x131   : > { %3506 = dma.done.wait (%p3787_p1), [#allocation22], 512  }
 0x132   : > { %3508 = vsyncadd (%p3787_p1), [#allocation22], 4294966784 }
 0x133   : > { %3510 = dma.done.wait (%p3787_p1), [#allocation25], 272  }
 0x134   : > { %3512 = vsyncadd (%p3787_p1), [#allocation25], 4294967024 }
 0x135   : > { %3514 = dma.done.wait (%p3787_p1), [#allocation28], 32  }
 0x136   : > { %3516 = vsyncadd (%p3787_p1), [#allocation28], 4294967264  ;;  %s4346_s3 = sld [smem:[#allocation62_spill]]  ;;  %v2664_v0 = vld [vmem:[#allocation9 + $0x8] sm:$0xff]  ;;  %v2663_v1 = vld [vmem:[#allocation9] sm:$0xff]  ;;  %vm1210_vm0 = vcmask 261120   ;;  %v1393_v55 = vlaneseq }
 0x137   : > { %s4347_s4 = sld [smem:[#allocation40_spill]]  ;;  %v2666_v3 = vld [vmem:[#allocation11 + $0x8] sm:$0xff]  ;;  %1220 = vmatpush.bf16.msra.mxu0 %v2664_v0  ;;  %v2665_v7 = vld [vmem:[#allocation11] sm:$0xff]  ;;  %v2667_v10 = vld [vmem:[#allocation21] sm:$0xff]  ;;  %vm1340_vm1 = vcmask 60416   ;;  %s3590_s23 = smov 104  }
 0x138   : > { %s4348_s9 = sld [smem:[#allocation43_spill]]  ;;  %1253 = vmatpush.bf16.msra.mxu1 %v2666_v3  ;;  %v2927_v8 = vld [vmem:[#allocation15] ss:$0 sm:$0xff]  ;;  %s3591_s13 = smov 120   ;;  %vm1452_vm2 = vcmask 64512   ;;  %v2670_v24 = vld [vmem:[#allocation23 + $0x8] sm:$0xff] }
 0x139   : > { %v2668_v9 = vld [vmem:[#allocation21 + $0x8] sm:$0xff]  ;;  %s4349_s28 = sld [smem:[#allocation41_spill]]  ;;  %s3592_s6 = smov 112   ;;  %1322 = vmatpush.bf16.msra.mxu3 %v2670_v24  ;;  %v2669_v25 = vld [vmem:[#allocation23] sm:$0xff]  ;;  %v1394_v56 = vshrl.u32 %v1393_v55, 7  ;;  %v1398_v57 = vand.u32 127, %v1393_v55 }
 0x13a   : > { %1289 = vmatpush.bf16.msra.mxu2 %v2668_v9  ;;  %v2928_v17 = vld [vmem:[#allocation14] ss:$0 sm:$0xff]  ;;  %v2929_v26 = vld [vmem:[#allocation17] ss:$0 sm:$0xff]  ;;  %v2930_v45 = vld [vmem:[#allocation27] ss:$0 sm:$0xff] }
 0x13b   : > { %1221 = vmatpush.bf16.msra.mxu0 %v2663_v1  ;;  %v2931_v49 = vld [vmem:[#allocation29] ss:$0 sm:$0xff]  ;;  %vm1399_vm3 = vcmp.ge.s32.totalorder %v1394_v56, %v1398_v57  ;;  %vm1590_vm4 = vcmask 1043456   ;;  %vm1677_vm5 = vcmask 130048   ;;  %vm1679_vm6 = vcmask 195584   ;;  %p4362_p6 = scmp.ne.s32.totalorder %s4341_s15, 0 }
 0x13c   : > { %p1173_p3 = scmp.lt.s32.totalorder %s4346_s3, 1  ;;  %1254 = vmatpush.bf16.msra.mxu1 %v2665_v7 }
 0x13d   : > { %1323 = vmatpush.bf16.msra.mxu3 %v2669_v25 }
 0x13e   : > { %s4074_s17 = scalar_select %p1173_p3, %s4346_s3, 1  ;;  %v2672_v4 = vld [vmem:[%s4348_s9 + $0x8] sm:$0xff]  ;;  %v2671_v6 = vld [vmem:[%s4348_s9] sm:$0xff]  ;;  %1290 = vmatpush.bf16.msra.mxu2 %v2667_v10 }
 0x13f   : > { %1433 = vmatpush.bf16.msrb.mxu0 %v2672_v4 }
 0x140   : > { %s2543_s5 = sshll.u32 %s4074_s17, 3  ;;  %s3593_s17 = smov 8  }
 0x141   : > { %s1176_s2 = scalar_lea.vmem %s4347_s4, %s2543_s5  ;;  %s1180_s4 = scalar_lea.vmem %s4349_s28, %s2543_s5 }
 0x142   : > { %v4080_v2 = vld [vmem:[%s1176_s2] sm:$0xff]  ;;  %s3594_s5 = smov 16   ;;  %s3595_s2 = smov 24  }
 0x143   : > { %v1187_v5 = vpack.c.bf16 %v4080_v2, %v4080_v2  ;;  %1434 = vmatpush.bf16.msrb.mxu0 %v2671_v6  ;;  %v1188_v22 = vld [vmem:[%s1180_s4] sm:$0xff]  ;;  %s4350_s28 = sld [smem:[#allocation55_spill]] }
 0x144   : > { %v1189_v23 = vpack.c.bf16 %v1188_v22, %v1188_v22  ;;  %s4351_s4 = sld [smem:[#allocation56_spill]] }
 0x145   : > { %2553 = vmatmul.msk.bf16.vlgmr.msra.gmra.mxu0 %vm1210_vm0, %v1187_v5  ;;  %2562 = vmatmul.msk.bf16.vlgmr.msra.gmra.mxu1 %vm1210_vm0, %v1187_v5 }
 0x146   : > { %2571 = vmatmul.msk.bf16.vlgmr.msra.gmra.mxu2 %vm1210_vm0, %v1189_v23  ;;  %2580 = vmatmul.msk.bf16.vlgmr.msra.gmra.mxu3 %vm1210_vm0, %v1189_v23 }
 0x155   : > { %2589 = vmatmul.msk.bf16.vlgmr.msrb.gmra.mxu0 %vm1210_vm0, %v1187_v5 }
 0x1c2   : > { %v1223_v11 = vpop.f32.mrf.mxu0  ;;  %v1256_v27 = vpop.f32.mrf.mxu1 }
 0x1c3   : > { %v1224_v12 = vadd.f32 %v2927_v8, %v1223_v11  ;;  %v1257_v28 = vadd.f32 %v2929_v26, %v1256_v27 }
 0x1c5   : > { %v1329_v13 = vpack.c.bf16 %v1224_v12, %v1224_v12  ;;  %v4103_v29 = vpack.c.bf16 %v1257_v28, %v1257_v28 }
 0x1c7   : > { %1341 = vst.msk [vmem:[#allocation2] sm:$0xf] %vm1340_vm1, %v1329_v13  ;;  %1337 = vrot.lane.b32.xlu1 %v1329_v13, %s3590_s23  ;;  %1331 = vrot.lane.b32.xlu0 %v1329_v13, %s3591_s13 }
 0x1c8   : > { %1356 = vst.msk [vmem:[#allocation3] sm:$0xf] %vm1340_vm1, %v4103_v29 }
 0x1c9   : > { %v1292_v46 = vpop.f32.mrf.mxu2  ;;  %v1325_v50 = vpop.f32.mrf.mxu3 }
 0x1ca   : > { %v1225_v14 = vpop.f32.mrf.mxu0  ;;  %v1258_v30 = vpop.f32.mrf.mxu1  ;;  %v1293_v47 = vadd.f32 %v2930_v45, %v1292_v46  ;;  %v1326_v52 = vadd.f32 %v2931_v49, %v1325_v50 }
 0x1cc   : > { %v4116_v48 = vpack.c.bf16 %v1293_v47, %v1293_v47  ;;  %v4120_v53 = vpack.c.bf16 %v1326_v52, %v1326_v52 }
 0x1ce   : > { %v1448_v15 = vld [vmem:[#allocation2] sm:$0xf]  ;;  %1371 = vst.msk [vmem:[#allocation4] sm:$0xf] %vm1340_vm1, %v4116_v48 }
 0x1cf   : > { %1334 = vrot.lane.b32.xlu0 %v1329_v13, %s3592_s6  ;;  %v1457_v16 = vsel %vm1452_vm2, %v1448_v15, 0  ;;  %1386 = vst.msk [vmem:[#allocation5] sm:$0xf] %vm1340_vm1, %v4120_v53  ;;  %v1583_v9 = vld [vmem:[#allocation3] sm:$0xf] }
 0x1d0   : > { %1466 = vmatpush.bf16.xpose.msrb.mxu1 %v1457_v16  ;;  %v1592_v10 = vsel %vm1590_vm4, %v1583_v9, 0 }
 0x1d1   : > { %v1294_v51 = vpop.f32.mrf.mxu2  ;;  %v1327_v54 = vpop.f32.mrf.mxu3 }
 0x1d2   : > { %v1436_v18 = vpop.f32.mrf.mxu0 }
 0x1d3   : > { %v1437_v19 = vadd.f32 %v2928_v17, %v1436_v18 }
 0x1d5   : > { %v1440_v20 = vpack.c.bf16 %v1437_v19, %v1437_v19 }
 0x1d6   : > { %v1938_v52 = vld [vmem:[#allocation5] sm:$0xf] }
 0x1d7   : > { %1444 = vrot.lane.b32.xlu2 %v1440_v20, %s3592_s6  ;;  %1442 = vrot.lane.b32.xlu1 %v1440_v20, %s3591_s13  ;;  %v1946_v55 = vsel %vm1590_vm4, %v1938_v52, 0 }
 0x1d8   : > { %2590 = vmatmul.msk.bf16.vlgmr.msrb.gmra.mxu1 %vm1452_vm2, %v1440_v20 }
 0x1d9   : > { %1601 = vmatpush.bf16.msra.mxu1 %v1592_v10  ;;  %v2674_v10 = vld [vmem:[#allocation12 + $0x8] sm:$0xff] }
 0x1da   : > { %v1438_v21 = vpop.f32.mrf.mxu0 }
 0x1dd   : > { %1711 = vmatpush.bf16.msrb.mxu1 %v2674_v10 }
 0x1df   : > { %1446 = vrot.lane.b32.xlu2 %v1440_v20, %s3590_s23 }
 0x231   : > { %v1445_v33 = vpop.permute.xlu2 %1444 }
 0x239   : > { %v1338_v31 = vpop.permute.xlu1 %1337  ;;  %v1332_v32 = vpop.permute.xlu0 %1331 }
 0x23a   : > { %1344 = vst.msk [vmem:[#allocation2 + $0xc] sm:$0xf] %vm1340_vm1, %v1338_v31  ;;  %v1447_v39 = vpop.permute.xlu2 %1446  ;;  %v1803_v31 = vld [vmem:[#allocation4] sm:$0xf] }
 0x23b   : > { %1342 = vst.msk [vmem:[#allocation2 + $0x4] sm:$0xf] %vm1340_vm1, %v1332_v32 }
 0x241   : > { %v1451_v34 = vld [vmem:[#allocation2 + $0xc] sm:$0xf]  ;;  %v1335_v35 = vpop.permute.xlu0 %1334 }
 0x242   : > { %v1449_v36 = vld [vmem:[#allocation2 + $0x4] sm:$0xf]  ;;  %v1514_v37 = vsel %vm1452_vm2, %v1451_v34, 0  ;;  %1343 = vst.msk [vmem:[#allocation2 + $0x8] sm:$0xf] %vm1340_vm1, %v1335_v35  ;;  %v1811_v35 = vsel %vm1452_vm2, %v1803_v31, 0 }
 0x243   : > { %v1476_v38 = vsel %vm1452_vm2, %v1449_v36, 0  ;;  %1523 = vmatpush.bf16.xpose.msra.mxu0 %v1514_v37 }
 0x244   : > { %1485 = vmatpush.bf16.xpose.msrb.mxu2 %v1476_v38 }
 0x249   : > { %v1443_v40 = vpop.permute.xlu1 %1442  ;;  %v1450_v41 = vld [vmem:[#allocation2 + $0x8] sm:$0xf] }
 0x24a   : > { %2593 = vmatmul.msk.bf16.vlgmr.msra.gmra.mxu0 %vm1452_vm2, %v1447_v39  ;;  %v1495_v42 = vsel %vm1452_vm2, %v1450_v41, 0 }
 0x24b   : > { %2591 = vmatmul.msk.bf16.vlgmr.msrb.gmra.mxu2 %vm1452_vm2, %v1443_v40  ;;  %1504 = vmatpush.bf16.xpose.msrb.mxu3 %v1495_v42 }
 0x252   : > { %2592 = vmatmul.msk.bf16.vlgmr.msrb.gmra.mxu3 %vm1452_vm2, %v1445_v33 }
 0x255   : > { %v1468_v43 = vpop.f32.mrf.mxu1 }
 0x256   : > { %v1531_v61 = vsel %vm1399_vm3, %v1468_v43, -1e+09 }
 0x257   : > { %v1535_v3 = vsel %vm1452_vm2, %v1531_v61, -inf }
 0x25d   : > { %v1470_v44 = vpop.f32.mrf.mxu1 }
 0x2c7   : > { %v1525_v58 = vpop.f32.mrf.mxu0 }
 0x2c8   : > { %v1534_v59 = vsel %vm1399_vm3, %v1525_v58, -1e+09 }
 0x2c9   : > { %v1544_v60 = vsel %vm1452_vm2, %v1534_v59, -inf }
 0x2ca   : > { %1545 = vmax.xlane.f32.xlu2 %v1544_v60 }
 0x2ce   : > { %v1487_v62 = vpop.f32.mrf.mxu2 }
 0x2cf   : > { %v1532_v63 = vsel %vm1399_vm3, %v1487_v62, -1e+09  ;;  %v1527_v0 = vpop.f32.mrf.mxu0 }
 0x2d0   : > { %v1538_v1 = vsel %vm1452_vm2, %v1532_v63, -inf }
 0x2d1   : > { %1539 = vmax.xlane.f32.xlu0 %v1538_v1 }
 0x2d2   : > { %1536 = vmax.xlane.f32.xlu2 %v1535_v3 }
 0x2d5   : > { %v1506_v5 = vpop.f32.mrf.mxu3 }
 0x2d6   : > { %v1489_v4 = vpop.f32.mrf.mxu2  ;;  %v1533_v6 = vsel %vm1399_vm3, %v1506_v5, -1e+09 }
 0x2d7   : > { %v1541_v7 = vsel %vm1452_vm2, %v1533_v6, -inf }
 0x2d8   : > { %1542 = vmax.xlane.f32.xlu1 %v1541_v7 }
 0x2dd   : > { %v1508_v8 = vpop.f32.mrf.mxu3 }
 0x2e5   : > { %1347 = vrot.lane.b32.xlu0 %v4103_v29, %s3591_s13 }
 0x2ea   : > { %1350 = vrot.lane.b32.xlu2 %v4103_v29, %s3592_s6 }
 0x33d   : > { %v1546_v11 = vpop.xlane.xlu2 %1545 }
 0x33e   : > { %v1550_v12 = vsub.f32 %v1534_v59, %v1546_v11  ;;  %v2673_v11 = vld [vmem:[#allocation12] sm:$0xff] }
 0x33f   : > { %1712 = vmatpush.bf16.msrb.mxu1 %v2673_v11 }
 0x340   : > { %v1557_v13 = vmul.f32 1.442695, %v1550_v12 }
 0x342   : > { %2943 = vpow2.f32 %v1557_v13 }
 0x344   : > { %v1540_v14 = vpop.xlane.xlu0 %1539 }
 0x345   : > { %v1548_v15 = vsub.f32 %v1532_v63, %v1540_v14  ;;  %v1537_v16 = vpop.xlane.xlu2 %1536 }
 0x346   : > { %v1547_v17 = vsub.f32 %v1531_v61, %v1537_v16 }
 0x347   : > { %v1553_v18 = vmul.f32 1.442695, %v1548_v15 }
 0x348   : > { %v2944_v19 = vpop.eup %2943  ;;  %v1551_v20 = vmul.f32 1.442695, %v1547_v17 }
 0x349   : > { %2945 = vpow2.f32 %v1553_v18  ;;  %v1568_v21 = vsel %vm1452_vm2, %v2944_v19, 0.0 }
 0x34a   : > { %2947 = vpow2.f32 %v1551_v20  ;;  %1569 = vadd.xlane.f32.xlu0 %v1568_v21 }
 0x34b   : > { %v1543_v22 = vpop.xlane.xlu1 %1542 }
 0x34c   : > { %v1549_v23 = vsub.f32 %v1533_v6, %v1543_v22 }
 0x34d   : > { %v1351_v24 = vpop.permute.xlu2 %1350 }
 0x34e   : > { %1358 = vst.msk [vmem:[#allocation3 + $0x8] sm:$0xf] %vm1340_vm1, %v1351_v24  ;;  %v1555_v26 = vmul.f32 1.442695, %v1549_v23 }
 0x34f   : > { %v2946_v25 = vpop.eup %2945 }
 0x350   : > { %v2948_v27 = vpop.eup %2947  ;;  %v1562_v28 = vsel %vm1452_vm2, %v2946_v25, 0.0  ;;  %2949 = vpow2.f32 %v1555_v26 }
 0x351   : > { %1563 = vadd.xlane.f32.xlu1 %v1562_v28  ;;  %v1559_v30 = vsel %vm1452_vm2, %v2948_v27, 0.0 }
 0x352   : > { %1560 = vadd.xlane.f32.xlu2 %v1559_v30  ;;  %v2676_v30 = vld [vmem:[#allocation20 + $0x8] sm:$0xff] }
 0x355   : > { %v1585_v32 = vld [vmem:[#allocation3 + $0x8] sm:$0xf] }
 0x356   : > { %v1630_v33 = vsel %vm1590_vm4, %v1585_v32, 0  ;;  %v2950_v34 = vpop.eup %2949 }
 0x357   : > { %1639 = vmatpush.bf16.msra.mxu3 %v1630_v33  ;;  %v1348_v36 = vpop.permute.xlu0 %1347  ;;  %v1565_v37 = vsel %vm1452_vm2, %v2950_v34, 0.0 }
 0x358   : > { %1357 = vst.msk [vmem:[#allocation3 + $0x4] sm:$0xf] %vm1340_vm1, %v1348_v36 }
 0x359   : > { %1566 = vadd.xlane.f32.xlu1 %v1565_v37 }
 0x35b   : > { %1820 = vmatpush.bf16.xpose.msrb.mxu3 %v1811_v35 }
 0x35f   : > { %v1584_v38 = vld [vmem:[#allocation3 + $0x4] sm:$0xf] }
 0x360   : > { %v1611_v39 = vsel %vm1590_vm4, %v1584_v38, 0 }
 0x361   : > { %1620 = vmatpush.bf16.msra.mxu2 %v1611_v39 }
 0x365   : > { %1788 = vmatpush.bf16.msrb.mxu2 %v2676_v30 }
 0x36a   : > { %1362 = vrot.lane.b32.xlu2 %v4116_v48, %s3591_s13 }
 0x372   : > { %1353 = vrot.lane.b32.xlu1 %v4103_v29, %s3590_s23 }
 0x3bd   : > { %v1570_v56 = vpop.xlane.xlu0 %1569 }
 0x3c4   : > { %v1564_v40 = vpop.xlane.xlu1 %1563 }
 0x3c5   : > { %2951 = vrcp.f32 %v1564_v40  ;;  %v1561_v41 = vpop.xlane.xlu2 %1560 }
 0x3c6   : > { %2953 = vrcp.f32 %v1561_v41 }
 0x3cb   : > { %v2952_v42 = vpop.eup %2951 }
 0x3cc   : > { %v2954_v43 = vpop.eup %2953  ;;  %v1576_v44 = vmul.f32 %v2952_v42, %v2946_v25  ;;  %v1567_v45 = vpop.xlane.xlu1 %1566  ;;  %v3596_v25 = vmov 32.0  }
 0x3cd   : > { %v1575_v46 = vmul.f32 %v2954_v43, %v2948_v27  ;;  %2955 = vrcp.f32 %v1567_v45  ;;  %v1363_v47 = vpop.permute.xlu2 %1362 }
 0x3ce   : > { %v1580_v49 = vpack.c.bf16 %v1576_v44, %v1576_v44  ;;  %1372 = vst.msk [vmem:[#allocation4 + $0x4] sm:$0xf] %vm1340_vm1, %v1363_v47  ;;  %2957 = vrcp.f32 %v1570_v56  ;;  %v2934_v56 = vld [vmem:[%s4351_s4] ss:$0 sm:$0xff]  ;;  %s4360_s4 = sld [smem:[#allocation61_spill]] }
 0x3cf   : > { %v1579_v50 = vpack.c.bf16 %v1575_v46, %v1575_v46  ;;  %2959 = vrcp.f32 %v3596_v25 }
 0x3d0   : > { %2595 = vmatmul.msk.bf16.vlgmr.msra.gmra.mxu2 %vm1452_vm2, %v1580_v49 }
 0x3d1   : > { %2594 = vmatmul.msk.bf16.vlgmr.msra.gmra.mxu1 %vm1452_vm2, %v1579_v50 }
 0x3d3   : > { %v2956_v29 = vpop.eup %2955 }
 0x3d4   : > { %v1577_v51 = vmul.f32 %v2956_v29, %v2950_v34  ;;  %v2958_v58 = vpop.eup %2957 }
 0x3d5   : > { %v1578_v59 = vmul.f32 %v2958_v58, %v2944_v19  ;;  %v1804_v60 = vld [vmem:[#allocation4 + $0x4] sm:$0xf]  ;;  %v2932_v19 = vld [vmem:[#allocation18] ss:$0 sm:$0xff]  ;;  %v2960_v26 = vpop.eup %2959 }
 0x3d6   : > { %v1581_v54 = vpack.c.bf16 %v1577_v51, %v1577_v51  ;;  %v1830_v63 = vsel %vm1452_vm2, %v1804_v60, 0  ;;  %v1723_v27 = vmul.f32 32.0, %v2960_v26  ;;  %vm1727_vm7 = vweird.f32 %v2960_v26 }
 0x3d7   : > { %v1582_v0 = vpack.c.bf16 %v1578_v59, %v1578_v59 }
 0x3d8   : > { %2596 = vmatmul.msk.bf16.vlgmr.msra.gmra.mxu3 %vm1452_vm2, %v1581_v54  ;;  %v1724_v28 = vsub.f32 1.0, %v1723_v27  ;;  %v2933_v54 = vld [vmem:[%s4350_s28] ss:$0 sm:$0xff]  ;;  %s4359_s28 = sld [smem:[#allocation59_spill]] }
 0x3d9   : > { %1955 = vmatpush.bf16.msra.mxu3 %v1946_v55 }
 0x3da   : > { %v1725_v31 = vmul.f32 %v2960_v26, %v1724_v28 }
 0x3dc   : > { %v1726_v32 = vadd.f32 %v2960_v26, %v1725_v31 }
 0x3de   : > { %v4168_v33 = vsel %vm1727_vm7, %v2960_v26, %v1726_v32 }
 0x3e4   : > { %v1354_v57 = vpop.permute.xlu1 %1353 }
 0x3e5   : > { %1359 = vst.msk [vmem:[#allocation3 + $0xc] sm:$0xf] %vm1340_vm1, %v1354_v57 }
 0x3ec   : > { %v1586_v61 = vld [vmem:[#allocation3 + $0xc] sm:$0xf] }
 0x3ed   : > { %v1649_v62 = vsel %vm1590_vm4, %v1586_v61, 0  ;;  %v2935_v61 = vld [vmem:[#allocation26] ss:$0 sm:$0xff] }
 0x3ee   : > { %1658 = vmatpush.bf16.msrb.mxu0 %v1649_v62 }
 0x3f1   : > { %2597 = vmatmul.msk.bf16.vlgmr.msrb.gmra.mxu0 %vm1452_vm2, %v1582_v0 }
 0x3f2   : > { %1839 = vmatpush.bf16.xpose.msra.mxu0 %v1830_v63 }
 0x44e   : > { %v1603_v1 = vpop.f32.mrf.mxu1 }
 0x453   : > { %v1622_v3 = vpop.f32.mrf.mxu2 }
 0x454   : > { %1665 = vrot.lane.b32.xlu1 %v1622_v3, %s3593_s17 }
 0x456   : > { %v1605_v4 = vpop.f32.mrf.mxu1 }
 0x45b   : > { %v1624_v5 = vpop.f32.mrf.mxu2  ;;  %v1641_v6 = vpop.f32.mrf.mxu3 }
 0x45c   : > { %1669 = vrot.lane.b32.xlu1 %v1641_v6, %s3594_s5 }
 0x463   : > { %v1643_v7 = vpop.f32.mrf.mxu3 }
 0x46e   : > { %v1660_v8 = vpop.f32.mrf.mxu0 }
 0x46f   : > { %1673 = vrot.lane.b32.xlu1 %v1660_v8, %s3595_s2  ;;  %v1400_v8 = vld [vmem:[%s1020_s8] sm:$0x1]  ;;  %s4352_s8 = sld [smem:[#allocation50_spill]] }
 0x470   : > { %vm1401_vm11 = vcmp.gt.f32.partialorder %v1400_v8, 0.0 }
 0x476   : > { %v1662_v9 = vpop.f32.mrf.mxu0 }
 0x477   : > { %v3597_v9 = vmov 0  }
 0x478   : > { %v1883_v10 = vsel %vm1401_vm11, 1, %v3597_v9 }
 0x479   : > { %v1884_v11 = vperm.slane %v1883_v10, 0 }
 0x47b   : > { %vm1885_vm12 = vcmp.eq.s32.totalorder %v1884_v11, 1 }
 0x4c6   : > { %v1666_v12 = vpop.permute.xlu1 %1665 }
 0x4c7   : > { %v1676_v14 = vsel %vm1452_vm2, %v1603_v1, %v1666_v12 }
 0x4ce   : > { %v1670_v13 = vpop.permute.xlu1 %1669 }
 0x4cf   : > { %v1678_v15 = vsel %vm1677_vm5, %v1676_v14, %v1670_v13 }
 0x4e1   : > { %v1674_v16 = vpop.permute.xlu1 %1673 }
 0x4e2   : > { %v1680_v17 = vsel %vm1679_vm6, %v1678_v15, %v1674_v16 }
 0x4e3   : > { %v1681_v18 = vpack.c.bf16 %v1680_v17, %v1680_v17 }
 0x4e5   : > { %2606 = vmatmul.msk.bf16.vlgmr.msrb.gmra.mxu1 %vm1210_vm0, %v1681_v18 }
 0x562   : > { %v1714_v20 = vpop.f32.mrf.mxu1 }
 0x563   : > { %v1715_v21 = vadd.f32 %v2932_v19, %v1714_v20 }
 0x565   : > { %v1718_v22 = vadd.f32 %v1715_v21, %v4080_v2  ;;  %v2675_v2 = vld [vmem:[#allocation20] sm:$0xff] }
 0x566   : > { %1789 = vmatpush.bf16.msrb.mxu2 %v2675_v2 }
 0x567   : > { %v1719_v23 = vsel %vm1210_vm0, %v1718_v22, 0.0 }
 0x568   : > { %1720 = vadd.xlane.f32.xlu0 %v1719_v23 }
 0x56a   : > { %v1716_v24 = vpop.f32.mrf.mxu1 }
 0x57c   : > { %1368 = vrot.lane.b32.xlu0 %v4116_v48, %s3590_s23 }
 0x584   : > { %1365 = vrot.lane.b32.xlu0 %v4116_v48, %s3592_s6 }
 0x5db   : > { %v1721_v34 = vpop.xlane.xlu0 %1720 }
 0x5dc   : > { %v1729_v35 = vmul.f32 %v4168_v33, %v1721_v34 }
 0x5de   : > { %v1730_v36 = vsub.f32 %v1718_v22, %v1729_v35 }
 0x5e0   : > { %v1731_v37 = vmul.f32 %v1730_v36, %v1730_v36 }
 0x5e2   : > { %v1732_v48 = vsel %vm1210_vm0, %v1731_v37, 0.0 }
 0x5e3   : > { %1733 = vadd.xlane.f32.xlu1 %v1732_v48 }
 0x5ee   : > { %v1369_v38 = vpop.permute.xlu0 %1368 }
 0x5ef   : > { %1374 = vst.msk [vmem:[#allocation4 + $0xc] sm:$0xf] %vm1340_vm1, %v1369_v38 }
 0x5f6   : > { %v1366_v39 = vpop.permute.xlu0 %1365  ;;  %v1806_v40 = vld [vmem:[#allocation4 + $0xc] sm:$0xf] }
 0x5f7   : > { %1373 = vst.msk [vmem:[#allocation4 + $0x8] sm:$0xf] %vm1340_vm1, %v1366_v39  ;;  %v1868_v41 = vsel %vm1452_vm2, %v1806_v40, 0 }
 0x5f8   : > { %1877 = vmatpush.bf16.xpose.msra.mxu2 %v1868_v41 }
 0x5fe   : > { %v1805_v42 = vld [vmem:[#allocation4 + $0x8] sm:$0xf] }
 0x5ff   : > { %v1849_v43 = vsel %vm1452_vm2, %v1805_v42, 0 }
 0x600   : > { %1858 = vmatpush.bf16.xpose.msra.mxu1 %v1849_v43 }
 0x656   : > { %v1734_v44 = vpop.xlane.xlu1 %1733 }
 0x657   : > { %v1735_v45 = vmul.f32 %v1734_v44, %v4168_v33 }
 0x659   : > { %v1736_v46 = vadd.f32 1e-05, %v1735_v45 }
 0x65b   : > { %2961 = vrsqrt.f32 %v1736_v46  ;;  %vm1743_vm9 = vweird.f32 %v1736_v46 }
 0x661   : > { %v2962_v47 = vpop.eup %2961 }
 0x662   : > { %v1738_v49 = vmul.f32 %v2962_v47, %v1736_v46  ;;  %vm1744_vm8 = vweird.f32 %v2962_v47 }
 0x663   : > { %vm1745_vm10 = vmor %vm1743_vm9, %vm1744_vm8 }
 0x664   : > { %v1739_v50 = vmul.f32 %v2962_v47, %v1738_v49 }
 0x666   : > { %v1740_v29 = vmul.f32 0.5, %v1739_v50 }
 0x668   : > { %v1741_v51 = vsub.f32 1.5, %v1740_v29 }
 0x66a   : > { %v1742_v52 = vmul.f32 %v2962_v47, %v1741_v51 }
 0x66c   : > { %v1746_v55 = vsel %vm1745_vm10, %v2962_v47, %v1742_v52 }
 0x66d   : > { %v1747_v57 = vmul.f32 %v1746_v55, %v1730_v36 }
 0x66f   : > { %v1752_v58 = vmul.f32 %v2933_v54, %v1747_v57 }
 0x671   : > { %v4179_v59 = vadd.f32 %v2934_v56, %v1752_v58 }
 0x673   : > { %v1758_v60 = vpack.c.bf16 %v4179_v59, %v4179_v59 }
 0x675   : > { %2615 = vmatmul.msk.bf16.vlgmr.msrb.gmra.mxu2 %vm1210_vm0, %v1758_v60 }
 0x6f8   : > { %v1791_v62 = vpop.f32.mrf.mxu2 }
 0x6f9   : > { %v1792_v63 = vadd.f32 %v2935_v61, %v1791_v62 }
 0x6fb   : > { %v1795_v0 = vpack.c.bf16 %v1792_v63, %v1792_v63 }
 0x6fd   : > { %1797 = vrot.lane.b32.xlu0 %v1795_v0, %s3591_s13  ;;  %1801 = vrot.lane.b32.xlu2 %v1795_v0, %s3590_s23 }
 0x6fe   : > { %2616 = vmatmul.msk.bf16.vlgmr.msrb.gmra.mxu3 %vm1452_vm2, %v1795_v0 }
 0x700   : > { %v1793_v1 = vpop.f32.mrf.mxu2 }
 0x705   : > { %1799 = vrot.lane.b32.xlu2 %v1795_v0, %s3592_s6 }
 0x757   : > { %v1802_v3 = vpop.permute.xlu2 %1801 }
 0x758   : > { %2619 = vmatmul.msk.bf16.vlgmr.msra.gmra.mxu2 %vm1452_vm2, %v1802_v3 }
 0x75f   : > { %v1800_v4 = vpop.permute.xlu2 %1799 }
 0x760   : > { %2618 = vmatmul.msk.bf16.vlgmr.msra.gmra.mxu1 %vm1452_vm2, %v1800_v4 }
 0x76f   : > { %v1798_v5 = vpop.permute.xlu0 %1797 }
 0x770   : > { %2617 = vmatmul.msk.bf16.vlgmr.msra.gmra.mxu0 %vm1452_vm2, %v1798_v5 }
 0x781   : > { %v1822_v6 = vpop.f32.mrf.mxu3 }
 0x782   : > { %v1886_v23 = vsel %vm1885_vm12, %v1822_v6, -1e+09 }
 0x783   : > { %v1890_v25 = vsel %vm1452_vm2, %v1886_v23, -inf }
 0x789   : > { %v1824_v7 = vpop.f32.mrf.mxu3 }
 0x7db   : > { %v1879_v12 = vpop.f32.mrf.mxu2 }
 0x7dc   : > { %v1889_v13 = vsel %vm1885_vm12, %v1879_v12, -1e+09 }
 0x7dd   : > { %v1860_v14 = vpop.f32.mrf.mxu1  ;;  %v1899_v15 = vsel %vm1452_vm2, %v1889_v13, -inf }
 0x7de   : > { %v1888_v16 = vsel %vm1885_vm12, %v1860_v14, -1e+09  ;;  %1900 = vmax.xlane.f32.xlu0 %v1899_v15 }
 0x7df   : > { %v1896_v17 = vsel %vm1452_vm2, %v1888_v16, -inf }
 0x7e0   : > { %1897 = vmax.xlane.f32.xlu2 %v1896_v17  ;;  %v2678_v17 = vld [vmem:[#allocation24 + $0x8] sm:$0xff] }
 0x7e1   : > { %2063 = vmatpush.bf16.msrb.mxu3 %v2678_v17 }
 0x7e3   : > { %v1881_v18 = vpop.f32.mrf.mxu2 }
 0x7e4   : > { %v2677_v18 = vld [vmem:[#allocation24] sm:$0xff] }
 0x7e5   : > { %v1862_v19 = vpop.f32.mrf.mxu1  ;;  %2064 = vmatpush.bf16.msrb.mxu3 %v2677_v18 }
 0x7ed   : > { %v1841_v20 = vpop.f32.mrf.mxu0 }
 0x7ee   : > { %v1887_v21 = vsel %vm1885_vm12, %v1841_v20, -1e+09 }
 0x7ef   : > { %v1893_v22 = vsel %vm1452_vm2, %v1887_v21, -inf }
 0x7f0   : > { %1894 = vmax.xlane.f32.xlu1 %v1893_v22 }
 0x7f5   : > { %v1843_v24 = vpop.f32.mrf.mxu0 }
 0x7f8   : > { %1891 = vmax.xlane.f32.xlu1 %v1890_v25 }
 0x811   : > { %1383 = vrot.lane.b32.xlu1 %v4120_v53, %s3590_s23  ;;  %s4353_s23 = sld [smem:[#allocation51_spill]] }
 0x819   : > { %1377 = vrot.lane.b32.xlu1 %v4120_v53, %s3591_s13  ;;  %s4354_s13 = sld [smem:[#allocation53_spill]] }
 0x851   : > { %v1901_v26 = vpop.xlane.xlu0 %1900 }
 0x852   : > { %v1905_v27 = vsub.f32 %v1889_v13, %v1901_v26  ;;  %v2936_v26 = vld [vmem:[%s4352_s8] ss:$0 sm:$0xff]  ;;  %s4361_s8 = sld [smem:[#allocation60_spill]] }
 0x853   : > { %v1898_v28 = vpop.xlane.xlu2 %1897 }
 0x854   : > { %v1912_v30 = vmul.f32 1.442695, %v1905_v27  ;;  %v1904_v31 = vsub.f32 %v1888_v16, %v1898_v28 }
 0x856   : > { %2963 = vpow2.f32 %v1912_v30  ;;  %v1910_v32 = vmul.f32 1.442695, %v1904_v31 }
 0x858   : > { %2965 = vpow2.f32 %v1910_v32 }
 0x85c   : > { %v2964_v2 = vpop.eup %2963 }
 0x85d   : > { %v1923_v34 = vsel %vm1452_vm2, %v2964_v2, 0.0 }
 0x85e   : > { %v2966_v35 = vpop.eup %2965  ;;  %1924 = vadd.xlane.f32.xlu0 %v1923_v34 }
 0x85f   : > { %v1920_v36 = vsel %vm1452_vm2, %v2966_v35, 0.0 }
 0x860   : > { %1921 = vadd.xlane.f32.xlu1 %v1920_v36 }
 0x863   : > { %v1895_v37 = vpop.xlane.xlu1 %1894 }
 0x864   : > { %v1903_v48 = vsub.f32 %v1887_v21, %v1895_v37 }
 0x866   : > { %v1908_v38 = vmul.f32 1.442695, %v1903_v48  ;;  %v2680_v48 = vld [vmem:[%s4353_s23 + $0x8] sm:$0xff] }
 0x868   : > { %2967 = vpow2.f32 %v1908_v38  ;;  %v2679_v38 = vld [vmem:[%s4353_s23] sm:$0xff] }
 0x86b   : > { %v1892_v39 = vpop.xlane.xlu1 %1891 }
 0x86c   : > { %v1902_v40 = vsub.f32 %v1886_v23, %v1892_v39  ;;  %v2684_v39 = vld [vmem:[%s4354_s13 + $0x18] sm:$0xff] }
 0x86e   : > { %v2968_v41 = vpop.eup %2967  ;;  %v1906_v42 = vmul.f32 1.442695, %v1902_v40 }
 0x86f   : > { %v1917_v43 = vsel %vm1452_vm2, %v2968_v41, 0.0 }
 0x870   : > { %2969 = vpow2.f32 %v1906_v42  ;;  %1918 = vadd.xlane.f32.xlu2 %v1917_v43 }
 0x872   : > { %1380 = vrot.lane.b32.xlu0 %v4120_v53, %s3592_s6  ;;  %s4355_s6 = sld [smem:[#allocation57_spill]] }
 0x876   : > { %v2970_v44 = vpop.eup %2969 }
 0x877   : > { %v1914_v45 = vsel %vm1452_vm2, %v2970_v44, 0.0 }
 0x878   : > { %1915 = vadd.xlane.f32.xlu2 %v1914_v45 }
 0x883   : > { %v1384_v46 = vpop.permute.xlu1 %1383 }
 0x884   : > { %1389 = vst.msk [vmem:[#allocation5 + $0xc] sm:$0xf] %vm1340_vm1, %v1384_v46 }
 0x88b   : > { %v1378_v47 = vpop.permute.xlu1 %1377  ;;  %v1941_v49 = vld [vmem:[#allocation5 + $0xc] sm:$0xf] }
 0x88c   : > { %1387 = vst.msk [vmem:[#allocation5 + $0x4] sm:$0xf] %vm1340_vm1, %v1378_v47  ;;  %v2003_v50 = vsel %vm1590_vm4, %v1941_v49, 0 }
 0x88d   : > { %2012 = vmatpush.bf16.msrb.mxu2 %v2003_v50  ;;  %v2937_v50 = vld [vmem:[%s4355_s6] ss:$0 sm:$0xff]  ;;  %s2542_s6 = sshll.u32 %s4036_s26, 3 }
 0x893   : > { %v1939_v29 = vld [vmem:[#allocation5 + $0x4] sm:$0xf] }
 0x894   : > { %v1965_v51 = vsel %vm1590_vm4, %v1939_v29, 0 }
 0x895   : > { %1974 = vmatpush.bf16.msrb.mxu0 %v1965_v51 }
 0x899   : > { %2133 = vmatpush.bf16.msra.mxu0 %v2680_v48 }
 0x89d   : > { %2134 = vmatpush.bf16.msra.mxu0 %v2679_v38 }
 0x8d1   : > { %v1925_v52 = vpop.xlane.xlu0 %1924 }
 0x8d2   : > { %2971 = vrcp.f32 %v1925_v52 }
 0x8d3   : > { %v1922_v56 = vpop.xlane.xlu1 %1921 }
 0x8d4   : > { %2973 = vrcp.f32 %v1922_v56  ;;  %v2682_v56 = vld [vmem:[%s4354_s13 + $0x8] sm:$0xff] }
 0x8d8   : > { %v2972_v53 = vpop.eup %2971 }
 0x8d9   : > { %v1933_v54 = vmul.f32 %v2972_v53, %v2964_v2 }
 0x8da   : > { %v2974_v60 = vpop.eup %2973 }
 0x8db   : > { %v1937_v55 = vpack.c.bf16 %v1933_v54, %v1933_v54  ;;  %v1932_v62 = vmul.f32 %v2974_v60, %v2966_v35 }
 0x8dd   : > { %2623 = vmatmul.msk.bf16.vlgmr.msrb.gmra.mxu2 %vm1452_vm2, %v1937_v55  ;;  %v1936_v5 = vpack.c.bf16 %v1932_v62, %v1932_v62 }
 0x8e3   : > { %v1919_v57 = vpop.xlane.xlu2 %1918 }
 0x8e4   : > { %2975 = vrcp.f32 %v1919_v57  ;;  %v1381_v58 = vpop.permute.xlu0 %1380  ;;  %v2681_v57 = vld [vmem:[%s4354_s13] sm:$0xff] }
 0x8e5   : > { %1388 = vst.msk [vmem:[#allocation5 + $0x8] sm:$0xf] %vm1340_vm1, %v1381_v58  ;;  %vm2178_vm1 = vcmask 523264  }
 0x8ea   : > { %v2976_v61 = vpop.eup %2975 }
 0x8eb   : > { %v1931_v63 = vmul.f32 %v2976_v61, %v2968_v41  ;;  %v1916_v0 = vpop.xlane.xlu2 %1915  ;;  %v2683_v41 = vld [vmem:[%s4354_s13 + $0x10] sm:$0xff] }
 0x8ec   : > { %2977 = vrcp.f32 %v1916_v0  ;;  %v1940_v1 = vld [vmem:[#allocation5 + $0x8] sm:$0xf] }
 0x8ed   : > { %v1935_v3 = vpack.c.bf16 %v1931_v63, %v1931_v63  ;;  %v1984_v4 = vsel %vm1590_vm4, %v1940_v1, 0 }
 0x8ee   : > { %1993 = vmatpush.bf16.msrb.mxu1 %v1984_v4 }
 0x8ef   : > { %2621 = vmatmul.msk.bf16.vlgmr.msrb.gmra.mxu0 %vm1452_vm2, %v1935_v3 }
 0x8f1   : > { %2622 = vmatmul.msk.bf16.vlgmr.msrb.gmra.mxu1 %vm1452_vm2, %v1936_v5 }
 0x8f2   : > { %v2978_v6 = vpop.eup %2977  ;;  %2186 = vmatpush.bf16.msra.mxu1 %v2684_v39 }
 0x8f3   : > { %v1930_v7 = vmul.f32 %v2978_v6, %v2970_v44 }
 0x8f5   : > { %v1934_v8 = vpack.c.bf16 %v1930_v7, %v1930_v7 }
 0x8f6   : > { %2187 = vmatpush.bf16.msra.mxu1 %v2683_v41 }
 0x8f7   : > { %2620 = vmatmul.msk.bf16.vlgmr.msra.gmra.mxu3 %vm1452_vm2, %v1934_v8 }
 0x8fa   : > { %2188 = vmatpush.bf16.msra.mxu1 %v2682_v56 }
 0x8fe   : > { %2189 = vmatpush.bf16.msra.mxu1 %v2681_v57 }
 0x960   : > { %v2014_v9 = vpop.f32.mrf.mxu2 }
 0x968   : > { %v2016_v10 = vpop.f32.mrf.mxu2 }
 0x96c   : > { %v1976_v11 = vpop.f32.mrf.mxu0 }
 0x96d   : > { %2019 = vrot.lane.b32.xlu2 %v1976_v11, %s3593_s17  ;;  %s4356_s17 = sld [smem:[#allocation58_spill]] }
 0x96e   : > { %v1995_v12 = vpop.f32.mrf.mxu1 }
 0x96f   : > { %2023 = vrot.lane.b32.xlu0 %v1995_v12, %s3594_s5  ;;  %s4357_s5 = sld [smem:[#allocation52_spill]] }
 0x973   : > { %v2938_v51 = vld [vmem:[%s4356_s17] ss:$0 sm:$0xff]  ;;  %s2660_s17 = sshll.u32 %s4346_s3, 3  ;;  %s2230_s3 = scalar_lea.sflag [#allocation8], %s4036_s26 }
 0x974   : > { %v1978_v13 = vpop.f32.mrf.mxu0 }
 0x975   : > { %v2939_v58 = vld [vmem:[%s4357_s5] ss:$0 sm:$0xff]  ;;  %s2241_s5 = scalar_lea.hbm %s4360_s4, %s2660_s17 }
 0x976   : > { %v1997_v14 = vpop.f32.mrf.mxu1  ;;  %s2245_s12 = sshll.u32 %s2241_s5, 4  ;;  %s2246_s12 = int_to_ptr.hbm [resolvable:$true] %s2245_s12 }
 0x977   : > { %2027 = vrot.lane.b32.xlu0 %v2014_v9, %s3595_s2  ;;  %s4358_s2 = sld [smem:[#allocation54_spill]]  ;;  %s3447_s13 = sshra.s32 %s2246_s12, 4  ;;  %s3448_s13 = int_to_ptr.hbm [resolvable:$true] %s3447_s13 }
 0x978   : > { %p3454_p13 = scmp.lt.s32.totalorder %s3448_s13, %s4360_s4 }
 0x97a   : > { %v1957_v15 = vpop.f32.mrf.mxu3 }
 0x97d   : > { %v2940_v1 = vld [vmem:[%s4358_s2] ss:$0 sm:$0xff]  ;;  %s1172_s2 = scalar_lea.vmem [#allocation30], %s2542_s6 }
 0x97e   : > { %s2243_s9 = sshll.u32 %s1172_s2, 4  ;;  %s2244_s9 = int_to_ptr.vmem [resolvable:$true] %s2243_s9 }
 0x982   : > { %v1959_v16 = vpop.f32.mrf.mxu3 }
 0x9c7   : > { %v2020_v20 = vpop.permute.xlu2 %2019 }
 0x9c8   : > { %v2030_v21 = vsel %vm1452_vm2, %v1957_v15, %v2020_v20 }
 0x9e1   : > { %v2024_v19 = vpop.permute.xlu0 %2023 }
 0x9e2   : > { %v2031_v22 = vsel %vm1677_vm5, %v2030_v21, %v2024_v19 }
 0x9e9   : > { %v2028_v23 = vpop.permute.xlu0 %2027 }
 0x9ea   : > { %v2032_v24 = vsel %vm1679_vm6, %v2031_v22, %v2028_v23  ;;  %v2941_v22 = vld [vmem:[%s4359_s28] ss:$0 sm:$0xff]  ;;  %s3449_s28 = scalar_lea.hbm %s3448_s13, 8 }
 0x9eb   : > { %v2033_v25 = vpack.c.bf16 %v2032_v24, %v2032_v24  ;;  %v2942_v24 = vld [vmem:[%s4361_s8] ss:$0 sm:$0xff]  ;;  %p3450_p1 = scmp.ne.s32.totalorder %s3448_s13, %s3449_s28  ;;  %s3453_s8 = scalar_lea.hbm %s4360_s4, 16 }
 0x9ec   : > { %p3455_p2 = scmp.lt.s32.totalorder %s3453_s8, %s3449_s28 }
 0x9ed   : > { %2632 = vmatmul.msk.bf16.vlgmr.msrb.gmra.mxu3 %vm1210_vm0, %v2033_v25  ;;  %p3451_p9 = pnand %p3450_p1, %p4362_p6 }
 0x9ee   : > { %p3456_p8 = por %p3455_p2, %p3454_p13 }
 0x9ef   : > { %p3452_p12 = pneg %p3451_p9 }
 0x9f1   : > { %p3457_p4 = pnand %p3456_p8, %p3452_p12 }
 0xa70   : > { %v2066_v27 = vpop.f32.mrf.mxu3 }
 0xa71   : > { %v2067_v28 = vadd.f32 %v2936_v26, %v2066_v27 }
 0xa73   : > { %v2070_v30 = vadd.f32 %v2067_v28, %v4179_v59 }
 0xa75   : > { %v2071_v31 = vsel %vm1210_vm0, %v2070_v30, 0.0 }
 0xa76   : > { %2072 = vadd.xlane.f32.xlu0 %v2071_v31 }
 0xa78   : > { %v2068_v32 = vpop.f32.mrf.mxu3 }
 0xae9   : > { %v2073_v2 = vpop.xlane.xlu0 %2072 }
 0xaea   : > { %v2074_v34 = vmul.f32 %v2073_v2, %v4168_v33 }
 0xaec   : > { %v2075_v35 = vsub.f32 %v2070_v30, %v2074_v34 }
 0xaee   : > { %v2076_v36 = vmul.f32 %v2075_v35, %v2075_v35 }
 0xaf0   : > { %v2077_v37 = vsel %vm1210_vm0, %v2076_v36, 0.0 }
 0xaf1   : > { %2078 = vadd.xlane.f32.xlu2 %v2077_v37 }
 0xb64   : > { %v2079_v59 = vpop.xlane.xlu2 %2078 }
 0xb65   : > { %v2080_v40 = vmul.f32 %v2079_v59, %v4168_v33 }
 0xb67   : > { %v2081_v42 = vadd.f32 1e-05, %v2080_v40 }
 0xb69   : > { %2979 = vrsqrt.f32 %v2081_v42  ;;  %vm2088_vm14 = vweird.f32 %v2081_v42 }
 0xb6f   : > { %v2980_v43 = vpop.eup %2979 }
 0xb70   : > { %v2083_v44 = vmul.f32 %v2980_v43, %v2081_v42  ;;  %vm2089_vm13 = vweird.f32 %v2980_v43 }
 0xb71   : > { %vm2090_vm15 = vmor %vm2088_vm14, %vm2089_vm13 }
 0xb72   : > { %v2084_v45 = vmul.f32 %v2980_v43, %v2083_v44 }
 0xb74   : > { %v2085_v46 = vmul.f32 0.5, %v2084_v45 }
 0xb76   : > { %v2086_v47 = vsub.f32 1.5, %v2085_v46 }
 0xb78   : > { %v2087_v49 = vmul.f32 %v2980_v43, %v2086_v47 }
 0xb7a   : > { %v2091_v29 = vsel %vm2090_vm15, %v2980_v43, %v2087_v49 }
 0xb7b   : > { %v2092_v52 = vmul.f32 %v2091_v29, %v2075_v35 }
 0xb7d   : > { %v2097_v53 = vmul.f32 %v2937_v50, %v2092_v52 }
 0xb7f   : > { %v2102_v54 = vadd.f32 %v2938_v51, %v2097_v53 }
 0xb81   : > { %v2103_v55 = vpack.c.bf16 %v2102_v54, %v2102_v54 }
 0xb83   : > { %2641 = vmatmul.msk.bf16.vlgmr.msra.gmra.mxu0 %vm1210_vm0, %v2103_v55 }
 0xc00   : > { %v2136_v60 = vpop.f32.mrf.mxu0 }
 0xc01   : > { %v2137_v61 = vadd.f32 %v2939_v58, %v2136_v60 }
 0xc03   : > { %v2140_v62 = vmax.f32 %v2137_v61, 0.0 }
 0xc05   : > { %v2141_v63 = vpack.c.bf16 %v2140_v62, %v2140_v62 }
 0xc07   : > { %2658 = vmatmul.msk.bf16.vlgmr.msra.gmra.mxu1 %vm2178_vm1, %v2141_v63 }
 0xc08   : > { %v2138_v0 = vpop.f32.mrf.mxu0 }
 0xc84   : > { %v2191_v3 = vpop.f32.mrf.mxu1 }
 0xc85   : > { %v2192_v4 = vadd.f32 %v2940_v1, %v2191_v3 }
 0xc87   : > { %v2195_v5 = vadd.f32 %v2192_v4, %v2102_v54 }
 0xc89   : > { %v2196_v6 = vsel %vm1210_vm0, %v2195_v5, 0.0 }
 0xc8a   : > { %2197 = vadd.xlane.f32.xlu1 %v2196_v6 }
 0xc8c   : > { %v2193_v7 = vpop.f32.mrf.mxu1 }
 0xcfd   : > { %v2198_v8 = vpop.xlane.xlu1 %2197 }
 0xcfe   : > { %v2199_v9 = vmul.f32 %v2198_v8, %v4168_v33 }
 0xd00   : > { %v2200_v10 = vsub.f32 %v2195_v5, %v2199_v9 }
 0xd02   : > { %v2201_v11 = vmul.f32 %v2200_v10, %v2200_v10 }
 0xd04   : > { %v2202_v12 = vsel %vm1210_vm0, %v2201_v11, 0.0 }
 0xd05   : > { %2203 = vadd.xlane.f32.xlu1 %v2202_v12 }
 0xd78   : > { %v2204_v13 = vpop.xlane.xlu1 %2203 }
 0xd79   : > { %v2205_v14 = vmul.f32 %v2204_v13, %v4168_v33 }
 0xd7b   : > { %v2206_v15 = vadd.f32 1e-05, %v2205_v14 }
 0xd7d   : > { %2981 = vrsqrt.f32 %v2206_v15  ;;  %vm2213_vm3 = vweird.f32 %v2206_v15 }
 0xd83   : > { %v2982_v16 = vpop.eup %2981 }
 0xd84   : > { %v2208_v17 = vmul.f32 %v2982_v16, %v2206_v15  ;;  %vm2214_vm2 = vweird.f32 %v2982_v16 }
 0xd85   : > { %vm2215_vm4 = vmor %vm2213_vm3, %vm2214_vm2 }
 0xd86   : > { %v2209_v18 = vmul.f32 %v2982_v16, %v2208_v17 }
 0xd88   : > { %v2210_v19 = vmul.f32 0.5, %v2209_v18 }
 0xd8a   : > { %v2211_v20 = vsub.f32 1.5, %v2210_v19 }
 0xd8c   : > { %v2212_v21 = vmul.f32 %v2982_v16, %v2211_v20 }
 0xd8e   : > { %v2216_v23 = vsel %vm2215_vm4, %v2982_v16, %v2212_v21 }
 0xd8f   : > { %v2217_v33 = vmul.f32 %v2216_v23, %v2200_v10 }
 0xd91   : > { %v2222_v25 = vmul.f32 %v2941_v22, %v2217_v33 }
 0xd93   : > { %v2227_v26 = vadd.f32 %v2942_v24, %v2222_v25 }
 0xd95   : > { %2228 = vst.msk [vmem:[%s1172_s2] sm:$0xff] %vm1210_vm0, %v2227_v26 }
 0xd96   : > { %3460 = shalt.err (!%p3457_p4)
}
 0xd97   : > { %2743 = dma.vmem_to_hbm [thread:$0]  (%p4362_p6), %s2244_s9, 128, %s2246_s12, %s2230_s3  }
 0xd98 PF: > { %s2257_s26 = sand.u32 1, %s3523_s7   ;;  %p4363_p7 = scmp.ne.s32.totalorder %s4342_s22, 0 }
 0xd99   : > { %p4364_p10 = scmp.ge.s32.totalorder %s3543_s16, 2  ;;  %s2258_s6 = scalar_lea.sflag [#allocation8], %s2257_s26 }
 0xd9b   : > { %p2793_p5 = pnand %p4364_p10, %p4363_p7 }
 0xd9d   : > { %p2794_p11 = pneg %p2793_p5 }
 0xd9f   : > { %3518 = dma.done.wait (%p2794_p11), %s2258_s6, 128  }
 0xda0   : > { %3520 = vsyncadd (%p2794_p11), %s2258_s6, 4294967168  ;;  %s82_s16 = sadd.s32 1, %s3543_s16   ;;  %s4365_s7 = smov %s3527_s10 }
 0xda1   : > { %p79_p0 = scmp.ge.s32.totalorder %s82_s16, 4   ;;  %s4366_s10 = smov %s3531_s11 }
 0xda2   : > { %s4367_s11 = smov %s4011_s18  ;;  %s4368_s15 = smov %s3539_s0 }
 0xda3   : > { %s4369_s0 = smov %s4371_s1  ;;  %81 = sbr.rel (!%p79_p0) target bundleno = 69 (0x45), region = 277 }
 0xda8   :  { %2264 = vsyncpa [#allocation7], 1 }
 0xda9   :  { %2266 = vsyncpa [#allocation7 + $0x1], 1 }
 0xdaa   :  { %2267 = vsyncpa [#allocation10], 1 }
 0xdab   :  { %2268 = vsyncpa [#allocation13], 1 }
 0xdac   :  { %2269 = vsyncpa [#allocation16], 1 }
 0xdad   :  { %2270 = vsyncpa [#allocation19], 1 }
 0xdae   :  { %2271 = vsyncpa [#allocation22], 1 }
 0xdaf   :  { %2272 = vsyncpa [#allocation25], 1 }
 0xdb0   :  { %2273 = vsyncpa [#allocation28], 1 }
 0xdb1   :  { %2274 = vsyncpa [#allocation8], 1 }
 0xdb2   :  { %2276 = vsyncpa [#allocation8 + $0x1], 1 }

</bundles_post_ra>
